<compile_context>
chip_gen: v7x
topology: tpu7x:2x2x1
jax: 0.10.0
libtpu: 0.0.40
codegen_flags: <defaults>
</compile_context>

<pallas_src>
import functools

import jax
import jax.numpy as jnp
from jax.experimental import pallas as pl
from jax.experimental.pallas import tpu as pltpu

NEG_SLOPE = 0.01  # nn.LeakyReLU / F.leaky_relu default


# ----------------------------------------------------------------------------
# Fused Pallas kernel: conv3x3(+bias+lrelu) -> conv3x3(+bias+lrelu) -> SE scale
# One grid step per batch image; everything stays in VMEM.
# ----------------------------------------------------------------------------
def _fused_block_kernel(x_ref, w1_ref, b1_ref, w2_ref, b2_ref,
                        wd_ref, bd_ref, wu_ref, bu_ref,
                        o_ref, xpad_sc, ypad_sc, *, H, W):
    Cout = w1_ref.shape[-1]

    def lrelu(v):
        return jnp.where(v >= 0, v, v * NEG_SLOPE)

    def zero_halo(pad_ref):
        # Zero only the 1-pixel halo strips; the interior is fully overwritten right after.
        C = pad_ref.shape[-1]
        dt = pad_ref.dtype
        pad_ref[pl.ds(0, 1)] = jnp.zeros((1, W + 2, C), dt)            # top row
        pad_ref[pl.ds(H + 1, 1)] = jnp.zeros((1, W + 2, C), dt)        # bottom row
        pad_ref[:, pl.ds(0, 1), :] = jnp.zeros((H + 2, 1, C), dt)      # left column
        pad_ref[:, pl.ds(W + 1, 1), :] = jnp.zeros((H + 2, 1, C), dt)  # right column

    def conv3x3(pad_ref, w_ref, b_ref):
        xp = pad_ref[...]                                              # (H+2, W+2, C)
        C = xp.shape[-1]
        # im2col, restructured: 3 sublane-misaligned dx slices ...
        cpad = jnp.concatenate([xp[:, dx:dx + W, :] for dx in range(3)],
                               axis=-1)                                # (H+2, W, 3C)
        # ... then 3 aligned leading-dim dy slices; channel order = (ky, kx, ci),
        # matching the HWIO weight flatten order.
        cols = jnp.concatenate([cpad[dy:dy + H] for dy in range(3)],
                               axis=-1)                                # (H, W, 9C)
        cols = cols.reshape(H * W, 9 * C).astype(w_ref.dtype)          # layout-preserving fold
        acc = jnp.dot(cols, w_ref[...],
                      preferred_element_type=jnp.float32)              # (H*W, Cout) f32
        return acc + b_ref[...]

    # ---- stage 1: pad x into VMEM scratch (halo zeroed), im2col matmul, LeakyReLU
    zero_halo(xpad_sc)
    xpad_sc[pl.ds(1, H), pl.ds(1, W), :] = x_ref[0]
    y = lrelu(conv3x3(xpad_sc, w1_ref, b1_ref))                        # (H*W, Cout) f32

    # ---- stage 2 (Dropout(0.3) is identity in eval mode)
    zero_halo(ypad_sc)
    ypad_sc[pl.ds(1, H), pl.ds(1, W), :] = y.reshape(H, W, Cout).astype(ypad_sc.dtype)
    z = lrelu(conv3x3(ypad_sc, w2_ref, b2_ref))                        # (H*W, Cout) f32

    # ---- SE: global avg pool -> 1x1 down + lrelu -> 1x1 up + sigmoid -> scale
    # All on VPU/XLU (no M=1 MXU matmuls on the serial tail).
    m = jnp.sum(z, axis=0, keepdims=True) * (1.0 / (H * W))            # (1, Cout)
    s = lrelu(jnp.sum(m * wd_ref[...], axis=-1, keepdims=True) + bd_ref[...])   # (Cint, 1)
    u = jnp.sum(s * wu_ref[...], axis=0, keepdims=True) + bu_ref[...]            # (1, Cout)
    u = 1.0 / (1.0 + jnp.exp(-u))                                       # sigmoid
    o_ref[0] = (z * u).astype(o_ref.dtype)


def fused_block(x_nhwc, w1_flat, b1, w2_flat, b2, wd, bd, wu, bu):
    N, H, W, Cin = x_nhwc.shape
    Cout = w1_flat.shape[-1]
    Cint = wd.shape[0]
    cdt = x_nhwc.dtype                                   # compute dtype (f32 or bf16)
    kernel = functools.partial(_fused_block_kernel, H=H, W=W)
    out = pl.pallas_call(
        kernel,
        out_shape=jax.ShapeDtypeStruct((N, H * W, Cout), jnp.float32),
        grid=(N,),
        in_specs=[
            pl.BlockSpec((1, H, W, Cin), lambda n: (n, 0, 0, 0)),
            pl.BlockSpec((9 * Cin, Cout), lambda n: (0, 0)),
            pl.BlockSpec((1, Cout), lambda n: (0, 0)),
            pl.BlockSpec((9 * Cout, Cout), lambda n: (0, 0)),
            pl.BlockSpec((1, Cout), lambda n: (0, 0)),
            pl.BlockSpec((Cint, Cout), lambda n: (0, 0)),
            pl.BlockSpec((Cint, 1), lambda n: (0, 0)),
            pl.BlockSpec((Cint, Cout), lambda n: (0, 0)),
            pl.BlockSpec((1, Cout), lambda n: (0, 0)),
        ],
        out_specs=pl.BlockSpec((1, H * W, Cout), lambda n: (n, 0, 0)),
        scratch_shapes=[
            pltpu.VMEM((H + 2, W + 2, Cin), cdt),    # padded x
            pltpu.VMEM((H + 2, W + 2, Cout), cdt),   # padded y
        ],
        compiler_params=pltpu.CompilerParams(dimension_semantics=("parallel",)),
    )(x_nhwc, w1_flat, b1.reshape(1, Cout), w2_flat, b2.reshape(1, Cout),
      wd, bd.reshape(Cint, 1), wu, bu.reshape(1, Cout))
    return out.reshape(N, H, W, Cout)   # byte-identical reshape


# ----------------------------------------------------------------------------
# Parameter construction / BN folding (glue, plain JAX)
# ----------------------------------------------------------------------------
def _fuse_conv_bn(w_oihw, gamma, beta, mean, var, eps=1e-5):
    std = jnp.sqrt(var + eps)
    t = gamma / std
    return w_oihw * t[:, None, None, None], beta - mean * t


def _pad_1x1_to_3x3(w_oihw_1x1):
    return jnp.pad(w_oihw_1x1, ((0, 0), (0, 0), (1, 1), (1, 1)))


def _id_3x3(cout, cin):
    k = jnp.zeros((cout, cin, 3, 3), jnp.float32)
    idx = jnp.arange(cout)
    return k.at[idx, idx % cin, 1, 1].set(1.0)


def make_params(key, cin, cout):
    ks = jax.random.split(key, 32)
    i = iter(range(32))
    nrm = lambda shape, s=0.1: (jax.random.normal(ks[next(i)], shape, jnp.float32) * s)
    uni = lambda shape: jax.random.uniform(ks[next(i)], shape, jnp.float32, 0.5, 1.5)

    def bn(c):
        return dict(gamma=uni((c,)), beta=nrm((c,)), mean=nrm((c,)), var=uni((c,)))

    p = dict(
        w3_1=nrm((cout, cin, 3, 3)), bn3_1=bn(cout),
        w1_1=nrm((cout, cin, 1, 1)), bn1_1=bn(cout),
        bnid_1=bn(cin) if cin == cout else None,
        w3_2=nrm((cout, cout, 3, 3)), bn3_2=bn(cout),
        w1_2=nrm((cout, cout, 1, 1)), bn1_2=bn(cout),
        bnid_2=bn(cout),
        se_down_w=nrm((cout // 16, cout, 1, 1)), se_down_b=nrm((cout // 16,)),
        se_up_w=nrm((cout, cout // 16, 1, 1)), se_up_b=nrm((cout,)),
    )
    return p


def fold_stage(w3, bn3, w1, bn1, bnid, cin, cout):
    k3, b3 = _fuse_conv_bn(w3, bn3["gamma"], bn3["beta"], bn3["mean"], bn3["var"])
    k1, b1 = _fuse_conv_bn(w1, bn1["gamma"], bn1["beta"], bn1["mean"], bn1["var"])
    k1 = _pad_1x1_to_3x3(k1)
    if bnid is not None:
        kid, bid = _fuse_conv_bn(_id_3x3(cout, cin), bnid["gamma"], bnid["beta"],
                                 bnid["mean"], bnid["var"])
    else:
        kid, bid = 0.0, 0.0
    k_eq = k3 + k1 + kid                          # OIHW
    b_eq = b3 + b1 + bid
    w_hwio = jnp.transpose(k_eq, (2, 3, 1, 0))    # (3,3,Cin,Cout)
    return w_hwio, b_eq


# ----------------------------------------------------------------------------
# Full forward (wrapper glue: layout + BN folding + weight flattening)
# ----------------------------------------------------------------------------
def forward(x_nchw, p, cin, cout, use_bf16=False):
    x = jnp.transpose(x_nchw, (0, 2, 3, 1))       # NCHW -> NHWC
    w1_hwio, b1 = fold_stage(p["w3_1"], p["bn3_1"], p["w1_1"], p["bn1_1"],
                             p["bnid_1"], cin, cout)
    w2_hwio, b2 = fold_stage(p["w3_2"], p["bn3_2"], p["w1_2"], p["bn1_2"],
                             p["bnid_2"], cout, cout)
    w1_flat = w1_hwio.reshape(9 * cin, cout)      # row order (ky,kx,ci) matches im2col
    w2_flat = w2_hwio.reshape(9 * cout, cout)
    if use_bf16:                                  # v6e/v7x MXU fast path (f32 accumulate)
        x = x.astype(jnp.bfloat16)
        w1_flat = w1_flat.astype(jnp.bfloat16)
        w2_flat = w2_flat.astype(jnp.bfloat16)
    wd = p["se_down_w"][:, :, 0, 0]                              # (Cint, C)
    wu = jnp.transpose(p["se_up_w"][:, :, 0, 0], (1, 0))         # (Cint, C)

    out_nhwc = fused_block(x, w1_flat, b1, w2_flat, b2,
                           wd, p["se_down_b"], wu, p["se_up_b"])
    return jnp.transpose(out_nhwc, (0, 3, 1, 2))  # back to NCHW


def forward_ref(x_nchw, p, cin, cout, compute_dtype=jnp.float32):
    """Pure-JAX reference. compute_dtype=bf16 emulates the bf16 MXU-operand path."""
    x = jnp.transpose(x_nchw, (0, 2, 3, 1))
    w1eq, b1eq = fold_stage(p["w3_1"], p["bn3_1"], p["w1_1"], p["bn1_1"],
                            p["bnid_1"], cin, cout)
    w2eq, b2eq = fold_stage(p["w3_2"], p["bn3_2"], p["w1_2"], p["bn1_2"],
                            p["bnid_2"], cout, cout)

    def conv(a, w, b):
        y = jax.lax.conv_general_dilated(
            a.astype(compute_dtype), w.astype(compute_dtype), (1, 1), "SAME",
            dimension_numbers=("NHWC", "HWIO", "NHWC"),
            preferred_element_type=jnp.float32)
        return y + b[None, None, None, :]

    y = jax.nn.leaky_relu(conv(x, w1eq, b1eq), NEG_SLOPE)
    z = jax.nn.leaky_relu(conv(y, w2eq, b2eq), NEG_SLOPE)
    m = jnp.mean(z, axis=(1, 2))                               # (N, C)
    wd = jnp.transpose(p["se_down_w"][:, :, 0, 0], (1, 0))
    wu = jnp.transpose(p["se_up_w"][:, :, 0, 0], (1, 0))
    s = jax.nn.leaky_relu(m @ wd + p["se_down_b"], NEG_SLOPE)
    u = jax.nn.sigmoid(s @ wu + p["se_up_b"])
    out = z * u[:, None, None, :]
    return jnp.transpose(out, (0, 3, 1, 2))


if __name__ == "__main__":
    N, CIN, COUT, H, W = 2, 32, 32, 16, 16       # COUT >= 16 so SE internal_neurons >= 1
    key = jax.random.PRNGKey(0)
    kx, kp = jax.random.split(key)
    x = jax.random.normal(kx, (N, CIN, H, W), jnp.float32)   # PyTorch-style NCHW input
    params = make_params(kp, CIN, COUT)

    fwd = jax.jit(forward, static_argnums=(2, 3, 4))

    # f32 path: strict validation against the pure-JAX reference.
    out = jax.block_until_ready(fwd(x, params, CIN, COUT, False))
    ref = jax.block_until_ready(forward_ref(x, params, CIN, COUT))
    assert out.shape == (N, COUT, H, W)
    assert jnp.max(jnp.abs(out - ref)) < 1e-4, float(jnp.max(jnp.abs(out - ref)))

    # bf16 MXU-operand path (v6e/v7x fast path): validated against a bf16-emulating reference.
    out_bf = jax.block_until_ready(fwd(x, params, CIN, COUT, True))
    ref_bf = jax.block_until_ready(forward_ref(x, params, CIN, COUT, jnp.bfloat16))
    assert out_bf.shape == (N, COUT, H, W)
    assert jnp.max(jnp.abs(out_bf - ref_bf)) < 1e-2, float(jnp.max(jnp.abs(out_bf - ref_bf)))

    print("KERNEL_OK")
</pallas_src>

<mosaic_0001>
module attributes {stable_mosaic.version = 11 : i64} {
  func.func @_fused_block_kernel(%arg0: i32, %arg1: memref<1x16x16x32xf32, #tpu.memory_space<vmem>>, %arg2: memref<288x32xf32, #tpu.memory_space<vmem>>, %arg3: memref<1x32xf32, #tpu.memory_space<vmem>>, %arg4: memref<288x32xf32, #tpu.memory_space<vmem>>, %arg5: memref<1x32xf32, #tpu.memory_space<vmem>>, %arg6: memref<2x32xf32, #tpu.memory_space<vmem>>, %arg7: memref<2x1xf32, #tpu.memory_space<vmem>>, %arg8: memref<2x32xf32, #tpu.memory_space<vmem>>, %arg9: memref<1x32xf32, #tpu.memory_space<vmem>>, %arg10: memref<1x256x32xf32, #tpu.memory_space<vmem>>, %arg11: memref<18x18x32xf32, #tpu.memory_space<vmem>>, %arg12: memref<18x18x32xf32, #tpu.memory_space<vmem>>) attributes {dimension_semantics = [#tpu.dimension_semantics<parallel>], iteration_bounds = array<i64: 2>, scalar_prefetch = 0 : i64, scratch_operands = 2 : i64, tpu.core_type = #tpu.core_type<tc>, window_params = [{transform_indices = @transform_0, window_bounds = array<i64: 1, 16, 16, 32>}, {pipeline_mode = #tpu.pipeline_mode<synchronous>, transform_indices = @transform_1, window_bounds = array<i64: 288, 32>}, {pipeline_mode = #tpu.pipeline_mode<synchronous>, transform_indices = @transform_2, window_bounds = array<i64: 1, 32>}, {pipeline_mode = #tpu.pipeline_mode<synchronous>, transform_indices = @transform_3, window_bounds = array<i64: 288, 32>}, {pipeline_mode = #tpu.pipeline_mode<synchronous>, transform_indices = @transform_4, window_bounds = array<i64: 1, 32>}, {pipeline_mode = #tpu.pipeline_mode<synchronous>, transform_indices = @transform_5, window_bounds = array<i64: 2, 32>}, {pipeline_mode = #tpu.pipeline_mode<synchronous>, transform_indices = @transform_6, window_bounds = array<i64: 2, 1>}, {pipeline_mode = #tpu.pipeline_mode<synchronous>, transform_indices = @transform_7, window_bounds = array<i64: 2, 32>}, {pipeline_mode = #tpu.pipeline_mode<synchronous>, transform_indices = @transform_8, window_bounds = array<i64: 1, 32>}, {transform_indices = @transform_9, window_bounds = array<i64: 1, 256, 32>}]} {
    %cst = arith.constant 0.000000e+00 : f32
    %0 = vector.broadcast %cst : f32 to vector<1x18x32xf32>
    %c0 = arith.constant 0 : index
    %c0_0 = arith.constant 0 : index
    %c0_1 = arith.constant 0 : index
    %1 = vector.load %arg11[%c0, %c0_0, %c0_1] : memref<18x18x32xf32, #tpu.memory_space<vmem>>, vector<1x18x32xf32>
    tpu.vector_store %arg11[%c0, %c0_0, %c0_1], %0 {strides = array<i32>} : memref<18x18x32xf32, #tpu.memory_space<vmem>>, vector<1x18x32xf32>,
    %cst_2 = arith.constant 0.000000e+00 : f32
    %2 = vector.broadcast %cst_2 : f32 to vector<1x18x32xf32>
    %c17 = arith.constant 17 : index
    %c0_3 = arith.constant 0 : index
    %c0_4 = arith.constant 0 : index
    %3 = vector.load %arg11[%c17, %c0_3, %c0_4] : memref<18x18x32xf32, #tpu.memory_space<vmem>>, vector<1x18x32xf32>
    tpu.vector_store %arg11[%c17, %c0_3, %c0_4], %2 {strides = array<i32>} : memref<18x18x32xf32, #tpu.memory_space<vmem>>, vector<1x18x32xf32>,
    %cst_5 = arith.constant 0.000000e+00 : f32
    %4 = vector.broadcast %cst_5 : f32 to vector<18x1x32xf32>
    %c0_6 = arith.constant 0 : index
    %c0_7 = arith.constant 0 : index
    %c0_8 = arith.constant 0 : index
    %5 = vector.load %arg11[%c0_6, %c0_7, %c0_8] : memref<18x18x32xf32, #tpu.memory_space<vmem>>, vector<18x1x32xf32>
    tpu.vector_store %arg11[%c0_6, %c0_7, %c0_8], %4 {strides = array<i32>} : memref<18x18x32xf32, #tpu.memory_space<vmem>>, vector<18x1x32xf32>,
    %cst_9 = arith.constant 0.000000e+00 : f32
    %6 = vector.broadcast %cst_9 : f32 to vector<18x1x32xf32>
    %c0_10 = arith.constant 0 : index
    %c17_11 = arith.constant 17 : index
    %c0_12 = arith.constant 0 : index
    %7 = vector.load %arg11[%c0_10, %c17_11, %c0_12] : memref<18x18x32xf32, #tpu.memory_space<vmem>>, vector<18x1x32xf32>
    tpu.vector_store %arg11[%c0_10, %c17_11, %c0_12], %6 {strides = array<i32>} : memref<18x18x32xf32, #tpu.memory_space<vmem>>, vector<18x1x32xf32>,
    %c0_13 = arith.constant 0 : index
    %c0_14 = arith.constant 0 : index
    %c0_15 = arith.constant 0 : index
    %c0_16 = arith.constant 0 : index
    %8 = vector.load %arg1[%c0_13, %c0_14, %c0_15, %c0_16] : memref<1x16x16x32xf32, #tpu.memory_space<vmem>>, vector<1x16x16x32xf32>
    %9 = vector.shape_cast %8 : vector<1x16x16x32xf32> to vector<16x16x32xf32>
    %c1 = arith.constant 1 : index
    %c1_17 = arith.constant 1 : index
    %c0_18 = arith.constant 0 : index
    %10 = vector.load %arg11[%c1, %c1_17, %c0_18] : memref<18x18x32xf32, #tpu.memory_space<vmem>>, vector<16x16x32xf32>
    tpu.vector_store %arg11[%c1, %c1_17, %c0_18], %9 {strides = array<i32>} : memref<18x18x32xf32, #tpu.memory_space<vmem>>, vector<16x16x32xf32>,
    %c0_19 = arith.constant 0 : index
    %c0_20 = arith.constant 0 : index
    %c0_21 = arith.constant 0 : index
    %11 = vector.load %arg11[%c0_19, %c0_20, %c0_21] : memref<18x18x32xf32, #tpu.memory_space<vmem>>, vector<18x18x32xf32>
    %12 = vector.extract_strided_slice %11 {offsets = [0, 0, 0], sizes = [18, 16, 32], strides = [1, 1, 1]} : vector<18x18x32xf32> to vector<18x16x32xf32>
    %13 = vector.extract_strided_slice %11 {offsets = [0, 1, 0], sizes = [18, 16, 32], strides = [1, 1, 1]} : vector<18x18x32xf32> to vector<18x16x32xf32>
    %14 = vector.extract_strided_slice %11 {offsets = [0, 2, 0], sizes = [18, 16, 32], strides = [1, 1, 1]} : vector<18x18x32xf32> to vector<18x16x32xf32>
    %15 = tpu.concatenate %12, %13, %14 in 2 : vector<18x16x32xf32>, vector<18x16x32xf32>, vector<18x16x32xf32> -> vector<18x16x96xf32>
    %16 = vector.extract_strided_slice %15 {offsets = [0, 0, 0], sizes = [16, 16, 96], strides = [1, 1, 1]} : vector<18x16x96xf32> to vector<16x16x96xf32>
    %17 = vector.extract_strided_slice %15 {offsets = [1, 0, 0], sizes = [16, 16, 96], strides = [1, 1, 1]} : vector<18x16x96xf32> to vector<16x16x96xf32>
    %18 = vector.extract_strided_slice %15 {offsets = [2, 0, 0], sizes = [16, 16, 96], strides = [1, 1, 1]} : vector<18x16x96xf32> to vector<16x16x96xf32>
    %19 = tpu.concatenate %16, %17, %18 in 2 : vector<16x16x96xf32>, vector<16x16x96xf32>, vector<16x16x96xf32> -> vector<16x16x288xf32>
    %20 = vector.shape_cast %19 : vector<16x16x288xf32> to vector<256x288xf32>
    %c0_22 = arith.constant 0 : index
    %c0_23 = arith.constant 0 : index
    %21 = vector.load %arg2[%c0_22, %c0_23] : memref<288x32xf32, #tpu.memory_space<vmem>>, vector<288x32xf32>
    %cst_24 = arith.constant dense<0.000000e+00> : vector<256x32xf32>
    %22 = tpu.matmul %20, %21, %cst_24 {dimension_numbers = #tpu.dot_dimension_numbers<[1], [0], [0], [1], [0, 0, 1, 1], [], []>} : vector<256x288xf32>, vector<288x32xf32>, vector<256x32xf32> -> vector<256x32xf32>
    %c0_25 = arith.constant 0 : index
    %c0_26 = arith.constant 0 : index
    %23 = vector.load %arg3[%c0_25, %c0_26] : memref<1x32xf32, #tpu.memory_space<vmem>>, vector<1x32xf32>
    %24 = vector.broadcast %23 : vector<1x32xf32> to vector<256x32xf32>
    %25 = arith.addf %22, %24 : vector<256x32xf32>
    %cst_27 = arith.constant 0.000000e+00 : f32
    %26 = vector.broadcast %cst_27 : f32 to vector<256x32xf32>
    %27 = arith.cmpf oge, %25, %26 : vector<256x32xf32>
    %cst_28 = arith.constant 0.00999999977 : f32
    %28 = vector.broadcast %cst_28 : f32 to vector<256x32xf32>
    %29 = arith.mulf %25, %28 : vector<256x32xf32>
    %30 = arith.select %27, %25, %29 : vector<256x32xi1>, vector<256x32xf32>
    %cst_29 = arith.constant 0.000000e+00 : f32
    %31 = vector.broadcast %cst_29 : f32 to vector<1x18x32xf32>
    %c0_30 = arith.constant 0 : index
    %c0_31 = arith.constant 0 : index
    %c0_32 = arith.constant 0 : index
    %32 = vector.load %arg12[%c0_30, %c0_31, %c0_32] : memref<18x18x32xf32, #tpu.memory_space<vmem>>, vector<1x18x32xf32>
    tpu.vector_store %arg12[%c0_30, %c0_31, %c0_32], %31 {strides = array<i32>} : memref<18x18x32xf32, #tpu.memory_space<vmem>>, vector<1x18x32xf32>,
    %cst_33 = arith.constant 0.000000e+00 : f32
    %33 = vector.broadcast %cst_33 : f32 to vector<1x18x32xf32>
    %c17_34 = arith.constant 17 : index
    %c0_35 = arith.constant 0 : index
    %c0_36 = arith.constant 0 : index
    %34 = vector.load %arg12[%c17_34, %c0_35, %c0_36] : memref<18x18x32xf32, #tpu.memory_space<vmem>>, vector<1x18x32xf32>
    tpu.vector_store %arg12[%c17_34, %c0_35, %c0_36], %33 {strides = array<i32>} : memref<18x18x32xf32, #tpu.memory_space<vmem>>, vector<1x18x32xf32>,
    %cst_37 = arith.constant 0.000000e+00 : f32
    %35 = vector.broadcast %cst_37 : f32 to vector<18x1x32xf32>
    %c0_38 = arith.constant 0 : index
    %c0_39 = arith.constant 0 : index
    %c0_40 = arith.constant 0 : index
    %36 = vector.load %arg12[%c0_38, %c0_39, %c0_40] : memref<18x18x32xf32, #tpu.memory_space<vmem>>, vector<18x1x32xf32>
    tpu.vector_store %arg12[%c0_38, %c0_39, %c0_40], %35 {strides = array<i32>} : memref<18x18x32xf32, #tpu.memory_space<vmem>>, vector<18x1x32xf32>,
    %cst_41 = arith.constant 0.000000e+00 : f32
    %37 = vector.broadcast %cst_41 : f32 to vector<18x1x32xf32>
    %c0_42 = arith.constant 0 : index
    %c17_43 = arith.constant 17 : index
    %c0_44 = arith.constant 0 : index
    %38 = vector.load %arg12[%c0_42, %c17_43, %c0_44] : memref<18x18x32xf32, #tpu.memory_space<vmem>>, vector<18x1x32xf32>
    tpu.vector_store %arg12[%c0_42, %c17_43, %c0_44], %37 {strides = array<i32>} : memref<18x18x32xf32, #tpu.memory_space<vmem>>, vector<18x1x32xf32>,
    %39 = vector.shape_cast %30 : vector<256x32xf32> to vector<16x16x32xf32>
    %c1_45 = arith.constant 1 : index
    %c1_46 = arith.constant 1 : index
    %c0_47 = arith.constant 0 : index
    %40 = vector.load %arg12[%c1_45, %c1_46, %c0_47] : memref<18x18x32xf32, #tpu.memory_space<vmem>>, vector<16x16x32xf32>
    tpu.vector_store %arg12[%c1_45, %c1_46, %c0_47], %39 {strides = array<i32>} : memref<18x18x32xf32, #tpu.memory_space<vmem>>, vector<16x16x32xf32>,
    %c0_48 = arith.constant 0 : index
    %c0_49 = arith.constant 0 : index
    %c0_50 = arith.constant 0 : index
    %41 = vector.load %arg12[%c0_48, %c0_49, %c0_50] : memref<18x18x32xf32, #tpu.memory_space<vmem>>, vector<18x18x32xf32>
    %42 = vector.extract_strided_slice %41 {offsets = [0, 0, 0], sizes = [18, 16, 32], strides = [1, 1, 1]} : vector<18x18x32xf32> to vector<18x16x32xf32>
    %43 = vector.extract_strided_slice %41 {offsets = [0, 1, 0], sizes = [18, 16, 32], strides = [1, 1, 1]} : vector<18x18x32xf32> to vector<18x16x32xf32>
    %44 = vector.extract_strided_slice %41 {offsets = [0, 2, 0], sizes = [18, 16, 32], strides = [1, 1, 1]} : vector<18x18x32xf32> to vector<18x16x32xf32>
    %45 = tpu.concatenate %42, %43, %44 in 2 : vector<18x16x32xf32>, vector<18x16x32xf32>, vector<18x16x32xf32> -> vector<18x16x96xf32>
    %46 = vector.extract_strided_slice %45 {offsets = [0, 0, 0], sizes = [16, 16, 96], strides = [1, 1, 1]} : vector<18x16x96xf32> to vector<16x16x96xf32>
    %47 = vector.extract_strided_slice %45 {offsets = [1, 0, 0], sizes = [16, 16, 96], strides = [1, 1, 1]} : vector<18x16x96xf32> to vector<16x16x96xf32>
    %48 = vector.extract_strided_slice %45 {offsets = [2, 0, 0], sizes = [16, 16, 96], strides = [1, 1, 1]} : vector<18x16x96xf32> to vector<16x16x96xf32>
    %49 = tpu.concatenate %46, %47, %48 in 2 : vector<16x16x96xf32>, vector<16x16x96xf32>, vector<16x16x96xf32> -> vector<16x16x288xf32>
    %50 = vector.shape_cast %49 : vector<16x16x288xf32> to vector<256x288xf32>
    %c0_51 = arith.constant 0 : index
    %c0_52 = arith.constant 0 : index
    %51 = vector.load %arg4[%c0_51, %c0_52] : memref<288x32xf32, #tpu.memory_space<vmem>>, vector<288x32xf32>
    %cst_53 = arith.constant dense<0.000000e+00> : vector<256x32xf32>
    %52 = tpu.matmul %50, %51, %cst_53 {dimension_numbers = #tpu.dot_dimension_numbers<[1], [0], [0], [1], [0, 0, 1, 1], [], []>} : vector<256x288xf32>, vector<288x32xf32>, vector<256x32xf32> -> vector<256x32xf32>
    %c0_54 = arith.constant 0 : index
    %c0_55 = arith.constant 0 : index
    %53 = vector.load %arg5[%c0_54, %c0_55] : memref<1x32xf32, #tpu.memory_space<vmem>>, vector<1x32xf32>
    %54 = vector.broadcast %53 : vector<1x32xf32> to vector<256x32xf32>
    %55 = arith.addf %52, %54 : vector<256x32xf32>
    %cst_56 = arith.constant 0.000000e+00 : f32
    %56 = vector.broadcast %cst_56 : f32 to vector<256x32xf32>
    %57 = arith.cmpf oge, %55, %56 : vector<256x32xf32>
    %cst_57 = arith.constant 0.00999999977 : f32
    %58 = vector.broadcast %cst_57 : f32 to vector<256x32xf32>
    %59 = arith.mulf %55, %58 : vector<256x32xf32>
    %60 = arith.select %57, %55, %59 : vector<256x32xi1>, vector<256x32xf32>
    %cst_58 = arith.constant dense<0.000000e+00> : vector<32xf32>
    %61 = vector.multi_reduction <add>, %60, %cst_58 [0] : vector<256x32xf32> to vector<32xf32>
    %62 = vector.shape_cast %61 : vector<32xf32> to vector<1x32xf32>
    %cst_59 = arith.constant 3.906250e-03 : f32
    %63 = vector.broadcast %cst_59 : f32 to vector<1x32xf32>
    %64 = arith.mulf %62, %63 : vector<1x32xf32>
    %c0_60 = arith.constant 0 : index
    %c0_61 = arith.constant 0 : index
    %65 = vector.load %arg6[%c0_60, %c0_61] : memref<2x32xf32, #tpu.memory_space<vmem>>, vector<2x32xf32>
    %66 = vector.broadcast %64 : vector<1x32xf32> to vector<2x32xf32>
    %67 = arith.mulf %66, %65 : vector<2x32xf32>
    %cst_62 = arith.constant dense<0.000000e+00> : vector<2xf32>
    %68 = vector.multi_reduction <add>, %67, %cst_62 [1] : vector<2x32xf32> to vector<2xf32>
    %69 = vector.shape_cast %68 : vector<2xf32> to vector<2x1xf32>
    %c0_63 = arith.constant 0 : index
    %c0_64 = arith.constant 0 : index
    %70 = vector.load %arg7[%c0_63, %c0_64] : memref<2x1xf32, #tpu.memory_space<vmem>>, vector<2x1xf32>
    %71 = arith.addf %69, %70 : vector<2x1xf32>
    %cst_65 = arith.constant 0.000000e+00 : f32
    %72 = vector.broadcast %cst_65 : f32 to vector<2x1xf32>
    %73 = arith.cmpf oge, %71, %72 : vector<2x1xf32>
    %cst_66 = arith.constant 0.00999999977 : f32
    %74 = vector.broadcast %cst_66 : f32 to vector<2x1xf32>
    %75 = arith.mulf %71, %74 : vector<2x1xf32>
    %76 = arith.select %73, %71, %75 : vector<2x1xi1>, vector<2x1xf32>
    %c0_67 = arith.constant 0 : index
    %c0_68 = arith.constant 0 : index
    %77 = vector.load %arg8[%c0_67, %c0_68] : memref<2x32xf32, #tpu.memory_space<vmem>>, vector<2x32xf32>
    %78 = vector.broadcast %76 : vector<2x1xf32> to vector<2x32xf32>
    %79 = arith.mulf %78, %77 : vector<2x32xf32>
    %cst_69 = arith.constant dense<0.000000e+00> : vector<32xf32>
    %80 = vector.multi_reduction <add>, %79, %cst_69 [0] : vector<2x32xf32> to vector<32xf32>
    %81 = vector.shape_cast %80 : vector<32xf32> to vector<1x32xf32>
    %c0_70 = arith.constant 0 : index
    %c0_71 = arith.constant 0 : index
    %82 = vector.load %arg9[%c0_70, %c0_71] : memref<1x32xf32, #tpu.memory_space<vmem>>, vector<1x32xf32>
    %83 = arith.addf %81, %82 : vector<1x32xf32>
    %cst_72 = arith.constant 0.000000e+00 : f32
    %84 = vector.broadcast %cst_72 : f32 to vector<1x32xf32>
    %85 = arith.subf %84, %83 : vector<1x32xf32>
    %86 = math.exp %85 : vector<1x32xf32>
    %cst_73 = arith.constant 1.000000e+00 : f32
    %87 = vector.broadcast %cst_73 : f32 to vector<1x32xf32>
    %88 = arith.addf %87, %86 : vector<1x32xf32>
    %cst_74 = arith.constant 1.000000e+00 : f32
    %89 = vector.broadcast %cst_74 : f32 to vector<1x32xf32>
    %90 = arith.divf %89, %88 : vector<1x32xf32>
    %91 = vector.broadcast %90 : vector<1x32xf32> to vector<256x32xf32>
    %92 = arith.mulf %60, %91 : vector<256x32xf32>
    %c0_75 = arith.constant 0 : index
    %c0_76 = arith.constant 0 : index
    %c0_77 = arith.constant 0 : index
    %93 = vector.load %arg10[%c0_75, %c0_76, %c0_77] : memref<1x256x32xf32, #tpu.memory_space<vmem>>, vector<1x256x32xf32>
    %94 = vector.shape_cast %93 : vector<1x256x32xf32> to vector<256x32xf32>
    %95 = vector.shape_cast %92 : vector<256x32xf32> to vector<1x256x32xf32>
    tpu.vector_store %arg10[%c0_75, %c0_76, %c0_77], %95 {strides = array<i32>} : memref<1x256x32xf32, #tpu.memory_space<vmem>>, vector<1x256x32xf32>,
    return
  }
  func.func @transform_0(%arg0: i32) -> (i32, i32, i32, i32) {
    %c0_i32 = arith.constant 0 : i32
    %c0_i32_0 = arith.constant 0 : i32
    %c0_i32_1 = arith.constant 0 : i32
    %c0_i32_2 = arith.constant 0 : i32
    return %arg0, %c0_i32, %c0_i32_0, %c0_i32_1 : i32, i32, i32, i32
  }
  func.func @transform_1(%arg0: i32) -> (i32, i32) {
    %c0_i32 = arith.constant 0 : i32
    %c0_i32_0 = arith.constant 0 : i32
    %c0_i32_1 = arith.constant 0 : i32
    return %c0_i32, %c0_i32_0 : i32, i32
  }
  func.func @transform_2(%arg0: i32) -> (i32, i32) {
    %c0_i32 = arith.constant 0 : i32
    %c0_i32_0 = arith.constant 0 : i32
    %c0_i32_1 = arith.constant 0 : i32
    return %c0_i32, %c0_i32_0 : i32, i32
  }
  func.func @transform_3(%arg0: i32) -> (i32, i32) {
    %c0_i32 = arith.constant 0 : i32
    %c0_i32_0 = arith.constant 0 : i32
    %c0_i32_1 = arith.constant 0 : i32
    return %c0_i32, %c0_i32_0 : i32, i32
  }
  func.func @transform_4(%arg0: i32) -> (i32, i32) {
    %c0_i32 = arith.constant 0 : i32
    %c0_i32_0 = arith.constant 0 : i32
    %c0_i32_1 = arith.constant 0 : i32
    return %c0_i32, %c0_i32_0 : i32, i32
  }
  func.func @transform_5(%arg0: i32) -> (i32, i32) {
    %c0_i32 = arith.constant 0 : i32
    %c0_i32_0 = arith.constant 0 : i32
    %c0_i32_1 = arith.constant 0 : i32
    return %c0_i32, %c0_i32_0 : i32, i32
  }
  func.func @transform_6(%arg0: i32) -> (i32, i32) {
    %c0_i32 = arith.constant 0 : i32
    %c0_i32_0 = arith.constant 0 : i32
    %c0_i32_1 = arith.constant 0 : i32
    return %c0_i32, %c0_i32_0 : i32, i32
  }
  func.func @transform_7(%arg0: i32) -> (i32, i32) {
    %c0_i32 = arith.constant 0 : i32
    %c0_i32_0 = arith.constant 0 : i32
    %c0_i32_1 = arith.constant 0 : i32
    return %c0_i32, %c0_i32_0 : i32, i32
  }
  func.func @transform_8(%arg0: i32) -> (i32, i32) {
    %c0_i32 = arith.constant 0 : i32
    %c0_i32_0 = arith.constant 0 : i32
    %c0_i32_1 = arith.constant 0 : i32
    return %c0_i32, %c0_i32_0 : i32, i32
  }
  func.func @transform_9(%arg0: i32) -> (i32, i32, i32) {
    %c0_i32 = arith.constant 0 : i32
    %c0_i32_0 = arith.constant 0 : i32
    %c0_i32_1 = arith.constant 0 : i32
    return %arg0, %c0_i32, %c0_i32_0 : i32, i32, i32
  }
}

</mosaic_0001>

<bundles_post_ra>
// kernel: forward.1
= control target key start
LH: loop header
LB: loop body
LE: loop exit
PB: predicated region body
PF: predicated region fallthrough
CT: control target
= control target key end

     0   :  { %14 = vsyncpa [#allocation5], 0  ;;  %s6995_s0 = inlined_call_operand.vmem [shape: f32[2,16,16,32], index: 0, kind: input, shape index: {}]   ;;  %s6996_s1 = inlined_call_operand.vmem [shape: f32[288,32], index: 1, kind: input, shape index: {}]   ;;  %s6997_s2 = inlined_call_operand.vmem [shape: f32[1,32], index: 2, kind: input, shape index: {}]   ;;  %s6998_s3 = inlined_call_operand.vmem [shape: f32[288,32], index: 3, kind: input, shape index: {}]   ;;  %s6999_s4 = inlined_call_operand.vmem [shape: f32[1,32], index: 4, kind: input, shape index: {}]   ;;  %s7000_s5 = inlined_call_operand.vmem [shape: f32[2,32], index: 5, kind: input, shape index: {}]   ;;  %s7001_s6 = inlined_call_operand.vmem [shape: f32[2,1], index: 6, kind: input, shape index: {}]   ;;  %s7002_s7 = inlined_call_operand.vmem [shape: f32[2,32], index: 7, kind: input, shape index: {}]   ;;  %s7003_s8 = inlined_call_operand.vmem [shape: f32[1,32], index: 8, kind: input, shape index: {}]   ;;  %s7004_s9 = inlined_call_operand.hbm [shape: f32[2,256,32], index: 9, kind: output, shape index: {}]  }
   0x1   :  { %16 = vsyncpa [#allocation5 + $0x1], 0  ;;  %s4497_s30 = smov 0   ;;  %s4499_s10 = smov 0  }
   0x2   :  { %s4501_s11 = smov 0   ;;  %s4503_s12 = smov 0  }
   0x3 LB: > { %s4518_s13 = sadd.s32 4294967295, %s4436_s12   ;;  %s3806_s14 = sadd.s32 4294967294, %s4436_s12   ;;  %s4436_s12 = sphi %s4503_s12, %s7010_s12   ;;  %s4432_s11 = sphi %s4501_s11, %s7009_s11   ;;  %s4428_s10 = sphi %s4499_s10, %s7008_s10   ;;  %s4424_s30 = sphi %s4497_s30, %s7007_s30  }
   0x4   : > { %s4522_s15 = sadd.s32 1, %s4436_s12   ;;  %s223_s16 = sadd.s32 1, %s4432_s11 }
   0x5   : > { %s220_s17 = ssub.s32 %s4436_s12, %s4522_s15  ;;  %p233_p0 = scmp.ne.s32.totalorder %s4432_s11, %s4428_s10 }
   0x6   : > { %p221_p1 = scmp.eq.s32.totalorder %s220_s17, 0  ;;  %p234_p2 = scmp.eq.s32.totalorder %s4518_s13, 1 }
   0x7   : > { %p239_p3 = scmp.ne.s32.totalorder %s4428_s10, %s4424_s30  ;;  %p240_p4 = scmp.eq.s32.totalorder %s3806_s14, 1 }
   0x8   : > { %s4533_s18 = scalar_select %p221_p1, %s4432_s11, %s223_s16  }
   0x9   : > { %p4535_p5 = por %p234_p2, %p233_p0  ;;  %p4539_p6 = por %p240_p4, %p239_p3 }
   0xa   : > { %p3809_p7 = scmp.ge.s32.totalorder %s4436_s12, 1  ;;  %p290_p8 = scmp.lt.s32.totalorder %s4436_s12, 3 }
   0xc   : > { %p291_p9 = pnand %p3809_p7, %p290_p8 }
   0xd   : > { %p326_p10 = scmp.lt.s32.totalorder (!%p291_p9), %s4518_s13, 1  ;;  %vm331_vm0 = vcmask (!%p291_p9), 261120   ;;  %vm340_vm1 = vcmask (!%p291_p9), 253952   ;;  %v4438_v0 = vmov (!%p291_p9), 0.0   ;;  %vm334_vm2 = vcmask (!%p291_p9), 254976   ;;  %s4439_s26 = smov (!%p291_p9), 32  }
   0xe   : > { %294 = sbr.rel (%p291_p9) target bundleno = 1654 (0x676), region = 56  ;;  %342 = vst.msk [vmem:[#allocation2 + $0x18] sm:$0x1] (!%p291_p9), %vm340_vm1, %v4438_v0  ;;  %360 = vst.msk [vmem:[#allocation2 + $0x29] sm:$0x1] (!%p291_p9), %vm340_vm1, %v4438_v0  ;;  %vm550_vm3 = vcmask (!%p291_p9), 1046528  }
   0xf   : > { %332 = vst.msk [vmem:[#allocation2] sm:$0xff] (!%p291_p9), %vm331_vm0, %v4438_v0  ;;  %333 = vst.msk [vmem:[#allocation2 + $0x8] sm:$0xff] (!%p291_p9), %vm331_vm0, %v4438_v0  ;;  %vm749_vm4 = vcmask (!%p291_p9), 1045504   ;;  %s4440_s27 = smov (!%p291_p9), 64   ;;  %vm984_vm5 = vcmask (!%p291_p9), 523264   ;;  %s4442_s14 = smov (!%p291_p9), 96  }
  0x10   : > { %337 = vst.msk [vmem:[#allocation2 + $0x198] sm:$0xff] (!%p291_p9), %vm331_vm0, %v4438_v0  ;;  %338 = vst.msk [vmem:[#allocation2 + $0x1a0] sm:$0xff] (!%p291_p9), %vm331_vm0, %v4438_v0  ;;  %vm1247_vm6 = vcmask (!%p291_p9), 785408   ;;  %s4444_s29 = smov (!%p291_p9), [#allocation4]  }
  0x11   : > { %343 = vst.msk [vmem:[#allocation2 + $0x30] sm:$0x1] (!%p291_p9), %vm340_vm1, %v4438_v0  ;;  %344 = vst.msk [vmem:[#allocation2 + $0x48] sm:$0x1] (!%p291_p9), %vm340_vm1, %v4438_v0  ;;  %s4378_s16 = sshll.u32 (!%p291_p9), %s4444_s29, 4  ;;  %s4379_s16 = int_to_ptr.vmem [resolvable:$false] %s4378_s16 }
  0x12   : > { %345 = vst.msk [vmem:[#allocation2 + $0x60] sm:$0x1] (!%p291_p9), %vm340_vm1, %v4438_v0  ;;  %346 = vst.msk [vmem:[#allocation2 + $0x78] sm:$0x1] (!%p291_p9), %vm340_vm1, %v4438_v0  ;;  %s4380_s17 = scalar_lea.vmem (!%p291_p9), %s4379_s16, 8192 }
  0x13   : > { %347 = vst.msk [vmem:[#allocation2 + $0x90] sm:$0x1] (!%p291_p9), %vm340_vm1, %v4438_v0  ;;  %348 = vst.msk [vmem:[#allocation2 + $0xa8] sm:$0x1] (!%p291_p9), %vm340_vm1, %v4438_v0 }
  0x14   : > { %349 = vst.msk [vmem:[#allocation2 + $0xc0] sm:$0x1] (!%p291_p9), %vm340_vm1, %v4438_v0  ;;  %350 = vst.msk [vmem:[#allocation2 + $0xd8] sm:$0x1] (!%p291_p9), %vm340_vm1, %v4438_v0 }
  0x15   : > { %351 = vst.msk [vmem:[#allocation2 + $0xf0] sm:$0x1] %vm340_vm1, %v4438_v0  ;;  %352 = vst.msk [vmem:[#allocation2 + $0x108] sm:$0x1] %vm340_vm1, %v4438_v0  ;;  %s327_s21 = scalar_select %p326_p10, %s4518_s13, 1 }
  0x16   : > { %353 = vst.msk [vmem:[#allocation2 + $0x120] sm:$0x1] %vm340_vm1, %v4438_v0  ;;  %354 = vst.msk [vmem:[#allocation2 + $0x138] sm:$0x1] %vm340_vm1, %v4438_v0 }
  0x17   : > { %355 = vst.msk [vmem:[#allocation2 + $0x150] sm:$0x1] %vm340_vm1, %v4438_v0  ;;  %356 = vst.msk [vmem:[#allocation2 + $0x168] sm:$0x1] %vm340_vm1, %v4438_v0  ;;  %s3884_s22 = sshll.u32 %s327_s21, 8  ;;  %s323_s21 = sand.u32 1, %s4428_s10  }
  0x18   : > { %357 = vst.msk [vmem:[#allocation2 + $0x180] sm:$0x1] %vm340_vm1, %v4438_v0  ;;  %361 = vst.msk [vmem:[#allocation2 + $0x41] sm:$0x1] %vm340_vm1, %v4438_v0  ;;  %s4720_s25 = scalar_lea.vmem %s6995_s0, %s3884_s22  ;;  %s3810_s22 = sshll.u32 %s323_s21, 8 }
  0x19   : > { %362 = vst.msk [vmem:[#allocation2 + $0x59] sm:$0x1] %vm340_vm1, %v4438_v0  ;;  %363 = vst.msk [vmem:[#allocation2 + $0x71] sm:$0x1] %vm340_vm1, %v4438_v0  ;;  %v377_v1 = vld [vmem:[%s4720_s25] sm:$0xff]  ;;  %v378_v2 = vld [vmem:[%s4720_s25 + $0x8] sm:$0xff] }
  0x1a   : > { %364 = vst.msk [vmem:[#allocation2 + $0x89] sm:$0x1] %vm340_vm1, %v4438_v0  ;;  %365 = vst.msk [vmem:[#allocation2 + $0xa1] sm:$0x1] %vm340_vm1, %v4438_v0  ;;  %v379_v3 = vld [vmem:[%s4720_s25 + $0x10] sm:$0xff]  ;;  %v380_v4 = vld [vmem:[%s4720_s25 + $0x18] sm:$0xff] }
  0x1b   : > { %366 = vst.msk [vmem:[#allocation2 + $0xb9] sm:$0x1] %vm340_vm1, %v4438_v0  ;;  %367 = vst.msk [vmem:[#allocation2 + $0xd1] sm:$0x1] %vm340_vm1, %v4438_v0  ;;  %v381_v5 = vld [vmem:[%s4720_s25 + $0x20] sm:$0xff]  ;;  %v382_v6 = vld [vmem:[%s4720_s25 + $0x28] sm:$0xff] }
  0x1c   : > { %368 = vst.msk [vmem:[#allocation2 + $0xe9] sm:$0x1] %vm340_vm1, %v4438_v0  ;;  %369 = vst.msk [vmem:[#allocation2 + $0x101] sm:$0x1] %vm340_vm1, %v4438_v0  ;;  %v383_v7 = vld [vmem:[%s4720_s25 + $0x30] sm:$0xff]  ;;  %v384_v8 = vld [vmem:[%s4720_s25 + $0x38] sm:$0xff] }
  0x1d   : > { %370 = vst.msk [vmem:[#allocation2 + $0x119] sm:$0x1] %vm340_vm1, %v4438_v0  ;;  %371 = vst.msk [vmem:[#allocation2 + $0x131] sm:$0x1] %vm340_vm1, %v4438_v0  ;;  %v385_v9 = vld [vmem:[%s4720_s25 + $0x40] sm:$0xff]  ;;  %v386_v10 = vld [vmem:[%s4720_s25 + $0x48] sm:$0xff] }
  0x1e   : > { %372 = vst.msk [vmem:[#allocation2 + $0x149] sm:$0x1] %vm340_vm1, %v4438_v0  ;;  %373 = vst.msk [vmem:[#allocation2 + $0x161] sm:$0x1] %vm340_vm1, %v4438_v0  ;;  %v387_v11 = vld [vmem:[%s4720_s25 + $0x50] sm:$0xff]  ;;  %v388_v12 = vld [vmem:[%s4720_s25 + $0x58] sm:$0xff] }
  0x1f   : > { %374 = vst.msk [vmem:[#allocation2 + $0x179] sm:$0x1] %vm340_vm1, %v4438_v0  ;;  %375 = vst.msk [vmem:[#allocation2 + $0x191] sm:$0x1] %vm340_vm1, %v4438_v0  ;;  %v389_v13 = vld [vmem:[%s4720_s25 + $0x60] sm:$0xff]  ;;  %v390_v14 = vld [vmem:[%s4720_s25 + $0x68] sm:$0xff] }
  0x20   : > { %1965 = vst.msk [vmem:[#allocation3] sm:$0xff] %vm331_vm0, %v4438_v0  ;;  %1966 = vst.msk [vmem:[#allocation3 + $0x8] sm:$0xff] %vm331_vm0, %v4438_v0  ;;  %v391_v15 = vld [vmem:[%s4720_s25 + $0x70] sm:$0xff]  ;;  %v392_v16 = vld [vmem:[%s4720_s25 + $0x78] sm:$0xff] }
  0x21   : > { %1969 = vst.msk [vmem:[#allocation3 + $0x198] sm:$0xff] %vm331_vm0, %v4438_v0  ;;  %1970 = vst.msk [vmem:[#allocation3 + $0x1a0] sm:$0xff] %vm331_vm0, %v4438_v0  ;;  %v393_v17 = vld [vmem:[%s4720_s25 + $0x80] sm:$0xff]  ;;  %v394_v18 = vld [vmem:[%s4720_s25 + $0x88] sm:$0xff] }
  0x22   : > { %1973 = vst.msk [vmem:[#allocation3 + $0x18] sm:$0x1] %vm340_vm1, %v4438_v0  ;;  %1974 = vst.msk [vmem:[#allocation3 + $0x30] sm:$0x1] %vm340_vm1, %v4438_v0  ;;  %v395_v19 = vld [vmem:[%s4720_s25 + $0x90] sm:$0xff]  ;;  %v396_v20 = vld [vmem:[%s4720_s25 + $0x98] sm:$0xff] }
  0x23   : > { %1975 = vst.msk [vmem:[#allocation3 + $0x48] sm:$0x1] %vm340_vm1, %v4438_v0  ;;  %1976 = vst.msk [vmem:[#allocation3 + $0x60] sm:$0x1] %vm340_vm1, %v4438_v0  ;;  %v397_v56 = vld [vmem:[%s4720_s25 + $0xa0] sm:$0xff]  ;;  %v398_v57 = vld [vmem:[%s4720_s25 + $0xa8] sm:$0xff] }
  0x24   : > { %1977 = vst.msk [vmem:[#allocation3 + $0x78] sm:$0x1] %vm340_vm1, %v4438_v0  ;;  %1978 = vst.msk [vmem:[#allocation3 + $0x90] sm:$0x1] %vm340_vm1, %v4438_v0  ;;  %v399_v58 = vld [vmem:[%s4720_s25 + $0xb0] sm:$0xff]  ;;  %v400_v59 = vld [vmem:[%s4720_s25 + $0xb8] sm:$0xff] }
  0x25   : > { %1979 = vst.msk [vmem:[#allocation3 + $0xa8] sm:$0x1] %vm340_vm1, %v4438_v0  ;;  %1980 = vst.msk [vmem:[#allocation3 + $0xc0] sm:$0x1] %vm340_vm1, %v4438_v0  ;;  %v401_v60 = vld [vmem:[%s4720_s25 + $0xc0] sm:$0xff]  ;;  %v402_v61 = vld [vmem:[%s4720_s25 + $0xc8] sm:$0xff] }
  0x26   : > { %1981 = vst.msk [vmem:[#allocation3 + $0xd8] sm:$0x1] %vm340_vm1, %v4438_v0  ;;  %1982 = vst.msk [vmem:[#allocation3 + $0xf0] sm:$0x1] %vm340_vm1, %v4438_v0  ;;  %v403_v62 = vld [vmem:[%s4720_s25 + $0xd0] sm:$0xff]  ;;  %v404_v63 = vld [vmem:[%s4720_s25 + $0xd8] sm:$0xff] }
  0x27   : > { %1983 = vst.msk [vmem:[#allocation3 + $0x108] sm:$0x1] %vm340_vm1, %v4438_v0  ;;  %1984 = vst.msk [vmem:[#allocation3 + $0x120] sm:$0x1] %vm340_vm1, %v4438_v0 }
  0x28   : > { %1985 = vst.msk [vmem:[#allocation3 + $0x138] sm:$0x1] %vm340_vm1, %v4438_v0  ;;  %1986 = vst.msk [vmem:[#allocation3 + $0x150] sm:$0x1] %vm340_vm1, %v4438_v0 }
  0x29   : > { %1987 = vst.msk [vmem:[#allocation3 + $0x168] sm:$0x1] %vm340_vm1, %v4438_v0  ;;  %1988 = vst.msk [vmem:[#allocation3 + $0x180] sm:$0x1] %vm340_vm1, %v4438_v0 }
  0x2a   : > { %1991 = vst.msk [vmem:[#allocation3 + $0x29] sm:$0x1] %vm340_vm1, %v4438_v0  ;;  %1992 = vst.msk [vmem:[#allocation3 + $0x41] sm:$0x1] %vm340_vm1, %v4438_v0 }
  0x2b   : > { %1993 = vst.msk [vmem:[#allocation3 + $0x59] sm:$0x1] %vm340_vm1, %v4438_v0  ;;  %1994 = vst.msk [vmem:[#allocation3 + $0x71] sm:$0x1] %vm340_vm1, %v4438_v0 }
  0x2c   : > { %1995 = vst.msk [vmem:[#allocation3 + $0x89] sm:$0x1] %vm340_vm1, %v4438_v0  ;;  %1996 = vst.msk [vmem:[#allocation3 + $0xa1] sm:$0x1] %vm340_vm1, %v4438_v0 }
  0x2d   : > { %1997 = vst.msk [vmem:[#allocation3 + $0xb9] sm:$0x1] %vm340_vm1, %v4438_v0  ;;  %1998 = vst.msk [vmem:[#allocation3 + $0xd1] sm:$0x1] %vm340_vm1, %v4438_v0 }
  0x2e   : > { %1999 = vst.msk [vmem:[#allocation3 + $0xe9] sm:$0x1] %vm340_vm1, %v4438_v0  ;;  %2000 = vst.msk [vmem:[#allocation3 + $0x101] sm:$0x1] %vm340_vm1, %v4438_v0 }
  0x2f   : > { %2001 = vst.msk [vmem:[#allocation3 + $0x119] sm:$0x1] %vm340_vm1, %v4438_v0  ;;  %2002 = vst.msk [vmem:[#allocation3 + $0x131] sm:$0x1] %vm340_vm1, %v4438_v0 }
  0x30   : > { %2003 = vst.msk [vmem:[#allocation3 + $0x149] sm:$0x1] %vm340_vm1, %v4438_v0  ;;  %2004 = vst.msk [vmem:[#allocation3 + $0x161] sm:$0x1] %vm340_vm1, %v4438_v0 }
  0x31   : > { %2005 = vst.msk [vmem:[#allocation3 + $0x179] sm:$0x1] %vm340_vm1, %v4438_v0  ;;  %2006 = vst.msk [vmem:[#allocation3 + $0x191] sm:$0x1] %vm340_vm1, %v4438_v0 }
  0x32   : > { %341 = vst.msk [vmem:[#allocation2] sm:$0x1] %vm340_vm1, %v4438_v0  ;;  %358 = vst.msk [vmem:[#allocation2 + $0x198] sm:$0x1] %vm340_vm1, %v4438_v0 }
  0x33   : > { %1972 = vst.msk [vmem:[#allocation3] sm:$0x1] %vm340_vm1, %v4438_v0  ;;  %1989 = vst.msk [vmem:[#allocation3 + $0x198] sm:$0x1] %vm340_vm1, %v4438_v0 }
  0x34   : > { %335 = vst.msk [vmem:[#allocation2 + $0x10] sm:$0x3] %vm334_vm2, %v4438_v0  ;;  %339 = vst.msk [vmem:[#allocation2 + $0x1a8] sm:$0x3] %vm334_vm2, %v4438_v0 }
  0x35   : > { %1967 = vst.msk [vmem:[#allocation3 + $0x10] sm:$0x3] %vm334_vm2, %v4438_v0  ;;  %1971 = vst.msk [vmem:[#allocation3 + $0x1a8] sm:$0x3] %vm334_vm2, %v4438_v0 }
  0x36   : > { %359 = vst.msk [vmem:[#allocation2 + $0x11] sm:$0x1] %vm340_vm1, %v4438_v0  ;;  %376 = vst.msk [vmem:[#allocation2 + $0x1a9] sm:$0x1] %vm340_vm1, %v4438_v0 }
  0x37   : > { %1990 = vst.msk [vmem:[#allocation3 + $0x11] sm:$0x1] %vm340_vm1, %v4438_v0  ;;  %2007 = vst.msk [vmem:[#allocation3 + $0x1a9] sm:$0x1] %vm340_vm1, %v4438_v0 }
  0x38   : > { %410 = vst.msk [vmem:[#allocation2 + $0x19] sm:$0xff] %vm331_vm0, %v377_v1  ;;  %411 = vst.msk [vmem:[#allocation2 + $0x21] sm:$0xff] %vm331_vm0, %v378_v2 }
  0x39   : > { %412 = vst.msk [vmem:[#allocation2 + $0x31] sm:$0xff] %vm331_vm0, %v379_v3  ;;  %413 = vst.msk [vmem:[#allocation2 + $0x39] sm:$0xff] %vm331_vm0, %v380_v4 }
  0x3a   : > { %414 = vst.msk [vmem:[#allocation2 + $0x49] sm:$0xff] %vm331_vm0, %v381_v5  ;;  %415 = vst.msk [vmem:[#allocation2 + $0x51] sm:$0xff] %vm331_vm0, %v382_v6 }
  0x3b   : > { %416 = vst.msk [vmem:[#allocation2 + $0x61] sm:$0xff] %vm331_vm0, %v383_v7  ;;  %417 = vst.msk [vmem:[#allocation2 + $0x69] sm:$0xff] %vm331_vm0, %v384_v8 }
  0x3c   : > { %418 = vst.msk [vmem:[#allocation2 + $0x79] sm:$0xff] %vm331_vm0, %v385_v9  ;;  %419 = vst.msk [vmem:[#allocation2 + $0x81] sm:$0xff] %vm331_vm0, %v386_v10 }
  0x3d   : > { %420 = vst.msk [vmem:[#allocation2 + $0x91] sm:$0xff] %vm331_vm0, %v387_v11  ;;  %421 = vst.msk [vmem:[#allocation2 + $0x99] sm:$0xff] %vm331_vm0, %v388_v12 }
  0x3e   : > { %422 = vst.msk [vmem:[#allocation2 + $0xa9] sm:$0xff] %vm331_vm0, %v389_v13  ;;  %423 = vst.msk [vmem:[#allocation2 + $0xb1] sm:$0xff] %vm331_vm0, %v390_v14 }
  0x3f   : > { %424 = vst.msk [vmem:[#allocation2 + $0xc1] sm:$0xff] %vm331_vm0, %v391_v15  ;;  %425 = vst.msk [vmem:[#allocation2 + $0xc9] sm:$0xff] %vm331_vm0, %v392_v16  ;;  %v4760_v21 = vld [vmem:[#allocation2 + $0x18] sm:$0xff]  ;;  %v4762_v22 = vld [vmem:[#allocation2 + $0x20] sm:$0xff] }
  0x40   : > { %426 = vst.msk [vmem:[#allocation2 + $0xd9] sm:$0xff] %vm331_vm0, %v393_v17  ;;  %427 = vst.msk [vmem:[#allocation2 + $0xe1] sm:$0xff] %vm331_vm0, %v394_v18  ;;  %v447_v23 = vld [vmem:[#allocation2 + $0x28] sm:$0x3]  ;;  %v556_v24 = vrot.slane %v4760_v21, 1  ;;  %v557_v25 = vrot.slane %v4762_v22, 1 }
  0x41   : > { %428 = vst.msk [vmem:[#allocation2 + $0xf1] sm:$0xff] %vm331_vm0, %v395_v19  ;;  %429 = vst.msk [vmem:[#allocation2 + $0xf9] sm:$0xff] %vm331_vm0, %v396_v20  ;;  %v559_v26 = vrot.slane %v447_v23, 1  ;;  %v755_v27 = vrot.slane %v4760_v21, 2  ;;  %v4769_v28 = vld [vmem:[#allocation2 + $0x30] sm:$0xff]  ;;  %v4771_v29 = vld [vmem:[#allocation2 + $0x38] sm:$0xff] }
  0x42   : > { %v756_v30 = vrot.slane %v4762_v22, 2  ;;  %v758_v31 = vrot.slane %v447_v23, 2  ;;  %v561_v32 = vrot.slane %v4769_v28, 1  ;;  %v558_v33 = vsel %vm550_vm3, %v556_v24, %v557_v25  ;;  %v450_v41 = vld [vmem:[#allocation2 + $0x40] sm:$0x3]  ;;  %v4786_v47 = vld [vmem:[#allocation2 + $0x48] sm:$0xff] }
  0x43   : > { %v560_v34 = vsel %vm550_vm3, %v557_v25, %v559_v26  ;;  %v562_v35 = vrot.slane %v4771_v29, 1  ;;  %v760_v36 = vrot.slane %v4769_v28, 2  ;;  %v761_v40 = vrot.slane %v4771_v29, 2  ;;  %v4788_v48 = vld [vmem:[#allocation2 + $0x50] sm:$0xff]  ;;  %v453_v52 = vld [vmem:[#allocation2 + $0x58] sm:$0x3] }
  0x44   : > { %v4233_v37 = vpack.i.bf16 %v560_v34, %v558_v33  ;;  %v757_v38 = vsel %vm749_vm4, %v755_v27, %v756_v30  ;;  %v759_v39 = vsel %vm749_vm4, %v756_v30, %v758_v31  ;;  %v564_v44 = vrot.slane %v450_v41, 1  ;;  %430 = vst.msk [vmem:[#allocation2 + $0x109] sm:$0xff] %vm331_vm0, %v397_v56  ;;  %431 = vst.msk [vmem:[#allocation2 + $0x111] sm:$0xff] %vm331_vm0, %v398_v57  ;;  %v4818_v4 = vld [vmem:[#allocation2 + $0x60] sm:$0xff]  ;;  %v4820_v5 = vld [vmem:[#allocation2 + $0x68] sm:$0xff] }
  0x45   : > { %v4238_v42 = vpack.i.bf16 %v759_v39, %v757_v38  ;;  %v563_v43 = vsel %vm550_vm3, %v561_v32, %v562_v35  ;;  %v762_v45 = vsel %vm749_vm4, %v760_v36, %v761_v40  ;;  %v763_v46 = vrot.slane %v450_v41, 2  ;;  %432 = vst.msk [vmem:[#allocation2 + $0x121] sm:$0xff] %vm331_vm0, %v399_v58  ;;  %433 = vst.msk [vmem:[#allocation2 + $0x129] sm:$0xff] %vm331_vm0, %v400_v59  ;;  %v456_v12 = vld [vmem:[#allocation2 + $0x70] sm:$0x3]  ;;  %v4834_v17 = vld [vmem:[#allocation2 + $0x78] sm:$0xff] }
  0x46   : > { %4234 = vrot.lane.b32.xlu0 %v4233_v37, %s4439_s26  ;;  %v565_v49 = vsel %vm550_vm3, %v562_v35, %v564_v44  ;;  %v566_v50 = vrot.slane %v4786_v47, 1  ;;  %v567_v51 = vrot.slane %v4788_v48, 1  ;;  %v765_v54 = vrot.slane %v4786_v47, 2  ;;  %434 = vst.msk [vmem:[#allocation2 + $0x139] sm:$0xff] %vm331_vm0, %v401_v60  ;;  %435 = vst.msk [vmem:[#allocation2 + $0x141] sm:$0xff] %vm331_vm0, %v402_v61  ;;  %v4836_v18 = vld [vmem:[#allocation2 + $0x80] sm:$0xff] }
  0x47   : > { %4239 = vrot.lane.b32.xlu1 %v4238_v42, %s4440_s27  ;;  %v764_v53 = vsel %vm749_vm4, %v761_v40, %v763_v46  ;;  %v766_v55 = vrot.slane %v4788_v48, 2  ;;  %v569_v1 = vrot.slane %v453_v52, 1  ;;  %436 = vst.msk [vmem:[#allocation2 + $0x151] sm:$0xff] %vm331_vm0, %v403_v62  ;;  %437 = vst.msk [vmem:[#allocation2 + $0x159] sm:$0xff] %vm331_vm0, %v404_v63  ;;  %v768_v3 = vrot.slane %v453_v52, 2  ;;  %v4850_v34 = vld [vmem:[#allocation2 + $0x90] sm:$0xff] }
  0x48   : > { %v568_v0 = vsel %vm550_vm3, %v566_v50, %v567_v51  ;;  %v571_v7 = vrot.slane %v4818_v4, 1  ;;  %v572_v8 = vrot.slane %v4820_v5, 1  ;;  %v770_v10 = vrot.slane %v4818_v4, 2  ;;  %v459_v27 = vld [vmem:[#allocation2 + $0x88] sm:$0x3]  ;;  %v4852_v35 = vld [vmem:[#allocation2 + $0x98] sm:$0xff] }
  0x49   : > { %v767_v2 = vsel %vm749_vm4, %v765_v54, %v766_v55  ;;  %v570_v6 = vsel %vm550_vm3, %v567_v51, %v569_v1  ;;  %v769_v9 = vsel %vm749_vm4, %v766_v55, %v768_v3  ;;  %v771_v11 = vrot.slane %v4820_v5, 2  ;;  %v405_v39 = vld [vmem:[%s4720_s25 + $0xe0] sm:$0xff]  ;;  %v406_v40 = vld [vmem:[%s4720_s25 + $0xe8] sm:$0xff]  ;;  %v4872_v52 = vld [vmem:[#allocation2 + $0xb0] sm:$0xff] }
  0x4a   : > { %649 = vrot.lane.b32.xlu0 %v563_v43, %s4439_s26  ;;  %v573_v13 = vsel %vm550_vm3, %v571_v7, %v572_v8  ;;  %v574_v14 = vrot.slane %v456_v12, 1  ;;  %v773_v16 = vrot.slane %v456_v12, 2  ;;  %v576_v20 = vrot.slane %v4834_v17, 1  ;;  %v462_v44 = vld [vmem:[#allocation2 + $0xa0] sm:$0x3]  ;;  %438 = vst.msk [vmem:[#allocation2 + $0x169] sm:$0xff] %vm331_vm0, %v405_v39 }
  0x4b   : > { %848 = vrot.lane.b32.xlu1 %v762_v45, %s4440_s27  ;;  %v772_v15 = vsel %vm749_vm4, %v770_v10, %v771_v11  ;;  %v577_v23 = vrot.slane %v4836_v18, 1  ;;  %v775_v25 = vrot.slane %v4834_v17, 2  ;;  %v776_v26 = vrot.slane %v4836_v18, 2  ;;  %439 = vst.msk [vmem:[#allocation2 + $0x171] sm:$0xff] %vm331_vm0, %v406_v40  ;;  %v4870_v51 = vld [vmem:[#allocation2 + $0xa8] sm:$0xff]  ;;  %v407_v62 = vld [vmem:[%s4720_s25 + $0xf0] sm:$0xff] }
  0x4c   : > { %v575_v19 = vsel %vm550_vm3, %v572_v8, %v574_v14  ;;  %v774_v24 = vsel %vm749_vm4, %v771_v11, %v773_v16  ;;  %v579_v31 = vrot.slane %v459_v27, 1  ;;  %v778_v33 = vrot.slane %v459_v27, 2  ;;  %v465_v59 = vld [vmem:[#allocation2 + $0xb8] sm:$0x3]  ;;  %v4890_v3 = vld [vmem:[#allocation2 + $0xc8] sm:$0xff]  ;;  %440 = vst.msk [vmem:[#allocation2 + $0x181] sm:$0xff] %vm331_vm0, %v407_v62 }
  0x4d   : > { %v578_v30 = vsel %vm550_vm3, %v576_v20, %v577_v23  ;;  %v777_v32 = vsel %vm749_vm4, %v775_v25, %v776_v26  ;;  %v581_v37 = vrot.slane %v4850_v34, 1  ;;  %v582_v38 = vrot.slane %v4852_v35, 1  ;;  %v408_v63 = vld [vmem:[%s4720_s25 + $0xf8] sm:$0xff]  ;;  %v1313_v10 = vld [vmem:[%s6996_s1 + $0x8] sm:$0xff]  ;;  %v468_v14 = vld [vmem:[#allocation2 + $0xd0] sm:$0x3] }
  0x4e   : > { %651 = vrot.lane.b32.xlu0 %v565_v49, %s4439_s26  ;;  %v580_v36 = vsel %vm550_vm3, %v577_v23, %v579_v31  ;;  %v779_v41 = vsel %vm749_vm4, %v776_v26, %v778_v33  ;;  %v780_v42 = vrot.slane %v4850_v34, 2  ;;  %v781_v43 = vrot.slane %v4852_v35, 2  ;;  %441 = vst.msk [vmem:[#allocation2 + $0x189] sm:$0xff] %vm331_vm0, %v408_v63  ;;  %v1314_v25 = vld [vmem:[%s6996_s1 + $0x10] sm:$0xff]  ;;  %v1315_v26 = vld [vmem:[%s6996_s1 + $0x18] sm:$0xff]  ;;  %s6954_s25 = scalar_lea.sflag [#allocation5], %s323_s21 }
  0x4f   : > { %850 = vrot.lane.b32.xlu1 %v764_v53, %s4440_s27  ;;  %v583_v45 = vsel %vm550_vm3, %v581_v37, %v582_v38  ;;  %v584_v46 = vrot.slane %v462_v44, 1  ;;  %v783_v50 = vrot.slane %v462_v44, 2  ;;  %v586_v54 = vrot.slane %v4870_v51, 1  ;;  %v4924_v31 = vld [vmem:[#allocation2 + $0xd8] sm:$0xff]  ;;  %v444_v33 = vld [vmem:[#allocation2 + $0x10] sm:$0x3] }
  0x50   : > { %v782_v49 = vsel %vm749_vm4, %v780_v42, %v781_v43  ;;  %v587_v55 = vrot.slane %v4872_v52, 1  ;;  %v785_v57 = vrot.slane %v4870_v51, 2  ;;  %v786_v58 = vrot.slane %v4872_v52, 2  ;;  %v1317_v44 = vld [vmem:[%s6996_s1 + $0x28] sm:$0xff] }
  0x51   : > { %v585_v53 = vsel %vm550_vm3, %v582_v38, %v584_v46  ;;  %v784_v56 = vsel %vm749_vm4, %v781_v43, %v783_v50  ;;  %v589_v61 = vrot.slane %v465_v59, 1  ;;  %v788_v1 = vrot.slane %v465_v59, 2  ;;  %v1316_v43 = vld [vmem:[%s6996_s1 + $0x20] sm:$0xff] }
  0x52   : > { %653 = vrot.lane.b32.xlu0 %v568_v0, %s4439_s26  ;;  %v588_v60 = vsel %vm550_vm3, %v586_v54, %v587_v55  ;;  %v787_v0 = vsel %vm749_vm4, %v785_v57, %v786_v58  ;;  %v592_v8 = vrot.slane %v4890_v3, 1  ;;  %v594_v23 = vrot.slane %v468_v14, 1 }
  0x53   : > { %852 = vrot.lane.b32.xlu1 %v767_v2, %s4440_s27  ;;  %v4888_v2 = vld [vmem:[#allocation2 + $0xc0] sm:$0xff]  ;;  %v789_v11 = vsel %vm749_vm4, %v786_v58, %v788_v1  ;;  %v596_v40 = vrot.slane %v4924_v31, 1  ;;  %v554_v42 = vrot.slane %v444_v33, 1  ;;  %v795_v46 = vrot.slane %v4924_v31, 2 }
  0x54   : > { %v591_v7 = vrot.slane %v4888_v2, 1  ;;  %v790_v12 = vrot.slane %v4888_v2, 2  ;;  %v595_v39 = vsel %vm550_vm3, %v592_v8, %v594_v23  ;;  %v4077_v50 = vpack.c.bf16 %v1317_v44, %v1316_v43  ;;  %v1325_v43 = vld [vmem:[%s6996_s1 + $0x68] sm:$0xff] }
  0x55   : > { %v753_v59 = vrot.slane %v444_v33, 2 }
  0x56   : > { %655 = vrot.lane.b32.xlu0 %v570_v6, %s4439_s26  ;;  %v590_v6 = vsel %vm550_vm3, %v587_v55, %v589_v61  ;;  %v593_v20 = vsel %vm550_vm3, %v591_v7, %v592_v8  ;;  %v1319_v61 = vld [vmem:[%s6996_s1 + $0x38] sm:$0xff]  ;;  %v1320_v8 = vld [vmem:[%s6996_s1 + $0x40] sm:$0xff] }
  0x57   : > { %854 = vrot.lane.b32.xlu1 %v769_v9, %s4440_s27  ;;  %v1312_v9 = vld [vmem:[%s6996_s1] sm:$0xff] }
  0x58   : > { %v4071_v16 = vpack.c.bf16 %v1313_v10, %v1312_v9  ;;  %v1321_v9 = vld [vmem:[%s6996_s1 + $0x48] sm:$0xff] }
  0x5a   : > { %657 = vrot.lane.b32.xlu0 %v573_v13, %s4439_s26  ;;  %v791_v13 = vrot.slane %v4890_v3, 2 }
  0x5b   : > { %856 = vrot.lane.b32.xlu1 %v772_v15, %s4440_s27  ;;  %v4441_v15 = vmov 0.0|0.0  }
  0x5c   : > { %4070 = vmatprep.subr.bf16.mxu0 %v4441_v15  ;;  %v792_v27 = vsel %vm749_vm4, %v790_v12, %v791_v13  ;;  %v4972_v12 = vld [vmem:[#allocation2 + $0xf0] sm:$0xff] }
  0x5d   : > { %4072 = vmatpush1.bf16.msra.mxu0 %v4071_v16  ;;  %v474_v16 = vld [vmem:[#allocation2 + $0x100] sm:$0x3]  ;;  %v601_v23 = vrot.slane %v4972_v12, 1 }
  0x5e   : > { %659 = vrot.lane.b32.xlu0 %v575_v19, %s4439_s26  ;;  %v4910_v19 = vld [vmem:[#allocation2] sm:$0xff]  ;;  %4073 = vmatprep.subr.bf16.mxu0 %v4441_v15  ;;  %v604_v33 = vrot.slane %v474_v16, 1 }
  0x5f   : > { %858 = vrot.lane.b32.xlu1 %v774_v24, %s4440_s27  ;;  %v4914_v24 = vld [vmem:[#allocation2 + $0x8] sm:$0xff]  ;;  %v551_v37 = vrot.slane %v4910_v19, 1  ;;  %v750_v54 = vrot.slane %v4910_v19, 2 }
  0x60   : > { %v552_v38 = vrot.slane %v4914_v24, 1  ;;  %v751_v55 = vrot.slane %v4914_v24, 2 }
  0x62   : > { %661 = vrot.lane.b32.xlu0 %v578_v30, %s4439_s26  ;;  %v793_v30 = vrot.slane %v468_v14, 2  ;;  %v553_v57 = vsel %vm550_vm3, %v551_v37, %v552_v38  ;;  %v555_v58 = vsel %vm550_vm3, %v552_v38, %v554_v42  ;;  %v754_v7 = vsel %vm749_vm4, %v751_v55, %v753_v59  ;;  %v4988_v37 = vld [vmem:[#allocation2 + $0x108] sm:$0xff]  ;;  %v4990_v38 = vld [vmem:[#allocation2 + $0x110] sm:$0xff]  ;;  %v1324_v42 = vld [vmem:[%s6996_s1 + $0x60] sm:$0xff] }
  0x63   : > { %860 = vrot.lane.b32.xlu1 %v777_v32, %s4440_s27  ;;  %v4926_v32 = vld [vmem:[#allocation2 + $0xe0] sm:$0xff]  ;;  %v4243_v1 = vpack.i.bf16 %v555_v58, %v553_v57  ;;  %v4083_v14 = vpack.c.bf16 %v1321_v9, %v1320_v8  ;;  %v805_v57 = vrot.slane %v4988_v37, 2  ;;  %v806_v58 = vrot.slane %v4990_v38, 2  ;;  %v477_v59 = vld [vmem:[#allocation2 + $0x118] sm:$0x3]  ;;  %v5033_v8 = vld [vmem:[#allocation2 + $0x128] sm:$0xff] }
  0x66   : > { %663 = vrot.lane.b32.xlu0 %v580_v36, %s4439_s26  ;;  %v4074_v36 = vpack.c.bf16 %v1315_v26, %v1314_v25  ;;  %v1322_v26 = vld [vmem:[%s6996_s1 + $0x50] sm:$0xff] }
  0x67   : > { %862 = vrot.lane.b32.xlu1 %v779_v41, %s4440_s27  ;;  %v597_v41 = vrot.slane %v4926_v32, 1 }
  0x68   : > { %4075 = vmatpush1.bf16.msra.mxu0 %v4074_v36 }
  0x69   : > { %4076 = vmatprep.subr.bf16.mxu0 %v4441_v15 }
  0x6a   : > { %665 = vrot.lane.b32.xlu0 %v583_v45, %s4439_s26  ;;  %v794_v45 = vsel %vm749_vm4, %v791_v13, %v793_v30  ;;  %v4974_v13 = vld [vmem:[#allocation2 + $0xf8] sm:$0xff] }
  0x6b   : > { %864 = vrot.lane.b32.xlu1 %v782_v49, %s4440_s27  ;;  %v796_v49 = vrot.slane %v4926_v32, 2  ;;  %v602_v25 = vrot.slane %v4974_v13, 1 }
  0x6c   : > { %4078 = vmatpush1.bf16.msra.mxu0 %v4077_v50 }
  0x6d   : > { %4079 = vmatprep.subr.bf16.mxu0 %v4441_v15  ;;  %v797_v62 = vsel %vm749_vm4, %v795_v46, %v796_v49  ;;  %v605_v44 = vsel %vm550_vm3, %v602_v25, %v604_v33  ;;  %v607_v46 = vrot.slane %v4990_v38, 1  ;;  %v5050_v33 = vld [vmem:[#allocation2 + $0x140] sm:$0xff] }
  0x6e   : > { %667 = vrot.lane.b32.xlu0 %v585_v53, %s4439_s26  ;;  %v471_v53 = vld [vmem:[#allocation2 + $0xe8] sm:$0x3] }
  0x6f   : > { %866 = vrot.lane.b32.xlu1 %v784_v56, %s4440_s27  ;;  %v598_v56 = vsel %vm550_vm3, %v596_v40, %v597_v41  ;;  %v599_v63 = vrot.slane %v471_v53, 1  ;;  %v800_v40 = vrot.slane %v4972_v12, 2 }
  0x71   : > { %v600_v10 = vsel %vm550_vm3, %v597_v41, %v599_v63  ;;  %v801_v41 = vrot.slane %v4974_v13, 2  ;;  %v1328_v63 = vld [vmem:[%s6996_s1 + $0x80] sm:$0xff] }
  0x72   : > { %669 = vrot.lane.b32.xlu0 %v588_v60, %s4439_s26  ;;  %v1318_v60 = vld [vmem:[%s6996_s1 + $0x30] sm:$0xff] }
  0x73   : > { %868 = vrot.lane.b32.xlu1 %v787_v0, %s4440_s27  ;;  %v4080_v0 = vpack.c.bf16 %v1319_v61, %v1318_v60  ;;  %v802_v50 = vsel %vm749_vm4, %v800_v40, %v801_v41  ;;  %v811_v40 = vrot.slane %v5033_v8, 2 }
  0x75   : > { %4081 = vmatpush1.bf16.msra.mxu0 %v4080_v0  ;;  %v1329_v0 = vld [vmem:[%s6996_s1 + $0x88] sm:$0xff] }
  0x76   : > { %671 = vrot.lane.b32.xlu0 %v590_v6, %s4439_s26  ;;  %v752_v6 = vsel %vm749_vm4, %v750_v54, %v751_v55  ;;  %4082 = vmatprep.subr.bf16.mxu0 %v4441_v15  ;;  %v1326_v54 = vld [vmem:[%s6996_s1 + $0x70] sm:$0xff]  ;;  %v1327_v55 = vld [vmem:[%s6996_s1 + $0x78] sm:$0xff]  ;;  %v4095_v9 = vpack.c.bf16 %v1329_v0, %v1328_v63  ;;  %v1337_v63 = vld [vmem:[%s6996_s1 + $0xc8] sm:$0xff] }
  0x77   : > { %870 = vrot.lane.b32.xlu1 %v789_v11, %s4440_s27  ;;  %v798_v11 = vrot.slane %v471_v53, 2  ;;  %v803_v53 = vrot.slane %v474_v16, 2  ;;  %v4092_v60 = vpack.c.bf16 %v1327_v55, %v1326_v54  ;;  %v612_v16 = vrot.slane %v5033_v8, 1  ;;  %v1335_v54 = vld [vmem:[%s6996_s1 + $0xb8] sm:$0xff] }
  0x79   : > { %4084 = vmatpush1.bf16.msra.mxu0 %v4083_v14  ;;  %v799_v30 = vsel %vm749_vm4, %v796_v49, %v798_v11  ;;  %v4089_v49 = vpack.c.bf16 %v1325_v43, %v1324_v42  ;;  %v804_v61 = vsel %vm749_vm4, %v801_v41, %v803_v53  ;;  %v1332_v41 = vld [vmem:[%s6996_s1 + $0xa0] sm:$0xff]  ;;  %v1333_v42 = vld [vmem:[%s6996_s1 + $0xa8] sm:$0xff]  ;;  %v1334_v53 = vld [vmem:[%s6996_s1 + $0xb0] sm:$0xff] }
  0x7a   : > { %673 = vrot.lane.b32.xlu0 %v593_v20, %s4439_s26  ;;  %v4248_v20 = vpack.i.bf16 %v754_v7, %v752_v6  ;;  %4085 = vmatprep.subr.bf16.mxu0 %v4441_v15  ;;  %v808_v6 = vrot.slane %v477_v59, 2  ;;  %v5031_v7 = vld [vmem:[#allocation2 + $0x120] sm:$0xff] }
  0x7b   : > { %872 = vrot.lane.b32.xlu1 %v792_v27, %s4440_s27  ;;  %v1323_v27 = vld [vmem:[%s6996_s1 + $0x58] sm:$0xff]  ;;  %v611_v14 = vrot.slane %v5031_v7, 1 }
  0x7c   : > { %v4086_v36 = vpack.c.bf16 %v1323_v27, %v1322_v26 }
  0x7e   : > { %675 = vrot.lane.b32.xlu0 %v595_v39, %s4439_s26  ;;  %4087 = vmatpush1.bf16.msra.mxu0 %v4086_v36  ;;  %v603_v39 = vsel %vm550_vm3, %v601_v23, %v602_v25  ;;  %v1331_v23 = vld [vmem:[%s6996_s1 + $0x98] sm:$0xff]  ;;  %v809_v25 = vsel %vm749_vm4, %v806_v58, %v808_v6  ;;  %v613_v36 = vsel %vm550_vm3, %v611_v14, %v612_v16  ;;  %v5091_v6 = vld [vmem:[#allocation2 + $0x150] sm:$0xff] }
  0x7f   : > { %874 = vrot.lane.b32.xlu1 %v794_v45, %s4440_s27  ;;  %4088 = vmatprep.subr.bf16.mxu0 %v4441_v15  ;;  %v606_v45 = vrot.slane %v4988_v37, 1  ;;  %v621_v14 = vrot.slane %v5091_v6, 1 }
  0x82   : > { %677 = vrot.lane.b32.xlu0 %v598_v56, %s4439_s26  ;;  %4090 = vmatpush1.bf16.msra.mxu0 %v4089_v49  ;;  %v608_v56 = vsel %vm550_vm3, %v606_v45, %v607_v46  ;;  %v617_v45 = vrot.slane %v5050_v33, 1 }
  0x83   : > { %876 = vrot.lane.b32.xlu1 %v797_v62, %s4440_s27  ;;  %4091 = vmatprep.subr.bf16.mxu0 %v4441_v15  ;;  %v609_v62 = vrot.slane %v477_v59, 1  ;;  %v4104_v59 = vpack.c.bf16 %v1335_v54, %v1334_v53 }
  0x85   : > { %v610_v11 = vsel %vm550_vm3, %v607_v46, %v609_v62  ;;  %v4101_v46 = vpack.c.bf16 %v1333_v42, %v1332_v41  ;;  %v1336_v62 = vld [vmem:[%s6996_s1 + $0xc0] sm:$0xff]  ;;  %v1341_v42 = vld [vmem:[%s6996_s1 + $0xe8] sm:$0xff] }
  0x86   : > { %4244 = vrot.lane.b32.xlu0 %v4243_v1, %s4439_s26  ;;  %4093 = vmatpush1.bf16.msra.mxu0 %v4092_v60  ;;  %v807_v1 = vsel %vm749_vm4, %v805_v57, %v806_v58  ;;  %v816_v57 = vrot.slane %v5050_v33, 2  ;;  %v483_v58 = vld [vmem:[#allocation2 + $0x148] sm:$0x3] }
  0x87   : > { %679 = vrot.lane.b32.xlu1 %v600_v10, %s4439_s26  ;;  %4094 = vmatprep.subr.bf16.mxu0 %v4441_v15  ;;  %v480_v10 = vld [vmem:[#allocation2 + $0x130] sm:$0x3] }
  0x88   : > { %v614_v26 = vrot.slane %v480_v10, 1 }
  0x8a   : > { %4249 = vrot.lane.b32.xlu0 %v4248_v20, %s4440_s27  ;;  %4096 = vmatpush1.bf16.msra.mxu0 %v4095_v9  ;;  %v1330_v20 = vld [vmem:[%s6996_s1 + $0x90] sm:$0xff]  ;;  %v615_v43 = vsel %vm550_vm3, %v612_v16, %v614_v26  ;;  %v5093_v9 = vld [vmem:[#allocation2 + $0x158] sm:$0xff] }
  0x8b   : > { %878 = vrot.lane.b32.xlu1 %v799_v30, %s4440_s27  ;;  %4097 = vmatprep.subr.bf16.mxu0 %v4441_v15  ;;  %v4098_v27 = vpack.c.bf16 %v1331_v23, %v1330_v20  ;;  %v5048_v30 = vld [vmem:[#allocation2 + $0x138] sm:$0xff]  ;;  %v622_v16 = vrot.slane %v5093_v9, 1  ;;  %v1338_v20 = vld [vmem:[%s6996_s1 + $0xd0] sm:$0xff] }
  0x8c   : > { %v1339_v23 = vld [vmem:[%s6996_s1 + $0xd8] sm:$0xff] }
  0x8d   : > { %v4110_v26 = vpack.c.bf16 %v1339_v23, %v1338_v20 }
  0x8e   : > { %681 = vrot.lane.b32.xlu0 %v603_v39, %s4439_s26  ;;  %4099 = vmatpush1.bf16.msra.mxu0 %v4098_v27  ;;  %v810_v39 = vrot.slane %v5031_v7, 2  ;;  %v623_v27 = vsel %vm550_vm3, %v621_v14, %v622_v16 }
  0x8f   : > { %683 = vrot.lane.b32.xlu1 %v605_v44, %s4439_s26  ;;  %4100 = vmatprep.subr.bf16.mxu0 %v4441_v15  ;;  %v616_v44 = vrot.slane %v5048_v30, 1 }
  0x90   : > { %v812_v49 = vsel %vm749_vm4, %v810_v39, %v811_v40  ;;  %v1345_v39 = vld [vmem:[%s6996_s1 + $0x108] sm:$0xff] }
  0x91   : > { %v618_v55 = vsel %vm550_vm3, %v616_v44, %v617_v45  ;;  %v1346_v44 = vld [vmem:[%s6996_s1 + $0x110] sm:$0xff] }
  0x92   : > { %880 = vrot.lane.b32.xlu0 %v802_v50, %s4440_s27  ;;  %4102 = vmatpush1.bf16.msra.mxu0 %v4101_v46  ;;  %v813_v50 = vrot.slane %v480_v10, 2  ;;  %v4107_v10 = vpack.c.bf16 %v1337_v63, %v1336_v62 }
  0x93   : > { %685 = vrot.lane.b32.xlu1 %v608_v56, %s4439_s26  ;;  %4103 = vmatprep.subr.bf16.mxu0 %v4441_v15  ;;  %v815_v56 = vrot.slane %v5048_v30, 2 }
  0x94   : > { %v814_v60 = vsel %vm749_vm4, %v811_v40, %v813_v50  ;;  %v1340_v40 = vld [vmem:[%s6996_s1 + $0xe0] sm:$0xff]  ;;  %v1343_v50 = vld [vmem:[%s6996_s1 + $0xf8] sm:$0xff] }
  0x95   : > { %v817_v0 = vsel %vm749_vm4, %v815_v56, %v816_v57 }
  0x96   : > { %882 = vrot.lane.b32.xlu0 %v804_v61, %s4440_s27  ;;  %4105 = vmatpush1.bf16.msra.mxu0 %v4104_v59  ;;  %v619_v61 = vrot.slane %v483_v58, 1 }
  0x97   : > { %884 = vrot.lane.b32.xlu1 %v807_v1, %s4440_s27  ;;  %4106 = vmatprep.subr.bf16.mxu0 %v4441_v15  ;;  %v818_v1 = vrot.slane %v483_v58, 2 }
  0x9a   : > { %687 = vrot.lane.b32.xlu0 %v610_v11, %s4439_s26  ;;  %4108 = vmatpush1.bf16.msra.mxu0 %v4107_v10  ;;  %v620_v11 = vsel %vm550_vm3, %v617_v45, %v619_v61  ;;  %v1347_v45 = vld [vmem:[%s6996_s1 + $0x118] sm:$0xff] }
  0x9b   : > { %886 = vrot.lane.b32.xlu1 %v809_v25, %s4440_s27  ;;  %4109 = vmatprep.subr.bf16.mxu0 %v4441_v15  ;;  %v819_v25 = vsel %vm749_vm4, %v816_v57, %v818_v1  ;;  %v4122_v46 = vpack.c.bf16 %v1347_v45, %v1346_v44 }
  0x9e   : > { %689 = vrot.lane.b32.xlu0 %v613_v36, %s4439_s26  ;;  %4111 = vmatpush1.bf16.msra.mxu0 %v4110_v26  ;;  %v1344_v36 = vld [vmem:[%s6996_s1 + $0x100] sm:$0xff] }
  0x9f   : > { %691 = vrot.lane.b32.xlu1 %v615_v43, %s4439_s26  ;;  %4112 = vmatprep.subr.bf16.mxu0 %v4441_v15  ;;  %v4118_v41 = vpack.c.bf16 %v1345_v39, %v1344_v36  ;;  %v4113_v43 = vpack.c.bf16 %v1341_v42, %v1340_v40 }
  0xa1   : > { %4119 = vmatprep.subr.bf16.mxu1 %v4118_v41 }
  0xa2   : > { %888 = vrot.lane.b32.xlu0 %v812_v49, %s4440_s27  ;;  %4114 = vmatpush1.bf16.msra.mxu0 %v4113_v43  ;;  %v1342_v49 = vld [vmem:[%s6996_s1 + $0xf0] sm:$0xff] }
  0xa3   : > { %693 = vrot.lane.b32.xlu1 %v618_v55, %s4439_s26  ;;  %4121 = vmatpush3.bf16.msra.mxu1 %v4118_v41  ;;  %v4116_v53 = vpack.c.bf16 %v1343_v50, %v1342_v49 }
  0xa4   : > { %4115 = vmatprep.subr.bf16.mxu0 %v4441_v15  ;;  %4123 = vmatprep.subr.bf16.mxu1 %v4122_v46 }
  0xa6   : > { %890 = vrot.lane.b32.xlu0 %v814_v60, %s4440_s27  ;;  %4117 = vmatpush1.bf16.msra.mxu0 %v4116_v53 }
  0xa7   : > { %892 = vrot.lane.b32.xlu1 %v817_v0, %s4440_s27  ;;  %4125 = vmatpush3.bf16.msra.mxu1 %v4122_v46 }
  0xa8   : > { %4126 = vmatprep.subr.bf16.mxu1 %v4441_v15 }
  0xaa   : > { %695 = vrot.lane.b32.xlu0 %v620_v11, %s4439_s26 }
  0xab   : > { %894 = vrot.lane.b32.xlu1 %v819_v25, %s4440_s27 }
  0xae   : > { %697 = vrot.lane.b32.xlu0 %v623_v27, %s4439_s26 }
  0xb8   : > { %v4235_v54 = vpop.permute.xlu0 %4234 }
  0xb9   : > { %v4237_v55 = vunpack.i.h.bf16 %v4235_v54  ;;  %v4236_v56 = vunpack.i.l.bf16 %v4235_v54  ;;  %v4240_v57 = vpop.permute.xlu1 %4239 }
  0xba   : > { %v4242_v58 = vunpack.i.h.bf16 %v4240_v57  ;;  %v4241_v59 = vunpack.i.l.bf16 %v4240_v57 }
  0xbb   : > { %v950_v60 = vsel %vm331_vm0, %v4760_v21, %v4236_v56  ;;  %v951_v61 = vsel %vm331_vm0, %v4762_v22, %v4237_v55 }
  0xbc   : > { %v650_v62 = vpop.permute.xlu0 %649  ;;  %v5146_v63 = vsel %vm984_vm5, %v950_v60, %v4241_v59  ;;  %v5149_v0 = vsel %vm984_vm5, %v951_v61, %v4242_v58  ;;  %v820_v61 = vrot.slane %v5091_v6, 2 }
  0xbd   : > { %v952_v1 = vsel %vm331_vm0, %v4769_v28, %v650_v62  ;;  %v849_v10 = vpop.permute.xlu1 %848  ;;  %v4253_v11 = vpack.i.bf16 %v5149_v0, %v5146_v63  ;;  %v821_v62 = vrot.slane %v5093_v9, 2 }
  0xbe   : > { %v5156_v14 = vsel %vm984_vm5, %v952_v1, %v849_v10 }
  0xbf   : > { %1151 = vrot.lane.b32.xlu0 %v5156_v14, %s4440_s27  ;;  %4254 = vrot.lane.b32.xlu1 %v4253_v11, %s4442_s14 }
  0xc0   : > { %v652_v21 = vpop.permute.xlu0 %651 }
  0xc1   : > { %v953_v22 = vsel %vm331_vm0, %v4771_v29, %v652_v21  ;;  %v851_v20 = vpop.permute.xlu1 %850 }
  0xc2   : > { %v5164_v28 = vsel %vm984_vm5, %v953_v22, %v851_v20  ;;  %v822_v22 = vsel %vm749_vm4, %v820_v61, %v821_v62 }
  0xc3   : > { %1153 = vrot.lane.b32.xlu1 %v5164_v28, %s4440_s27  ;;  %v4258_v23 = vpack.i.bf16 %v5164_v28, %v5156_v14 }
  0xc4   : > { %v654_v25 = vpop.permute.xlu0 %653 }
  0xc5   : > { %v954_v26 = vsel %vm331_vm0, %v4786_v47, %v654_v25  ;;  %v853_v27 = vpop.permute.xlu1 %852  ;;  %4259 = vrot.lane.b32.xlu0 %v4258_v23, %s4442_s14 }
  0xc6   : > { %v5174_v36 = vsel %vm984_vm5, %v954_v26, %v853_v27 }
  0xc7   : > { %1155 = vrot.lane.b32.xlu1 %v5174_v36, %s4440_s27 }
  0xc8   : > { %v656_v29 = vpop.permute.xlu0 %655 }
  0xc9   : > { %v955_v39 = vsel %vm331_vm0, %v4788_v48, %v656_v29  ;;  %v855_v40 = vpop.permute.xlu1 %854 }
  0xca   : > { %v5181_v41 = vsel %vm984_vm5, %v955_v39, %v855_v40 }
  0xcb   : > { %1157 = vrot.lane.b32.xlu0 %v5181_v41, %s4440_s27  ;;  %v4263_v47 = vpack.i.bf16 %v5181_v41, %v5174_v36 }
  0xcc   : > { %v658_v42 = vpop.permute.xlu0 %657 }
  0xcd   : > { %v956_v43 = vsel %vm331_vm0, %v4818_v4, %v658_v42  ;;  %v857_v44 = vpop.permute.xlu1 %856  ;;  %4264 = vrot.lane.b32.xlu1 %v4263_v47, %s4442_s14  ;;  %v5247_v47 = vld [vmem:[#allocation2 + $0x168] sm:$0xff]  ;;  %v5249_v42 = vld [vmem:[#allocation2 + $0x170] sm:$0xff] }
  0xce   : > { %v5191_v45 = vsel %vm984_vm5, %v956_v43, %v857_v44 }
  0xcf   : > { %1159 = vrot.lane.b32.xlu0 %v5191_v45, %s4440_s27 }
  0xd0   : > { %v660_v48 = vpop.permute.xlu0 %659 }
  0xd1   : > { %v957_v46 = vsel %vm331_vm0, %v4820_v5, %v660_v48  ;;  %v859_v49 = vpop.permute.xlu1 %858  ;;  %v627_v48 = vrot.slane %v5249_v42, 1 }
  0xd2   : > { %v5198_v50 = vsel %vm984_vm5, %v957_v46, %v859_v49  ;;  %v489_v49 = vld [vmem:[#allocation2 + $0x178] sm:$0x3] }
  0xd3   : > { %1161 = vrot.lane.b32.xlu1 %v5198_v50, %s4440_s27  ;;  %v4268_v4 = vpack.i.bf16 %v5198_v50, %v5191_v45 }
  0xd4   : > { %v662_v53 = vpop.permute.xlu0 %661 }
  0xd5   : > { %v958_v54 = vsel %vm331_vm0, %v4834_v17, %v662_v53  ;;  %v861_v55 = vpop.permute.xlu1 %860  ;;  %4269 = vrot.lane.b32.xlu0 %v4268_v4, %s4442_s14 }
  0xd6   : > { %v5208_v56 = vsel %vm984_vm5, %v958_v54, %v861_v55  ;;  %v629_v55 = vrot.slane %v489_v49, 1 }
  0xd7   : > { %1163 = vrot.lane.b32.xlu1 %v5208_v56, %s4440_s27 }
  0xd8   : > { %v664_v5 = vpop.permute.xlu0 %663 }
  0xd9   : > { %v959_v57 = vsel %vm331_vm0, %v4836_v18, %v664_v5  ;;  %v863_v58 = vpop.permute.xlu1 %862  ;;  %v486_v18 = vld [vmem:[#allocation2 + $0x160] sm:$0x3]  ;;  %v825_v5 = vrot.slane %v5247_v47, 2 }
  0xda   : > { %v5215_v59 = vsel %vm984_vm5, %v959_v57, %v863_v58  ;;  %v624_v20 = vrot.slane %v486_v18, 1  ;;  %v823_v29 = vrot.slane %v486_v18, 2  ;;  %v826_v57 = vrot.slane %v5249_v42, 2  ;;  %v5279_v18 = vld [vmem:[#allocation2 + $0x188] sm:$0xff] }
  0xdb   : > { %1165 = vrot.lane.b32.xlu0 %v5215_v59, %s4440_s27  ;;  %v4273_v17 = vpack.i.bf16 %v5215_v59, %v5208_v56 }
  0xdc   : > { %v666_v60 = vpop.permute.xlu0 %665  ;;  %v625_v27 = vsel %vm550_vm3, %v622_v16, %v624_v20  ;;  %v824_v44 = vsel %vm749_vm4, %v821_v62, %v823_v29  ;;  %v632_v20 = vrot.slane %v5279_v18, 1 }
  0xdd   : > { %v960_v1 = vsel %vm331_vm0, %v4850_v34, %v666_v60  ;;  %v865_v10 = vpop.permute.xlu1 %864  ;;  %4274 = vrot.lane.b32.xlu1 %v4273_v17, %s4442_s14  ;;  %v827_v60 = vsel %vm749_vm4, %v825_v5, %v826_v57  ;;  %v5315_v5 = vld [vmem:[#allocation2 + $0x1a0] sm:$0xff] }
  0xde   : > { %v5227_v11 = vsel %vm984_vm5, %v960_v1, %v865_v10  ;;  %v5277_v10 = vld [vmem:[#allocation2 + $0x180] sm:$0xff] }
  0xdf   : > { %1167 = vrot.lane.b32.xlu0 %v5227_v11, %s4440_s27 }
  0xe0   : > { %v668_v21 = vpop.permute.xlu0 %667 }
  0xe1   : > { %v961_v23 = vsel %vm331_vm0, %v4852_v35, %v668_v21  ;;  %v867_v25 = vpop.permute.xlu1 %866 }
  0xe2   : > { %v5235_v34 = vsel %vm984_vm5, %v961_v23, %v867_v25  ;;  %v828_v23 = vrot.slane %v489_v49, 2 }
  0xe3   : > { %896 = vrot.lane.b32.xlu0 %v822_v22, %s4440_s27  ;;  %1169 = vrot.lane.b32.xlu1 %v5235_v34, %s4440_s27  ;;  %v4278_v35 = vpack.i.bf16 %v5235_v34, %v5227_v11  ;;  %v631_v22 = vrot.slane %v5277_v10, 1 }
  0xe4   : > { %v670_v26 = vpop.permute.xlu0 %669  ;;  %v829_v29 = vsel %vm749_vm4, %v826_v57, %v828_v23  ;;  %v495_v23 = vld [vmem:[#allocation2 + $0x1a8] sm:$0x3] }
  0xe5   : > { %v962_v39 = vsel %vm331_vm0, %v4870_v51, %v670_v26  ;;  %v869_v40 = vpop.permute.xlu1 %868  ;;  %v626_v51 = vrot.slane %v5247_v47, 1 }
  0xe6   : > { %v5255_v16 = vsel %vm984_vm5, %v962_v39, %v869_v40  ;;  %v830_v39 = vrot.slane %v5277_v10, 2  ;;  %v831_v40 = vrot.slane %v5279_v18, 2 }
  0xe7   : > { %4279 = vrot.lane.b32.xlu0 %v4278_v35, %s4442_s14  ;;  %699 = vrot.lane.b32.xlu1 %v625_v27, %s4439_s26  ;;  %v628_v53 = vsel %vm550_vm3, %v626_v51, %v627_v48  ;;  %v633_v27 = vsel %vm550_vm3, %v631_v22, %v632_v20 }
  0xe8   : > { %v672_v43 = vpop.permute.xlu0 %671 }
  0xe9   : > { %v871_v46 = vpop.permute.xlu1 %870  ;;  %v963_v4 = vsel %vm331_vm0, %v4872_v52, %v672_v43  ;;  %v630_v52 = vsel %vm550_vm3, %v627_v48, %v629_v55  ;;  %v492_v43 = vld [vmem:[#allocation2 + $0x190] sm:$0x3]  ;;  %v832_v48 = vsel %vm749_vm4, %v830_v39, %v831_v40  ;;  %v5313_v55 = vld [vmem:[#allocation2 + $0x198] sm:$0xff]  ;;  %v836_v39 = vrot.slane %v5315_v5, 2 }
  0xea   : > { %v5268_v17 = vsel %vm984_vm5, %v963_v4, %v871_v46  ;;  %v634_v46 = vrot.slane %v492_v43, 1 }
  0xeb   : > { %898 = vrot.lane.b32.xlu0 %v824_v44, %s4440_s27  ;;  %1171 = vrot.lane.b32.xlu1 %v5255_v16, %s4440_s27 }
  0xec   : > { %v674_v54 = vpop.permute.xlu0 %673 }
  0xed   : > { %v873_v58 = vpop.permute.xlu1 %872  ;;  %v964_v62 = vsel %vm331_vm0, %v4888_v2, %v674_v54  ;;  %v4283_v2 = vpack.i.bf16 %v5268_v17, %v5255_v16  ;;  %v833_v54 = vrot.slane %v492_v43, 2 }
  0xee   : > { %v5284_v21 = vsel %vm984_vm5, %v964_v62, %v873_v58  ;;  %v637_v62 = vrot.slane %v5315_v5, 1 }
  0xef   : > { %1173 = vrot.lane.b32.xlu0 %v5268_v17, %s4440_s27  ;;  %701 = vrot.lane.b32.xlu1 %v628_v53, %s4439_s26 }
  0xf0   : > { %v676_v61 = vpop.permute.xlu0 %675 }
  0xf1   : > { %v875_v1 = vpop.permute.xlu1 %874  ;;  %v965_v51 = vsel %vm331_vm0, %v4890_v3, %v676_v61  ;;  %v635_v3 = vsel %vm550_vm3, %v632_v20, %v634_v46  ;;  %v636_v61 = vrot.slane %v5313_v55, 1 }
  0xf2   : > { %v5307_v53 = vsel %vm984_vm5, %v965_v51, %v875_v1  ;;  %v834_v1 = vsel %vm749_vm4, %v831_v40, %v833_v54 }
  0xf3   : > { %703 = vrot.lane.b32.xlu0 %v630_v52, %s4439_s26  ;;  %900 = vrot.lane.b32.xlu1 %v827_v60, %s4440_s27  ;;  %v4288_v52 = vpack.i.bf16 %v5307_v53, %v5284_v21 }
  0xf4   : > { %v678_v25 = vpop.permute.xlu0 %677 }
  0xf5   : > { %v877_v26 = vpop.permute.xlu1 %876  ;;  %v966_v58 = vsel %vm331_vm0, %v4924_v31, %v678_v25  ;;  %v638_v25 = vsel %vm550_vm3, %v636_v61, %v637_v62 }
  0xf6   : > { %v5327_v22 = vsel %vm984_vm5, %v966_v58, %v877_v26  ;;  %v835_v26 = vrot.slane %v5313_v55, 2 }
  0xf7   : > { %1175 = vrot.lane.b32.xlu0 %v5284_v21, %s4440_s27  ;;  %4284 = vrot.lane.b32.xlu1 %v4283_v2, %s4442_s14 }
  0xf8   : > { %v5297_v35 = vpop.permute.xlu0 %4244  ;;  %v837_v43 = vsel %vm749_vm4, %v835_v26, %v836_v39 }
  0xf9   : > { %v680_v44 = vpop.permute.xlu1 %679 }
  0xfa   : > { %v967_v31 = vsel %vm331_vm0, %v4926_v32, %v680_v44 }
  0xfb   : > { %705 = vrot.lane.b32.xlu0 %v633_v27, %s4439_s26  ;;  %902 = vrot.lane.b32.xlu1 %v829_v29, %s4440_s27  ;;  %v639_v29 = vrot.slane %v495_v23, 1 }
  0xfc   : > { %v5304_v49 = vpop.permute.xlu0 %4249 }
  0xfd   : > { %v879_v4 = vpop.permute.xlu1 %878  ;;  %v640_v32 = vsel %vm550_vm3, %v637_v62, %v639_v29 }
  0xfe   : > { %v5336_v27 = vsel %vm984_vm5, %v967_v31, %v879_v4  ;;  %v838_v4 = vrot.slane %v495_v23, 2 }
  0xff   : > { %904 = vrot.lane.b32.xlu0 %v832_v48, %s4440_s27  ;;  %1177 = vrot.lane.b32.xlu1 %v5307_v53, %s4440_s27 }
 0x100   : > { %v682_v57 = vpop.permute.xlu0 %681 }
 0x101   : > { %v684_v60 = vpop.permute.xlu1 %683  ;;  %v968_v44 = vsel %vm331_vm0, %v4972_v12, %v682_v57  ;;  %v839_v12 = vsel %vm749_vm4, %v836_v39, %v838_v4  ;;  %v4246_v39 = vunpack.i.l.bf16 %v5297_v35 }
 0x102   : > { %v969_v57 = vsel %vm331_vm0, %v4974_v13, %v684_v60 }
 0x103   : > { %4289 = vrot.lane.b32.xlu0 %v4288_v52, %s4442_s14  ;;  %707 = vrot.lane.b32.xlu1 %v635_v3, %s4439_s26 }
 0x104   : > { %v881_v20 = vpop.permute.xlu0 %880 }
 0x105   : > { %v686_v2 = vpop.permute.xlu1 %685  ;;  %v5350_v46 = vsel %vm984_vm5, %v968_v44, %v881_v20  ;;  %v948_v44 = vsel %vm331_vm0, %v4910_v19, %v4246_v39 }
 0x106   : > { %v970_v52 = vsel %vm331_vm0, %v4988_v37, %v686_v2 }
 0x107   : > { %906 = vrot.lane.b32.xlu0 %v834_v1, %s4440_s27  ;;  %1179 = vrot.lane.b32.xlu1 %v5327_v22, %s4440_s27 }
 0x108   : > { %v883_v40 = vpop.permute.xlu0 %882 }
 0x109   : > { %v885_v51 = vpop.permute.xlu1 %884  ;;  %v5363_v58 = vsel %vm984_vm5, %v969_v57, %v883_v40 }
 0x10a   : > { %v5372_v13 = vsel %vm984_vm5, %v970_v52, %v885_v51  ;;  %v4247_v51 = vunpack.i.h.bf16 %v5297_v35 }
 0x10b   : > { %1181 = vrot.lane.b32.xlu0 %v5336_v27, %s4440_s27  ;;  %709 = vrot.lane.b32.xlu1 %v638_v25, %s4439_s26 }
 0x10c   : > { %v688_v48 = vpop.permute.xlu0 %687  ;;  %v949_v52 = vsel %vm331_vm0, %v4914_v24, %v4247_v51 }
 0x10d   : > { %v887_v3 = vpop.permute.xlu1 %886  ;;  %v971_v60 = vsel %vm331_vm0, %v4990_v38, %v688_v48 }
 0x10e   : > { %v5381_v20 = vsel %vm984_vm5, %v971_v60, %v887_v3 }
 0x10f   : > { %711 = vrot.lane.b32.xlu0 %v640_v32, %s4439_s26  ;;  %908 = vrot.lane.b32.xlu1 %v837_v43, %s4440_s27  ;;  %v4251_v43 = vunpack.i.l.bf16 %v5304_v49 }
 0x110   : > { %v690_v54 = vpop.permute.xlu0 %689 }
 0x111   : > { %v692_v61 = vpop.permute.xlu1 %691  ;;  %v972_v31 = vsel %vm331_vm0, %v5031_v7, %v690_v54  ;;  %v985_v3 = vsel %vm984_vm5, %v948_v44, %v4251_v43  ;;  %v4252_v54 = vunpack.i.h.bf16 %v5304_v49 }
 0x112   : > { %v973_v23 = vsel %vm331_vm0, %v5033_v8, %v692_v61 }
 0x113   : > { %1183 = vrot.lane.b32.xlu0 %v5350_v46, %s4440_s27  ;;  %1085 = vrot.lane.b32.xlu1 %v5327_v22, %s4442_s14  ;;  %v986_v60 = vsel %vm984_vm5, %v949_v52, %v4252_v54 }
 0x114   : > { %v889_v62 = vpop.permute.xlu0 %888 }
 0x115   : > { %v694_v37 = vpop.permute.xlu1 %693  ;;  %v5390_v38 = vsel %vm984_vm5, %v972_v31, %v889_v62 }
 0x116   : > { %v974_v29 = vsel %vm331_vm0, %v5048_v30, %v694_v37 }
 0x117   : > { %1087 = vrot.lane.b32.xlu0 %v5336_v27, %s4442_s14  ;;  %910 = vrot.lane.b32.xlu1 %v839_v12, %s4440_s27 }
 0x118   : > { %v891_v1 = vpop.permute.xlu0 %890 }
 0x119   : > { %v893_v25 = vpop.permute.xlu1 %892  ;;  %v5399_v7 = vsel %vm984_vm5, %v973_v23, %v891_v1 }
 0x11a   : > { %v5411_v40 = vsel %vm984_vm5, %v974_v29, %v893_v25 }
 0x11b   : > { %1089 = vrot.lane.b32.xlu0 %v5350_v46, %s4442_s14  ;;  %1185 = vrot.lane.b32.xlu1 %v5363_v58, %s4440_s27 }
 0x11c   : > { %v696_v2 = vpop.permute.xlu0 %695 }
 0x11d   : > { %v895_v8 = vpop.permute.xlu1 %894  ;;  %v975_v32 = vsel %vm331_vm0, %v5050_v33, %v696_v2 }
 0x11e   : > { %v5421_v30 = vsel %vm984_vm5, %v975_v32, %v895_v8 }
 0x11f   : > { %1091 = vrot.lane.b32.xlu0 %v5363_v58, %s4442_s14  ;;  %1187 = vrot.lane.b32.xlu1 %v5372_v13, %s4440_s27 }
 0x120   : > { %v5407_v26 = vpop.permute.xlu0 %697 }
 0x123   : > { %1093 = vrot.lane.b32.xlu0 %v5372_v13, %s4442_s14  ;;  %1189 = vrot.lane.b32.xlu1 %v5381_v20, %s4440_s27 }
 0x127   : > { %1095 = vrot.lane.b32.xlu0 %v5381_v20, %s4442_s14  ;;  %1191 = vrot.lane.b32.xlu1 %v5390_v38, %s4440_s27 }
 0x12b   : > { %1097 = vrot.lane.b32.xlu0 %v5390_v38, %s4442_s14  ;;  %1193 = vrot.lane.b32.xlu1 %v5399_v7, %s4440_s27 }
 0x12f   : > { %1099 = vrot.lane.b32.xlu0 %v5399_v7, %s4442_s14  ;;  %1195 = vrot.lane.b32.xlu1 %v5411_v40, %s4440_s27 }
 0x131   : > { %v1152_v48 = vpop.permute.xlu0 %1151  ;;  %v4255_v4 = vpop.permute.xlu1 %4254 }
 0x132   : > { %v4256_v33 = vunpack.i.l.bf16 %v4255_v4  ;;  %3966 = vmatprep.mubr.msk.f32.mxu1 %vm331_vm0, %v1152_v48  ;;  %v4257_v12 = vunpack.i.h.bf16 %v4255_v4 }
 0x133   : > { %1101 = vrot.lane.b32.xlu0 %v5411_v40, %s4442_s14  ;;  %1197 = vrot.lane.b32.xlu1 %v5421_v30, %s4440_s27 }
 0x134   : > { %v1280_v19 = vsel %vm984_vm5, %v4256_v33, %v1152_v48  ;;  %v1248_v35 = vsel %vm1247_vm6, %v985_v3, %v4256_v33  ;;  %v1249_v1 = vsel %vm1247_vm6, %v986_v60, %v4257_v12 }
 0x135   : > { %v1154_v57 = vpop.permute.xlu1 %1153  ;;  %1483 = vmatprep.mubr.f32.mxu0 %v1280_v19 }
 0x136   : > { %1484 = vmatmul.mubr.f32.vlgmr.msra.gmra.mrb[0].mxu0 %v1248_v35  ;;  %3967 = vmatmul.mubr.msk.f32.vlgmr.msra.gmra.mrb[0].mxu1 %vm331_vm0, %v1154_v57  ;;  %v1281_v61 = vsel %vm984_vm5, %v4257_v12, %v1154_v57 }
 0x137   : > { %1103 = vrot.lane.b32.xlu0 %v5421_v30, %s4442_s14  ;;  %v4260_v62 = vpop.permute.xlu0 %4259  ;;  %1488 = vmatprep.mubr.f32.mxu0 %v1281_v61 }
 0x138   : > { %v4261_v49 = vunpack.i.l.bf16 %v4260_v62  ;;  %v4262_v31 = vunpack.i.h.bf16 %v4260_v62 }
 0x139   : > { %v1156_v37 = vpop.permute.xlu1 %1155 }
 0x13a   : > { %1489 = vmatmul.mubr.f32.gmra.mrb[2].mxu0 %v1249_v1  ;;  %3969 = vmatprep.mubr.msk.f32.mxu1 %vm331_vm0, %v1156_v37  ;;  %v1282_v24 = vsel %vm984_vm5, %v4261_v49, %v1156_v37  ;;  %v1250_v25 = vsel %vm1247_vm6, %v5146_v63, %v4261_v49  ;;  %v1251_v32 = vsel %vm1247_vm6, %v5149_v0, %v4262_v31 }
 0x13b   : > { %1493 = vmatprep.mubr.f32.mxu0 %v1282_v24 }
 0x13d   : > { %v1158_v23 = vpop.permute.xlu0 %1157 }
 0x13e   : > { %1494 = vmatmul.mubr.f32.gmra.mrb[4].mxu0 %v1250_v25  ;;  %3970 = vmatmul.mubr.msk.f32.gmra.mrb[2].mxu1 %vm331_vm0, %v1158_v23  ;;  %v1283_v2 = vsel %vm984_vm5, %v4262_v31, %v1158_v23 }
 0x13f   : > { %v4265_v29 = vpop.permute.xlu1 %4264  ;;  %1498 = vmatprep.mubr.f32.mxu0 %v1283_v2 }
 0x140   : > { %v4266_v8 = vunpack.i.l.bf16 %v4265_v29  ;;  %v4267_v44 = vunpack.i.h.bf16 %v4265_v29 }
 0x141   : > { %v1160_v39 = vpop.permute.xlu0 %1159 }
 0x142   : > { %1499 = vmatmul.mubr.f32.gmra.mrb[6].mxu0 %v1251_v32  ;;  %3972 = vmatprep.mubr.msk.f32.mxu1 %vm331_vm0, %v1160_v39  ;;  %v1284_v43 = vsel %vm984_vm5, %v4266_v8, %v1160_v39  ;;  %v1252_v51 = vsel %vm1247_vm6, %v5156_v14, %v4266_v8  ;;  %v1253_v3 = vsel %vm1247_vm6, %v5164_v28, %v4267_v44 }
 0x143   : > { %1503 = vmatprep.mubr.f32.mxu0 %v1284_v43 }
 0x145   : > { %v1162_v63 = vpop.permute.xlu1 %1161 }
 0x146   : > { %1504 = vmatmul.mubr.f32.gmra.mrb[8].mxu0 %v1252_v51  ;;  %3973 = vmatmul.mubr.msk.f32.gmra.mrb[4].mxu1 %vm331_vm0, %v1162_v63  ;;  %v1285_v48 = vsel %vm984_vm5, %v4267_v44, %v1162_v63 }
 0x147   : > { %v4270_v4 = vpop.permute.xlu0 %4269  ;;  %1508 = vmatprep.mubr.f32.mxu0 %v1285_v48 }
 0x148   : > { %v4271_v33 = vunpack.i.l.bf16 %v4270_v4  ;;  %v4272_v12 = vunpack.i.h.bf16 %v4270_v4 }
 0x149   : > { %v1164_v0 = vpop.permute.xlu1 %1163 }
 0x14a   : > { %1509 = vmatmul.mubr.f32.gmra.mrb[10].mxu0 %v1253_v3  ;;  %3975 = vmatprep.mubr.msk.f32.mxu1 %vm331_vm0, %v1164_v0  ;;  %v1286_v54 = vsel %vm984_vm5, %v4271_v33, %v1164_v0  ;;  %v1254_v19 = vsel %vm1247_vm6, %v5174_v36, %v4271_v33  ;;  %v1255_v61 = vsel %vm1247_vm6, %v5181_v41, %v4272_v12 }
 0x14b   : > { %1513 = vmatprep.mubr.f32.mxu0 %v1286_v54  ;;  %v976_v36 = vsel %vm331_vm0, %v5091_v6, %v5407_v26 }
 0x14d   : > { %v1166_v14 = vpop.permute.xlu0 %1165 }
 0x14e   : > { %1514 = vmatmul.mubr.f32.gmra.mrb[12].mxu0 %v1254_v19  ;;  %3976 = vmatmul.mubr.msk.f32.gmra.mrb[6].mxu1 %vm331_vm0, %v1166_v14  ;;  %v1287_v35 = vsel %vm984_vm5, %v4272_v12, %v1166_v14 }
 0x14f   : > { %v4275_v57 = vpop.permute.xlu1 %4274  ;;  %1518 = vmatprep.mubr.f32.mxu0 %v1287_v35 }
 0x150   : > { %v4276_v52 = vunpack.i.l.bf16 %v4275_v57  ;;  %v4277_v49 = vunpack.i.h.bf16 %v4275_v57 }
 0x151   : > { %v1168_v28 = vpop.permute.xlu0 %1167 }
 0x152   : > { %1519 = vmatmul.mubr.f32.gmra.mrb[14].mxu0 %v1255_v61  ;;  %3978 = vmatprep.mubr.msk.f32.mxu1 %vm331_vm0, %v1168_v28  ;;  %v1288_v62 = vsel %vm984_vm5, %v4276_v52, %v1168_v28  ;;  %v1256_v1 = vsel %vm1247_vm6, %v5191_v45, %v4276_v52  ;;  %v1257_v45 = vsel %vm1247_vm6, %v5198_v50, %v4277_v49 }
 0x153   : > { %1523 = vmatprep.mubr.f32.mxu0 %v1288_v62 }
 0x155   : > { %v897_v60 = vpop.permute.xlu0 %896  ;;  %v1170_v37 = vpop.permute.xlu1 %1169 }
 0x156   : > { %v5475_v24 = vsel %vm984_vm5, %v976_v36, %v897_v60  ;;  %1524 = vmatmul.mubr.f32.gmra.mrb[16].mxu0 %v1256_v1  ;;  %v1289_v41 = vsel %vm984_vm5, %v4277_v49, %v1170_v37  ;;  %3979 = vmatmul.mubr.msk.f32.gmra.mrb[8].mxu1 %vm331_vm0, %v1170_v37 }
 0x157   : > { %1105 = vrot.lane.b32.xlu0 %v5475_v24, %s4442_s14  ;;  %1199 = vrot.lane.b32.xlu1 %v5475_v24, %s4440_s27 }
 0x158   : > { %1528 = vmatprep.mubr.f32.mxu0 %v1289_v41 }
 0x159   : > { %v4280_v6 = vpop.permute.xlu0 %4279  ;;  %v700_v26 = vpop.permute.xlu1 %699 }
 0x15a   : > { %1529 = vmatmul.mubr.f32.gmra.mrb[18].mxu0 %v1257_v45  ;;  %v977_v31 = vsel %vm331_vm0, %v5093_v9, %v700_v26  ;;  %v4281_v23 = vunpack.i.l.bf16 %v4280_v6  ;;  %v4282_v50 = vunpack.i.h.bf16 %v4280_v6 }
 0x15c   : > { %v1258_v9 = vsel %vm1247_vm6, %v5208_v56, %v4281_v23  ;;  %v1259_v63 = vsel %vm1247_vm6, %v5215_v59, %v4282_v50 }
 0x15d   : > { %v899_v25 = vpop.permute.xlu0 %898  ;;  %v1172_v2 = vpop.permute.xlu1 %1171 }
 0x15e   : > { %v5488_v29 = vsel %vm984_vm5, %v977_v31, %v899_v25  ;;  %3981 = vmatprep.mubr.msk.f32.mxu1 %vm331_vm0, %v1172_v2  ;;  %v1290_v8 = vsel %vm984_vm5, %v4281_v23, %v1172_v2 }
 0x15f   : > { %1107 = vrot.lane.b32.xlu0 %v5488_v29, %s4442_s14  ;;  %1201 = vrot.lane.b32.xlu1 %v5488_v29, %s4440_s27 }
 0x160   : > { %1533 = vmatprep.mubr.f32.mxu0 %v1290_v8 }
 0x161   : > { %1534 = vmatmul.mubr.f32.gmra.mrb[20].mxu0 %v1258_v9  ;;  %v1174_v39 = vpop.permute.xlu0 %1173  ;;  %v702_v32 = vpop.permute.xlu1 %701 }
 0x162   : > { %3982 = vmatmul.mubr.msk.f32.gmra.mrb[10].mxu1 %vm331_vm0, %v1174_v39  ;;  %v1291_v43 = vsel %vm984_vm5, %v4282_v50, %v1174_v39  ;;  %v978_v44 = vsel %vm331_vm0, %v5247_v47, %v702_v32 }
 0x163   : > { %1538 = vmatprep.mubr.f32.mxu0 %v1291_v43 }
 0x165   : > { %1539 = vmatmul.mubr.f32.gmra.mrb[22].mxu0 %v1259_v63  ;;  %v704_v51 = vpop.permute.xlu0 %703  ;;  %v901_v48 = vpop.permute.xlu1 %900 }
 0x166   : > { %v5505_v4 = vsel %vm984_vm5, %v978_v44, %v901_v48  ;;  %v979_v3 = vsel %vm331_vm0, %v5249_v42, %v704_v51 }
 0x167   : > { %1109 = vrot.lane.b32.xlu0 %v5505_v4, %s4442_s14  ;;  %1203 = vrot.lane.b32.xlu1 %v5505_v4, %s4440_s27 }
 0x169   : > { %v1176_v56 = vpop.permute.xlu0 %1175  ;;  %v4285_v33 = vpop.permute.xlu1 %4284 }
 0x16a   : > { %v4286_v0 = vunpack.i.l.bf16 %v4285_v33  ;;  %3984 = vmatprep.mubr.msk.f32.mxu1 %vm331_vm0, %v1176_v56  ;;  %v4287_v19 = vunpack.i.h.bf16 %v4285_v33 }
 0x16c   : > { %v1292_v47 = vsel %vm984_vm5, %v4286_v0, %v1176_v56  ;;  %v1260_v59 = vsel %vm1247_vm6, %v5227_v11, %v4286_v0  ;;  %v1261_v28 = vsel %vm1247_vm6, %v5235_v34, %v4287_v19 }
 0x16d   : > { %v706_v54 = vpop.permute.xlu0 %705  ;;  %v903_v12 = vpop.permute.xlu1 %902  ;;  %1543 = vmatprep.mubr.f32.mxu0 %v1292_v47  ;;  %v2041_v47 = vld [vmem:[#allocation3] sm:$0xff] }
 0x16e   : > { %v5518_v14 = vsel %vm984_vm5, %v979_v3, %v903_v12  ;;  %1544 = vmatmul.mubr.f32.gmra.mrb[24].mxu0 %v1260_v59  ;;  %v980_v11 = vsel %vm331_vm0, %v5277_v10, %v706_v54  ;;  %v2042_v59 = vld [vmem:[#allocation3 + $0x8] sm:$0xff]  ;;  %v2043_v3 = vld [vmem:[#allocation3 + $0x10] sm:$0x3]  ;;  %v2149_v54 = vrot.slane %v2041_v47, 1 }
 0x16f   : > { %1111 = vrot.lane.b32.xlu0 %v5518_v14, %s4442_s14  ;;  %1205 = vrot.lane.b32.xlu1 %v5518_v14, %s4440_s27  ;;  %v2150_v12 = vrot.slane %v2042_v59, 1 }
 0x171   : > { %v905_v35 = vpop.permute.xlu0 %904  ;;  %v1178_v57 = vpop.permute.xlu1 %1177 }
 0x172   : > { %v1017_v42 = vsel %vm984_vm5, %v980_v11, %v905_v35  ;;  %3985 = vmatmul.mubr.msk.f32.gmra.mrb[12].mxu1 %vm331_vm0, %v1178_v57  ;;  %v1293_v52 = vsel %vm984_vm5, %v4287_v19, %v1178_v57  ;;  %v2152_v11 = vrot.slane %v2043_v3, 1 }
 0x173   : > { %1113 = vrot.lane.b32.xlu0 %v1017_v42, %s4442_s14  ;;  %1207 = vrot.lane.b32.xlu1 %v1017_v42, %s4440_s27 }
 0x174   : > { %1548 = vmatprep.mubr.f32.mxu0 %v1293_v52  ;;  %v2153_v42 = vsel %vm550_vm3, %v2150_v12, %v2152_v11 }
 0x175   : > { %1549 = vmatmul.mubr.f32.gmra.mrb[26].mxu0 %v1261_v28  ;;  %v4290_v61 = vpop.permute.xlu0 %4289  ;;  %v708_v62 = vpop.permute.xlu1 %707 }
 0x176   : > { %v981_v10 = vsel %vm331_vm0, %v5279_v18, %v708_v62  ;;  %v4291_v49 = vunpack.i.l.bf16 %v4290_v61  ;;  %v4292_v34 = vunpack.i.h.bf16 %v4290_v61  ;;  %v2347_v61 = vrot.slane %v2041_v47, 2 }
 0x178   : > { %v1262_v41 = vsel %vm1247_vm6, %v5255_v16, %v4291_v49  ;;  %v1263_v31 = vsel %vm1247_vm6, %v5268_v17, %v4292_v34 }
 0x179   : > { %v907_v36 = vpop.permute.xlu0 %906  ;;  %v1180_v60 = vpop.permute.xlu1 %1179 }
 0x17a   : > { %v1018_v37 = vsel %vm984_vm5, %v981_v10, %v907_v36  ;;  %v1294_v1 = vsel %vm984_vm5, %v4291_v49, %v1180_v60  ;;  %3987 = vmatprep.mubr.msk.f32.mxu1 %vm331_vm0, %v1180_v60  ;;  %v2348_v10 = vrot.slane %v2042_v59, 2 }
 0x17b   : > { %1115 = vrot.lane.b32.xlu0 %v1018_v37, %s4442_s14  ;;  %1209 = vrot.lane.b32.xlu1 %v1018_v37, %s4440_s27 }
 0x17c   : > { %1553 = vmatprep.mubr.f32.mxu0 %v1294_v1  ;;  %v2349_v36 = vsel %vm749_vm4, %v2347_v61, %v2348_v10 }
 0x17d   : > { %1554 = vmatmul.mubr.f32.gmra.mrb[28].mxu0 %v1262_v41  ;;  %v1182_v18 = vpop.permute.xlu0 %1181  ;;  %v710_v6 = vpop.permute.xlu1 %709 }
 0x17e   : > { %3988 = vmatmul.mubr.msk.f32.gmra.mrb[14].mxu1 %vm331_vm0, %v1182_v18  ;;  %v1295_v26 = vsel %vm984_vm5, %v4292_v34, %v1182_v18  ;;  %v982_v45 = vsel %vm331_vm0, %v5313_v55, %v710_v6 }
 0x17f   : > { %1558 = vmatprep.mubr.f32.mxu0 %v1295_v26 }
 0x181   : > { %1559 = vmatmul.mubr.f32.gmra.mrb[30].mxu0 %v1263_v31  ;;  %v712_v23 = vpop.permute.xlu0 %711  ;;  %v909_v25 = vpop.permute.xlu1 %908 }
 0x182   : > { %v1019_v2 = vsel %vm984_vm5, %v982_v45, %v909_v25  ;;  %v983_v55 = vsel %vm331_vm0, %v5315_v5, %v712_v23 }
 0x183   : > { %1211 = vrot.lane.b32.xlu1 %v1019_v2, %s4440_s27 }
 0x185   : > { %v1184_v16 = vpop.permute.xlu0 %1183  ;;  %v1086_v8 = vpop.permute.xlu1 %1085 }
 0x186   : > { %v1296_v50 = vsel %vm984_vm5, %v1086_v8, %v1184_v16  ;;  %v1264_v9 = vsel %vm1247_vm6, %v5284_v21, %v1086_v8  ;;  %3990 = vmatprep.mubr.msk.f32.mxu1 %vm331_vm0, %v1184_v16 }
 0x187   : > { %1563 = vmatprep.mubr.f32.mxu0 %v1296_v50 }
 0x188   : > { %1564 = vmatmul.mubr.f32.gmra.mrb[32].mxu0 %v1264_v9 }
 0x189   : > { %v1088_v17 = vpop.permute.xlu0 %1087  ;;  %v911_v39 = vpop.permute.xlu1 %910 }
 0x18a   : > { %v1020_v32 = vsel %vm984_vm5, %v983_v55, %v911_v39  ;;  %v1265_v21 = vsel %vm1247_vm6, %v5307_v53, %v1088_v17 }
 0x18b   : > { %1213 = vrot.lane.b32.xlu1 %v1020_v32, %s4440_s27 }
 0x18d   : > { %v1090_v43 = vpop.permute.xlu0 %1089  ;;  %v1186_v44 = vpop.permute.xlu1 %1185 }
 0x18e   : > { %3991 = vmatmul.mubr.msk.f32.gmra.mrb[16].mxu1 %vm331_vm0, %v1186_v44  ;;  %v1297_v63 = vsel %vm984_vm5, %v1088_v17, %v1186_v44  ;;  %v1266_v56 = vsel %vm1247_vm6, %v5327_v22, %v1090_v43  ;;  %v2151_v22 = vsel %vm550_vm3, %v2149_v54, %v2150_v12 }
 0x18f   : > { %1568 = vmatprep.mubr.f32.mxu0 %v1297_v63  ;;  %v4293_v28 = vpack.i.bf16 %v2153_v42, %v2151_v22 }
 0x190   : > { %1569 = vmatmul.mubr.f32.gmra.mrb[34].mxu0 %v1265_v21 }
 0x191   : > { %v1092_v5 = vpop.permute.xlu0 %1091  ;;  %v1188_v51 = vpop.permute.xlu1 %1187  ;;  %4294 = vrot.lane.b32.xlu0 %v4293_v28, %s4439_s26 }
 0x192   : > { %v1298_v48 = vsel %vm984_vm5, %v1090_v43, %v1188_v51  ;;  %3993 = vmatprep.mubr.msk.f32.mxu1 %vm331_vm0, %v1188_v51  ;;  %v1267_v19 = vsel %vm1247_vm6, %v5336_v27, %v1092_v5  ;;  %v2350_v27 = vrot.slane %v2043_v3, 2 }
 0x193   : > { %1573 = vmatprep.mubr.f32.mxu0 %v1298_v48 }
 0x194   : > { %1574 = vmatmul.mubr.f32.gmra.mrb[36].mxu0 %v1266_v56  ;;  %v2351_v60 = vsel %vm749_vm4, %v2348_v10, %v2350_v27 }
 0x195   : > { %v1094_v33 = vpop.permute.xlu0 %1093  ;;  %v1190_v0 = vpop.permute.xlu1 %1189  ;;  %v4298_v34 = vpack.i.bf16 %v2351_v60, %v2349_v36 }
 0x196   : > { %3994 = vmatmul.mubr.msk.f32.gmra.mrb[18].mxu1 %vm331_vm0, %v1190_v0  ;;  %v1299_v53 = vsel %vm984_vm5, %v1092_v5, %v1190_v0  ;;  %v1268_v62 = vsel %vm1247_vm6, %v5350_v46, %v1094_v33 }
 0x197   : > { %1578 = vmatprep.mubr.f32.mxu0 %v1299_v53  ;;  %4299 = vrot.lane.b32.xlu0 %v4298_v34, %s4440_s27  ;;  %v5627_v53 = vld [vmem:[%s6997_s2] ss:$0 sm:$0xff] }
 0x198   : > { %1579 = vmatmul.mubr.f32.gmra.mrb[38].mxu0 %v1267_v19 }
 0x199   : > { %v1096_v35 = vpop.permute.xlu0 %1095  ;;  %v1192_v57 = vpop.permute.xlu1 %1191 }
 0x19a   : > { %v1300_v52 = vsel %vm984_vm5, %v1094_v33, %v1192_v57  ;;  %3996 = vmatprep.mubr.msk.f32.mxu1 %vm331_vm0, %v1192_v57  ;;  %v1269_v46 = vsel %vm1247_vm6, %v5363_v58, %v1096_v35 }
 0x19b   : > { %1583 = vmatprep.mubr.f32.mxu0 %v1300_v52 }
 0x19c   : > { %1584 = vmatmul.mubr.f32.gmra.mrb[40].mxu0 %v1268_v62 }
 0x19d   : > { %v1194_v49 = vpop.permute.xlu1 %1193  ;;  %v1098_v37 = vpop.permute.xlu0 %1097 }
 0x19e   : > { %3997 = vmatmul.mubr.msk.f32.gmra.mrb[20].mxu1 %vm331_vm0, %v1194_v49  ;;  %v1301_v1 = vsel %vm984_vm5, %v1096_v35, %v1194_v49  ;;  %v1270_v6 = vsel %vm1247_vm6, %v5372_v13, %v1098_v37 }
 0x19f   : > { %1588 = vmatprep.mubr.f32.mxu0 %v1301_v1 }
 0x1a0   : > { %1589 = vmatmul.mubr.f32.gmra.mrb[42].mxu0 %v1269_v46 }
 0x1a1   : > { %v1196_v41 = vpop.permute.xlu1 %1195  ;;  %v1100_v26 = vpop.permute.xlu0 %1099 }
 0x1a2   : > { %v1302_v18 = vsel %vm984_vm5, %v1098_v37, %v1196_v41  ;;  %3999 = vmatprep.mubr.msk.f32.mxu1 %vm331_vm0, %v1196_v41  ;;  %v1271_v58 = vsel %vm1247_vm6, %v5381_v20, %v1100_v26 }
 0x1a3   : > { %1593 = vmatprep.mubr.f32.mxu0 %v1302_v18 }
 0x1a4   : > { %1594 = vmatmul.mubr.f32.gmra.mrb[44].mxu0 %v1270_v6 }
 0x1a5   : > { %v1198_v45 = vpop.permute.xlu1 %1197  ;;  %v1102_v23 = vpop.permute.xlu0 %1101 }
 0x1a6   : > { %4000 = vmatmul.mubr.msk.f32.gmra.mrb[22].mxu1 %vm331_vm0, %v1198_v45  ;;  %v1303_v31 = vsel %vm984_vm5, %v1100_v26, %v1198_v45  ;;  %v1272_v13 = vsel %vm1247_vm6, %v5390_v38, %v1102_v23 }
 0x1a7   : > { %1598 = vmatprep.mubr.f32.mxu0 %v1303_v31 }
 0x1a8   : > { %1599 = vmatmul.mubr.f32.gmra.mrb[46].mxu0 %v1271_v58 }
 0x1a9   : > { %v1104_v16 = vpop.permute.xlu0 %1103 }
 0x1aa   : > { %v1273_v20 = vsel %vm1247_vm6, %v5399_v7, %v1104_v16 }
 0x1c9   : > { %v1200_v25 = vpop.permute.xlu1 %1199  ;;  %v1106_v9 = vpop.permute.xlu0 %1105 }
 0x1ca   : > { %4002 = vmatprep.mubr.msk.f32.mxu1 %vm331_vm0, %v1200_v25  ;;  %v1304_v2 = vsel %vm984_vm5, %v1102_v23, %v1200_v25  ;;  %v1274_v38 = vsel %vm1247_vm6, %v5411_v40, %v1106_v9 }
 0x1cb   : > { %1603 = vmatprep.mubr.f32.mxu0 %v1304_v2 }
 0x1cc   : > { %1604 = vmatmul.mubr.f32.gmra.mrb[48].mxu0 %v1272_v13 }
 0x1d1   : > { %v1202_v8 = vpop.permute.xlu1 %1201  ;;  %v1108_v39 = vpop.permute.xlu0 %1107 }
 0x1d2   : > { %4003 = vmatmul.mubr.msk.f32.gmra.mrb[24].mxu1 %vm331_vm0, %v1202_v8  ;;  %v1305_v50 = vsel %vm984_vm5, %v1104_v16, %v1202_v8  ;;  %v1275_v7 = vsel %vm1247_vm6, %v5421_v30, %v1108_v39 }
 0x1d3   : > { %1608 = vmatprep.mubr.f32.mxu0 %v1305_v50 }
 0x1d4   : > { %1609 = vmatmul.mubr.f32.gmra.mrb[50].mxu0 %v1273_v20 }
 0x1d9   : > { %v1204_v55 = vpop.permute.xlu1 %1203  ;;  %v1110_v44 = vpop.permute.xlu0 %1109 }
 0x1da   : > { %4005 = vmatprep.mubr.msk.f32.mxu1 %vm331_vm0, %v1204_v55  ;;  %v1306_v17 = vsel %vm984_vm5, %v1106_v9, %v1204_v55  ;;  %v1276_v40 = vsel %vm1247_vm6, %v5475_v24, %v1110_v44 }
 0x1db   : > { %1613 = vmatprep.mubr.f32.mxu0 %v1306_v17 }
 0x1dc   : > { %1614 = vmatmul.mubr.f32.gmra.mrb[52].mxu0 %v1274_v38 }
 0x1e1   : > { %v1206_v32 = vpop.permute.xlu1 %1205  ;;  %v1112_v5 = vpop.permute.xlu0 %1111 }
 0x1e2   : > { %4006 = vmatmul.mubr.msk.f32.gmra.mrb[26].mxu1 %vm331_vm0, %v1206_v32  ;;  %v1307_v43 = vsel %vm984_vm5, %v1108_v39, %v1206_v32  ;;  %v1277_v30 = vsel %vm1247_vm6, %v5488_v29, %v1112_v5 }
 0x1e3   : > { %1618 = vmatprep.mubr.f32.mxu0 %v1307_v43 }
 0x1e4   : > { %1619 = vmatmul.mubr.f32.gmra.mrb[54].mxu0 %v1275_v7 }
 0x1e5   : > { %v1208_v63 = vpop.permute.xlu1 %1207  ;;  %v1114_v56 = vpop.permute.xlu0 %1113 }
 0x1e6   : > { %4008 = vmatprep.mubr.msk.f32.mxu1 %vm331_vm0, %v1208_v63  ;;  %v1308_v21 = vsel %vm984_vm5, %v1110_v44, %v1208_v63  ;;  %v1278_v24 = vsel %vm1247_vm6, %v5505_v4, %v1114_v56 }
 0x1e7   : > { %1623 = vmatprep.mubr.f32.mxu0 %v1308_v21 }
 0x1e8   : > { %1624 = vmatmul.mubr.f32.gmra.mrb[56].mxu0 %v1276_v40 }
 0x1ed   : > { %v1210_v51 = vpop.permute.xlu1 %1209  ;;  %v1116_v47 = vpop.permute.xlu0 %1115 }
 0x1ee   : > { %4009 = vmatmul.mubr.msk.f32.gmra.mrb[28].mxu1 %vm331_vm0, %v1210_v51  ;;  %v1309_v48 = vsel %vm984_vm5, %v1112_v5, %v1210_v51  ;;  %v1279_v29 = vsel %vm1247_vm6, %v5518_v14, %v1116_v47 }
 0x1ef   : > { %1628 = vmatprep.mubr.f32.mxu0 %v1309_v48 }
 0x1f0   : > { %1629 = vmatmul.mubr.f32.gmra.mrb[58].mxu0 %v1277_v30 }
 0x1f5   : > { %v1212_v33 = vpop.permute.xlu1 %1211 }
 0x1f6   : > { %v1310_v0 = vsel %vm984_vm5, %v1114_v56, %v1212_v33  ;;  %4011 = vmatprep.mubr.msk.f32.mxu1 %vm331_vm0, %v1212_v33 }
 0x1f7   : > { %1633 = vmatprep.mubr.f32.mxu0 %v1310_v0 }
 0x1f8   : > { %1634 = vmatmul.mubr.f32.gmra.mrb[60].mxu0 %v1278_v24 }
 0x1fd   : > { %v1214_v59 = vpop.permute.xlu1 %1213 }
 0x1fe   : > { %4012 = vmatmul.mubr.msk.f32.gmra.mrb[30].mxu1 %vm331_vm0, %v1214_v59  ;;  %v1311_v3 = vsel %vm984_vm5, %v1116_v47, %v1214_v59 }
 0x1ff   : > { %1638 = vmatprep.mubr.f32.mxu0 %v1311_v3 }
 0x200   : > { %1639 = vmatmul.mubr.f32.gmra.mrb[62].mxu0 %v1279_v29 }
 0x209   : > { %v1485_v54 = vpop.f32.mrb[0].mxu0  ;;  %v3968_v12 = vpop.f32.mrb[0].mxu1 }
 0x20a   : > { %v1486_v4 = vadd.f32 %v5627_v53, %v1485_v54  ;;  %v1487_v19 = vpop.f32.mrb[1].mxu0  ;;  %v1710_v11 = vpop.f32.mrb[1].mxu1 }
 0x20c   : > { %v1711_v22 = vadd.f32 %v1710_v11, %v1486_v4 }
 0x20d   : > { %v1490_v35 = vpop.f32.mrb[2].mxu0 }
 0x20e   : > { %vm1869_vm7 = vcmp.ge.f32.partialorder %v1711_v22, 0.0  ;;  %v1901_v57 = vmul.f32 0.01, %v1711_v22  ;;  %v1491_v42 = vadd.f32 %v5627_v53, %v1490_v35  ;;  %v1492_v52 = vpop.f32.mrb[3].mxu0 }
 0x210   : > { %v1933_v14 = vsel %vm1869_vm7, %v1711_v22, %v1901_v57  ;;  %v1716_v28 = vadd.f32 %v3968_v12, %v1491_v42 }
 0x211   : > { %2009 = vst.msk [vmem:[#allocation3 + $0x19] sm:$0xff] %vm331_vm0, %v1933_v14  ;;  %v1495_v61 = vpop.f32.mrb[4].mxu0  ;;  %v3971_v62 = vpop.f32.mrb[2].mxu1 }
 0x212   : > { %vm1870_vm8 = vcmp.ge.f32.partialorder %v1716_v28, 0.0  ;;  %v1902_v10 = vmul.f32 0.01, %v1716_v28  ;;  %v1496_v27 = vadd.f32 %v5627_v53, %v1495_v61  ;;  %v1497_v49 = vpop.f32.mrb[5].mxu0  ;;  %v1720_v36 = vpop.f32.mrb[3].mxu1 }
 0x214   : > { %v1934_v60 = vsel %vm1870_vm8, %v1716_v28, %v1902_v10  ;;  %v1721_v37 = vadd.f32 %v1720_v36, %v1496_v27 }
 0x215   : > { %2010 = vst.msk [vmem:[#allocation3 + $0x21] sm:$0xff] %vm331_vm0, %v1934_v60  ;;  %v1500_v1 = vpop.f32.mrb[6].mxu0 }
 0x216   : > { %vm1871_vm9 = vcmp.ge.f32.partialorder %v1721_v37, 0.0  ;;  %v1903_v34 = vmul.f32 0.01, %v1721_v37  ;;  %v1501_v46 = vadd.f32 %v5627_v53, %v1500_v1  ;;  %v1502_v41 = vpop.f32.mrb[7].mxu0 }
 0x218   : > { %v1935_v18 = vsel %vm1871_vm9, %v1721_v37, %v1903_v34  ;;  %v1726_v6 = vadd.f32 %v3971_v62, %v1501_v46  ;;  %v2044_v31 = vld [vmem:[#allocation3 + $0x18] sm:$0xff] }
 0x219   : > { %2011 = vst.msk [vmem:[#allocation3 + $0x31] sm:$0xff] %vm331_vm0, %v1935_v18  ;;  %v1505_v26 = vpop.f32.mrb[8].mxu0  ;;  %v3974_v45 = vpop.f32.mrb[4].mxu1  ;;  %v2154_v20 = vrot.slane %v2044_v31, 1  ;;  %v2352_v21 = vrot.slane %v2044_v31, 2 }
 0x21a   : > { %vm1872_vm10 = vcmp.ge.f32.partialorder %v1726_v6, 0.0  ;;  %v1904_v58 = vmul.f32 0.01, %v1726_v6  ;;  %v1506_v23 = vadd.f32 %v5627_v53, %v1505_v26  ;;  %v1730_v25 = vpop.f32.mrb[5].mxu1  ;;  %v1507_v2 = vpop.f32.mrb[9].mxu0 }
 0x21c   : > { %v1936_v13 = vsel %vm1872_vm10, %v1726_v6, %v1904_v58  ;;  %v1731_v16 = vadd.f32 %v1730_v25, %v1506_v23  ;;  %v2045_v8 = vld [vmem:[#allocation3 + $0x20] sm:$0xff]  ;;  %v2046_v50 = vld [vmem:[#allocation3 + $0x28] sm:$0x3] }
 0x21d   : > { %2012 = vst.msk [vmem:[#allocation3 + $0x39] sm:$0xff] %vm331_vm0, %v1936_v13  ;;  %v1510_v9 = vpop.f32.mrb[10].mxu0  ;;  %v2155_v55 = vrot.slane %v2045_v8, 1  ;;  %v2157_v17 = vrot.slane %v2046_v50, 1  ;;  %v2353_v38 = vrot.slane %v2045_v8, 2  ;;  %v2355_v39 = vrot.slane %v2046_v50, 2 }
 0x21e   : > { %vm1873_vm11 = vcmp.ge.f32.partialorder %v1731_v16, 0.0  ;;  %v1905_v32 = vmul.f32 0.01, %v1731_v16  ;;  %v1511_v43 = vadd.f32 %v5627_v53, %v1510_v9  ;;  %v1512_v7 = vpop.f32.mrb[11].mxu0 }
 0x21f   : > { %v2156_v44 = vsel %vm550_vm3, %v2154_v20, %v2155_v55  ;;  %v2158_v63 = vsel %vm550_vm3, %v2155_v55, %v2157_v17  ;;  %v2354_v56 = vsel %vm749_vm4, %v2352_v21, %v2353_v38  ;;  %v2356_v33 = vsel %vm749_vm4, %v2353_v38, %v2355_v39 }
 0x220   : > { %v1937_v40 = vsel %vm1873_vm11, %v1731_v16, %v1905_v32  ;;  %v1736_v5 = vadd.f32 %v3974_v45, %v1511_v43  ;;  %v4303_v51 = vpack.i.bf16 %v2158_v63, %v2156_v44  ;;  %v2047_v3 = vld [vmem:[#allocation3 + $0x30] sm:$0xff]  ;;  %v4308_v12 = vpack.i.bf16 %v2356_v33, %v2354_v56 }
 0x221   : > { %2013 = vst.msk [vmem:[#allocation3 + $0x49] sm:$0xff] %vm331_vm0, %v1937_v40  ;;  %v1515_v48 = vpop.f32.mrb[12].mxu0  ;;  %v3977_v30 = vpop.f32.mrb[6].mxu1  ;;  %v2159_v22 = vrot.slane %v2047_v3, 1  ;;  %v2357_v60 = vrot.slane %v2047_v3, 2 }
 0x222   : > { %vm1874_vm12 = vcmp.ge.f32.partialorder %v1736_v5, 0.0  ;;  %v1906_v0 = vmul.f32 0.01, %v1736_v5  ;;  %v1516_v24 = vadd.f32 %v5627_v53, %v1515_v48  ;;  %v1740_v47 = vpop.f32.mrb[7].mxu1  ;;  %4304 = vrot.lane.b32.xlu0 %v4303_v51, %s4439_s26  ;;  %v1517_v59 = vpop.f32.mrb[13].mxu0 }
 0x224   : > { %v1938_v29 = vsel %vm1874_vm12, %v1736_v5, %v1906_v0  ;;  %v1741_v54 = vadd.f32 %v1740_v47, %v1516_v24  ;;  %v2048_v4 = vld [vmem:[#allocation3 + $0x38] sm:$0xff]  ;;  %v2049_v19 = vld [vmem:[#allocation3 + $0x40] sm:$0x3] }
 0x225   : > { %2014 = vst.msk [vmem:[#allocation3 + $0x51] sm:$0xff] %vm331_vm0, %v1938_v29  ;;  %v1520_v11 = vpop.f32.mrb[14].mxu0  ;;  %v2160_v35 = vrot.slane %v2048_v4, 1  ;;  %v2162_v57 = vrot.slane %v2049_v19, 1  ;;  %v2358_v61 = vrot.slane %v2048_v4, 2  ;;  %v2360_v6 = vrot.slane %v2049_v19, 2 }
 0x226   : > { %vm1875_vm13 = vcmp.ge.f32.partialorder %v1741_v54, 0.0  ;;  %v1907_v42 = vmul.f32 0.01, %v1741_v54  ;;  %v1521_v52 = vadd.f32 %v5627_v53, %v1520_v11  ;;  %4309 = vrot.lane.b32.xlu0 %v4308_v12, %s4440_s27  ;;  %v1522_v14 = vpop.f32.mrb[15].mxu0 }
 0x227   : > { %v2161_v28 = vsel %vm550_vm3, %v2159_v22, %v2160_v35  ;;  %v2163_v36 = vsel %vm550_vm3, %v2160_v35, %v2162_v57  ;;  %v2359_v18 = vsel %vm749_vm4, %v2357_v60, %v2358_v61  ;;  %v2361_v20 = vsel %vm749_vm4, %v2358_v61, %v2360_v6 }
 0x228   : > { %v1939_v62 = vsel %vm1875_vm13, %v1741_v54, %v1907_v42  ;;  %v1746_v10 = vadd.f32 %v3977_v30, %v1521_v52  ;;  %2247 = vrot.lane.b32.xlu1 %v2161_v28, %s4439_s26  ;;  %v2050_v41 = vld [vmem:[#allocation3 + $0x48] sm:$0xff] }
 0x229   : > { %2015 = vst.msk [vmem:[#allocation3 + $0x61] sm:$0xff] %vm331_vm0, %v1939_v62  ;;  %v1525_v27 = vpop.f32.mrb[16].mxu0  ;;  %v3980_v49 = vpop.f32.mrb[8].mxu1  ;;  %v2164_v25 = vrot.slane %v2050_v41, 1  ;;  %v2362_v39 = vrot.slane %v2050_v41, 2 }
 0x22a   : > { %vm1876_vm14 = vcmp.ge.f32.partialorder %v1746_v10, 0.0  ;;  %v1908_v37 = vmul.f32 0.01, %v1746_v10  ;;  %v1526_v1 = vadd.f32 %v5627_v53, %v1525_v27  ;;  %v1527_v34 = vpop.f32.mrb[17].mxu0  ;;  %2249 = vrot.lane.b32.xlu0 %v2163_v36, %s4439_s26  ;;  %v1750_v46 = vpop.f32.mrb[9].mxu1 }
 0x22c   : > { %v1940_v26 = vsel %vm1876_vm14, %v1746_v10, %v1908_v37  ;;  %v1751_v45 = vadd.f32 %v1750_v46, %v1526_v1  ;;  %2445 = vrot.lane.b32.xlu1 %v2359_v18, %s4440_s27  ;;  %v2051_v31 = vld [vmem:[#allocation3 + $0x50] sm:$0xff]  ;;  %v2052_v58 = vld [vmem:[#allocation3 + $0x58] sm:$0x3] }
 0x22d   : > { %2016 = vst.msk [vmem:[#allocation3 + $0x69] sm:$0xff] %vm331_vm0, %v1940_v26  ;;  %v1530_v23 = vpop.f32.mrb[18].mxu0  ;;  %v2165_v2 = vrot.slane %v2051_v31, 1  ;;  %v2167_v9 = vrot.slane %v2052_v58, 1  ;;  %v2363_v55 = vrot.slane %v2051_v31, 2  ;;  %v2365_v7 = vrot.slane %v2052_v58, 2 }
 0x22e   : > { %vm1877_vm15 = vcmp.ge.f32.partialorder %v1751_v45, 0.0  ;;  %v1909_v13 = vmul.f32 0.01, %v1751_v45  ;;  %v1531_v16 = vadd.f32 %v5627_v53, %v1530_v23  ;;  %v1532_v8 = vpop.f32.mrb[19].mxu0 }
 0x22f   : > { %v2166_v50 = vsel %vm550_vm3, %v2164_v25, %v2165_v2  ;;  %v2168_v44 = vsel %vm550_vm3, %v2165_v2, %v2167_v9  ;;  %v2364_v63 = vsel %vm749_vm4, %v2362_v39, %v2363_v55  ;;  %v2366_v47 = vsel %vm749_vm4, %v2363_v55, %v2365_v7 }
 0x230   : > { %v1941_v17 = vsel %vm1877_vm15, %v1751_v45, %v1909_v13  ;;  %v1756_v38 = vadd.f32 %v3980_v49, %v1531_v16  ;;  %2251 = vrot.lane.b32.xlu0 %v2166_v50, %s4439_s26  ;;  %2447 = vrot.lane.b32.xlu1 %v2361_v20, %s4440_s27  ;;  %v2053_v43 = vld [vmem:[#allocation3 + $0x60] sm:$0xff] }
 0x231   : > { %2017 = vst.msk [vmem:[#allocation3 + $0x79] sm:$0xff] %vm331_vm0, %v1941_v17  ;;  %v2169_v33 = vrot.slane %v2053_v43, 1  ;;  %v2367_v22 = vrot.slane %v2053_v43, 2 }
 0x232   : > { %vm1878_vm1 = vcmp.ge.f32.partialorder %v1756_v38, 0.0  ;;  %v1910_v32 = vmul.f32 0.01, %v1756_v38 }
 0x234   : > { %v1942_v21 = vsel %vm1878_vm1, %v1756_v38, %v1910_v32  ;;  %v1535_v40 = vpop.f32.mrb[20].mxu0  ;;  %2253 = vrot.lane.b32.xlu0 %v2168_v44, %s4439_s26  ;;  %2449 = vrot.lane.b32.xlu1 %v2364_v63, %s4440_s27  ;;  %v2054_v5 = vld [vmem:[#allocation3 + $0x68] sm:$0xff]  ;;  %v2055_v51 = vld [vmem:[#allocation3 + $0x70] sm:$0x3] }
 0x235   : > { %2018 = vst.msk [vmem:[#allocation3 + $0x81] sm:$0xff] %vm331_vm0, %v1942_v21  ;;  %v1536_v48 = vadd.f32 %v5627_v53, %v1535_v40  ;;  %v1537_v30 = vpop.f32.mrb[21].mxu0  ;;  %v3983_v56 = vpop.f32.mrb[10].mxu1  ;;  %v2170_v0 = vrot.slane %v2054_v5, 1  ;;  %v2172_v29 = vrot.slane %v2055_v51, 1  ;;  %v2368_v54 = vrot.slane %v2054_v5, 2 }
 0x236   : > { %v1760_v24 = vpop.f32.mrb[11].mxu1  ;;  %v2370_v57 = vrot.slane %v2055_v51, 2 }
 0x237   : > { %v1761_v59 = vadd.f32 %v1760_v24, %v1536_v48  ;;  %v2171_v3 = vsel %vm550_vm3, %v2169_v33, %v2170_v0  ;;  %v2173_v14 = vsel %vm550_vm3, %v2170_v0, %v2172_v29  ;;  %v2369_v28 = vsel %vm749_vm4, %v2367_v22, %v2368_v54 }
 0x238   : > { %v1540_v12 = vpop.f32.mrb[22].mxu0  ;;  %2255 = vrot.lane.b32.xlu0 %v2171_v3, %s4439_s26  ;;  %2451 = vrot.lane.b32.xlu1 %v2366_v47, %s4440_s27  ;;  %v2056_v35 = vld [vmem:[#allocation3 + $0x78] sm:$0xff]  ;;  %v2371_v36 = vsel %vm749_vm4, %v2368_v54, %v2370_v57 }
 0x239   : > { %vm1879_vm7 = vcmp.ge.f32.partialorder %v1761_v59, 0.0  ;;  %v1911_v4 = vmul.f32 0.01, %v1761_v59  ;;  %v1541_v19 = vadd.f32 %v5627_v53, %v1540_v12  ;;  %v1542_v11 = vpop.f32.mrb[23].mxu0  ;;  %v2174_v27 = vrot.slane %v2056_v35, 1 }
 0x23a   : > { %v2372_v41 = vrot.slane %v2056_v35, 2 }
 0x23b   : > { %v1943_v42 = vsel %vm1879_vm7, %v1761_v59, %v1911_v4  ;;  %v1766_v52 = vadd.f32 %v3983_v56, %v1541_v19 }
 0x23c   : > { %2019 = vst.msk [vmem:[#allocation3 + $0x91] sm:$0xff] %vm331_vm0, %v1943_v42  ;;  %2257 = vrot.lane.b32.xlu0 %v2173_v14, %s4439_s26  ;;  %2453 = vrot.lane.b32.xlu1 %v2369_v28, %s4440_s27  ;;  %v2057_v61 = vld [vmem:[#allocation3 + $0x80] sm:$0xff]  ;;  %v2058_v62 = vld [vmem:[#allocation3 + $0x88] sm:$0x3] }
 0x23d   : > { %vm1880_vm8 = vcmp.ge.f32.partialorder %v1766_v52, 0.0  ;;  %v1912_v10 = vmul.f32 0.01, %v1766_v52  ;;  %v2175_v49 = vrot.slane %v2057_v61, 1  ;;  %v2177_v1 = vrot.slane %v2058_v62, 1 }
 0x23e   : > { %v2373_v34 = vrot.slane %v2057_v61, 2  ;;  %v2375_v45 = vrot.slane %v2058_v62, 2 }
 0x23f   : > { %v1944_v60 = vsel %vm1880_vm8, %v1766_v52, %v1912_v10  ;;  %v2176_v37 = vsel %vm550_vm3, %v2174_v27, %v2175_v49  ;;  %v2178_v6 = vsel %vm550_vm3, %v2175_v49, %v2177_v1 }
 0x240   : > { %2020 = vst.msk [vmem:[#allocation3 + $0x99] sm:$0xff] %vm331_vm0, %v1944_v60  ;;  %2259 = vrot.lane.b32.xlu0 %v2176_v37, %s4439_s26  ;;  %2455 = vrot.lane.b32.xlu1 %v2371_v36, %s4440_s27  ;;  %v2374_v26 = vsel %vm749_vm4, %v2372_v41, %v2373_v34  ;;  %v2376_v13 = vsel %vm749_vm4, %v2373_v34, %v2375_v45 }
 0x241   : > { %v1545_v46 = vpop.f32.mrb[24].mxu0 }
 0x242   : > { %v1547_v18 = vpop.f32.mrb[25].mxu0  ;;  %v1546_v31 = vadd.f32 %v5627_v53, %v1545_v46 }
 0x243   : > { %v2059_v23 = vld [vmem:[#allocation3 + $0x90] sm:$0xff] }
 0x244   : > { %2261 = vrot.lane.b32.xlu0 %v2178_v6, %s4439_s26  ;;  %2457 = vrot.lane.b32.xlu1 %v2374_v26, %s4440_s27  ;;  %v2179_v20 = vrot.slane %v2059_v23, 1  ;;  %v2377_v32 = vrot.slane %v2059_v23, 2 }
 0x245   : > { %v3986_v58 = vpop.f32.mrb[12].mxu1 }
 0x246   : > { %v1770_v25 = vpop.f32.mrb[13].mxu1 }
 0x247   : > { %v1771_v2 = vadd.f32 %v1770_v25, %v1546_v31  ;;  %v2060_v16 = vld [vmem:[#allocation3 + $0x98] sm:$0xff]  ;;  %v2061_v8 = vld [vmem:[#allocation3 + $0xa0] sm:$0x3] }
 0x248   : > { %v1550_v50 = vpop.f32.mrb[26].mxu0  ;;  %2459 = vrot.lane.b32.xlu1 %v2376_v13, %s4440_s27  ;;  %v2180_v9 = vrot.slane %v2060_v16, 1  ;;  %v2378_v55 = vrot.slane %v2060_v16, 2  ;;  %v2182_v7 = vrot.slane %v2061_v8, 1  ;;  %v2380_v40 = vrot.slane %v2061_v8, 2 }
 0x249   : > { %vm1881_vm9 = vcmp.ge.f32.partialorder %v1771_v2, 0.0  ;;  %v1913_v17 = vmul.f32 0.01, %v1771_v2  ;;  %v1551_v38 = vadd.f32 %v5627_v53, %v1550_v50  ;;  %v1552_v39 = vpop.f32.mrb[27].mxu0 }
 0x24a   : > { %v2181_v43 = vsel %vm550_vm3, %v2179_v20, %v2180_v9  ;;  %v2379_v21 = vsel %vm749_vm4, %v2377_v32, %v2378_v55  ;;  %v2183_v51 = vsel %vm550_vm3, %v2180_v9, %v2182_v7  ;;  %v2381_v30 = vsel %vm749_vm4, %v2378_v55, %v2380_v40 }
 0x24b   : > { %v1945_v44 = vsel %vm1881_vm9, %v1771_v2, %v1913_v17  ;;  %v1776_v63 = vadd.f32 %v3986_v58, %v1551_v38  ;;  %2263 = vrot.lane.b32.xlu0 %v2181_v43, %s4439_s26 }
 0x24c   : > { %2021 = vst.msk [vmem:[#allocation3 + $0xa9] sm:$0xff] %vm331_vm0, %v1945_v44  ;;  %2461 = vrot.lane.b32.xlu1 %v2379_v21, %s4440_s27 }
 0x24d   : > { %vm1882_vm10 = vcmp.ge.f32.partialorder %v1776_v63, 0.0  ;;  %v1914_v5 = vmul.f32 0.01, %v1776_v63 }
 0x24f   : > { %v1946_v48 = vsel %vm1882_vm10, %v1776_v63, %v1914_v5  ;;  %2265 = vrot.lane.b32.xlu0 %v2183_v51, %s4439_s26 }
 0x250   : > { %2022 = vst.msk [vmem:[#allocation3 + $0xb1] sm:$0xff] %vm331_vm0, %v1946_v48  ;;  %v1555_v56 = vpop.f32.mrb[28].mxu0  ;;  %2463 = vrot.lane.b32.xlu1 %v2381_v30, %s4440_s27 }
 0x251   : > { %v1556_v33 = vadd.f32 %v5627_v53, %v1555_v56  ;;  %v1557_v0 = vpop.f32.mrb[29].mxu0  ;;  %v3989_v24 = vpop.f32.mrb[14].mxu1 }
 0x252   : > { %v1780_v47 = vpop.f32.mrb[15].mxu1 }
 0x253   : > { %v1781_v59 = vadd.f32 %v1780_v47, %v1556_v33  ;;  %v5705_v4 = vld [vmem:[#allocation3 + $0xa8] sm:$0xff] }
 0x254   : > { %v1560_v3 = vpop.f32.mrb[30].mxu0  ;;  %v2184_v57 = vrot.slane %v5705_v4, 1  ;;  %v2382_v52 = vrot.slane %v5705_v4, 2 }
 0x255   : > { %vm1883_vm11 = vcmp.ge.f32.partialorder %v1781_v59, 0.0  ;;  %v1915_v29 = vmul.f32 0.01, %v1781_v59  ;;  %v1561_v54 = vadd.f32 %v5627_v53, %v1560_v3  ;;  %v1562_v12 = vpop.f32.mrb[31].mxu0 }
 0x257   : > { %v1947_v19 = vsel %vm1883_vm11, %v1781_v59, %v1915_v29  ;;  %v1786_v11 = vadd.f32 %v3989_v24, %v1561_v54  ;;  %v5707_v22 = vld [vmem:[#allocation3 + $0xb0] sm:$0xff]  ;;  %v2064_v35 = vld [vmem:[#allocation3 + $0xb8] sm:$0x3] }
 0x258   : > { %2023 = vst.msk [vmem:[#allocation3 + $0xc1] sm:$0xff] %vm331_vm0, %v1947_v19  ;;  %v2185_v42 = vrot.slane %v5707_v22, 1  ;;  %v2383_v14 = vrot.slane %v5707_v22, 2  ;;  %v2187_v10 = vrot.slane %v2064_v35, 1  ;;  %v2385_v27 = vrot.slane %v2064_v35, 2 }
 0x259   : > { %vm1884_vm12 = vcmp.ge.f32.partialorder %v1786_v11, 0.0  ;;  %v1916_v28 = vmul.f32 0.01, %v1786_v11 }
 0x25a   : > { %v2186_v61 = vsel %vm550_vm3, %v2184_v57, %v2185_v42  ;;  %v2384_v62 = vsel %vm749_vm4, %v2382_v52, %v2383_v14  ;;  %v2188_v37 = vsel %vm550_vm3, %v2185_v42, %v2187_v10  ;;  %v2386_v1 = vsel %vm749_vm4, %v2383_v14, %v2385_v27 }
 0x25b   : > { %v1948_v49 = vsel %vm1884_vm12, %v1786_v11, %v1916_v28  ;;  %2267 = vrot.lane.b32.xlu0 %v2186_v61, %s4439_s26  ;;  %2465 = vrot.lane.b32.xlu1 %v2384_v62, %s4440_s27  ;;  %v1565_v36 = vpop.f32.mrb[32].mxu0 }
 0x25c   : > { %2024 = vst.msk [vmem:[#allocation3 + $0xc9] sm:$0xff] %vm331_vm0, %v1948_v49  ;;  %v1567_v60 = vpop.f32.mrb[33].mxu0  ;;  %v1566_v46 = vadd.f32 %v5627_v53, %v1565_v36 }
 0x25f   : > { %2269 = vrot.lane.b32.xlu0 %v2188_v37, %s4439_s26  ;;  %2467 = vrot.lane.b32.xlu1 %v2386_v1, %s4440_s27  ;;  %v5723_v34 = vld [vmem:[#allocation3 + $0xc0] sm:$0xff] }
 0x260   : > { %v2189_v31 = vrot.slane %v5723_v34, 1  ;;  %v2387_v13 = vrot.slane %v5723_v34, 2 }
 0x261   : > { %v3992_v41 = vpop.f32.mrb[16].mxu1 }
 0x262   : > { %v1790_v18 = vpop.f32.mrb[17].mxu1 }
 0x263   : > { %v1791_v6 = vadd.f32 %v1790_v18, %v1566_v46  ;;  %v1570_v26 = vpop.f32.mrb[34].mxu0  ;;  %v5726_v45 = vld [vmem:[#allocation3 + $0xc8] sm:$0xff]  ;;  %v2067_v58 = vld [vmem:[#allocation3 + $0xd0] sm:$0x3] }
 0x264   : > { %v1571_v23 = vadd.f32 %v5627_v53, %v1570_v26  ;;  %v1572_v25 = vpop.f32.mrb[35].mxu0  ;;  %v2190_v2 = vrot.slane %v5726_v45, 1  ;;  %v2388_v16 = vrot.slane %v5726_v45, 2  ;;  %v2192_v50 = vrot.slane %v2067_v58, 1 }
 0x265   : > { %vm1885_vm13 = vcmp.ge.f32.partialorder %v1791_v6, 0.0  ;;  %v1917_v8 = vmul.f32 0.01, %v1791_v6  ;;  %v2390_v17 = vrot.slane %v2067_v58, 2 }
 0x266   : > { %v1796_v20 = vadd.f32 %v3992_v41, %v1571_v23  ;;  %v2191_v9 = vsel %vm550_vm3, %v2189_v31, %v2190_v2  ;;  %v2389_v55 = vsel %vm749_vm4, %v2387_v13, %v2388_v16  ;;  %v2193_v40 = vsel %vm550_vm3, %v2190_v2, %v2192_v50 }
 0x267   : > { %v1949_v38 = vsel %vm1885_vm13, %v1791_v6, %v1917_v8  ;;  %2271 = vrot.lane.b32.xlu0 %v2191_v9, %s4439_s26  ;;  %2469 = vrot.lane.b32.xlu1 %v2389_v55, %s4440_s27  ;;  %v1575_v39 = vpop.f32.mrb[36].mxu0  ;;  %v2391_v5 = vsel %vm749_vm4, %v2388_v16, %v2390_v17 }
 0x268   : > { %2025 = vst.msk [vmem:[#allocation3 + $0xd9] sm:$0xff] %vm331_vm0, %v1949_v38  ;;  %vm1886_vm14 = vcmp.ge.f32.partialorder %v1796_v20, 0.0  ;;  %v1918_v32 = vmul.f32 0.01, %v1796_v20  ;;  %v1576_v43 = vadd.f32 %v5627_v53, %v1575_v39  ;;  %v1577_v7 = vpop.f32.mrb[37].mxu0 }
 0x269   : > { %v3995_v44 = vpop.f32.mrb[18].mxu1 }
 0x26a   : > { %v1950_v63 = vsel %vm1886_vm14, %v1796_v20, %v1918_v32  ;;  %v1800_v21 = vpop.f32.mrb[19].mxu1 }
 0x26b   : > { %2026 = vst.msk [vmem:[#allocation3 + $0xe1] sm:$0xff] %vm331_vm0, %v1950_v63  ;;  %v1801_v51 = vadd.f32 %v1800_v21, %v1576_v43  ;;  %2273 = vrot.lane.b32.xlu0 %v2193_v40, %s4439_s26  ;;  %2471 = vrot.lane.b32.xlu1 %v2391_v5, %s4440_s27  ;;  %v1580_v48 = vpop.f32.mrb[38].mxu0 }
 0x26c   : > { %v1581_v30 = vadd.f32 %v5627_v53, %v1580_v48  ;;  %v1582_v56 = vpop.f32.mrb[39].mxu0 }
 0x26d   : > { %vm1887_vm15 = vcmp.ge.f32.partialorder %v1801_v51, 0.0  ;;  %v1919_v33 = vmul.f32 0.01, %v1801_v51 }
 0x26e   : > { %v1806_v0 = vadd.f32 %v3995_v44, %v1581_v30 }
 0x26f   : > { %v1951_v24 = vsel %vm1887_vm15, %v1801_v51, %v1919_v33  ;;  %v1585_v47 = vpop.f32.mrb[40].mxu0  ;;  %v5745_v59 = vld [vmem:[#allocation3 + $0xd8] sm:$0xff] }
 0x270   : > { %2027 = vst.msk [vmem:[#allocation3 + $0xf1] sm:$0xff] %vm331_vm0, %v1951_v24  ;;  %vm1888_vm1 = vcmp.ge.f32.partialorder %v1806_v0, 0.0  ;;  %v1920_v3 = vmul.f32 0.01, %v1806_v0  ;;  %v1586_v29 = vadd.f32 %v5627_v53, %v1585_v47  ;;  %v1587_v54 = vpop.f32.mrb[41].mxu0  ;;  %v2194_v57 = vrot.slane %v5745_v59, 1 }
 0x271   : > { %v3998_v12 = vpop.f32.mrb[20].mxu1  ;;  %v2392_v61 = vrot.slane %v5745_v59, 2 }
 0x272   : > { %v1952_v19 = vsel %vm1888_vm1, %v1806_v0, %v1920_v3  ;;  %v1810_v11 = vpop.f32.mrb[21].mxu1  ;;  %v5749_v35 = vld [vmem:[#allocation3 + $0xe0] sm:$0xff]  ;;  %v2070_v42 = vld [vmem:[#allocation3 + $0xe8] sm:$0x3] }
 0x273   : > { %2028 = vst.msk [vmem:[#allocation3 + $0xf9] sm:$0xff] %vm331_vm0, %v1952_v19  ;;  %v1811_v52 = vadd.f32 %v1810_v11, %v1586_v29  ;;  %v1590_v14 = vpop.f32.mrb[42].mxu0  ;;  %v2195_v28 = vrot.slane %v5749_v35, 1  ;;  %v2393_v62 = vrot.slane %v5749_v35, 2  ;;  %v2197_v49 = vrot.slane %v2070_v42, 1 }
 0x274   : > { %v1591_v10 = vadd.f32 %v5627_v53, %v1590_v14  ;;  %v1592_v27 = vpop.f32.mrb[43].mxu0  ;;  %v2395_v58 = vrot.slane %v2070_v42, 2 }
 0x275   : > { %vm1889_vm7 = vcmp.ge.f32.partialorder %v1811_v52, 0.0  ;;  %v1921_v36 = vmul.f32 0.01, %v1811_v52  ;;  %v2196_v60 = vsel %vm550_vm3, %v2194_v57, %v2195_v28  ;;  %v2394_v37 = vsel %vm749_vm4, %v2392_v61, %v2393_v62 }
 0x276   : > { %v1816_v1 = vadd.f32 %v3998_v12, %v1591_v10  ;;  %2275 = vrot.lane.b32.xlu0 %v2196_v60, %s4439_s26  ;;  %2473 = vrot.lane.b32.xlu1 %v2394_v37, %s4440_s27  ;;  %v2198_v25 = vsel %vm550_vm3, %v2195_v28, %v2197_v49  ;;  %v2396_v39 = vsel %vm749_vm4, %v2393_v62, %v2395_v58 }
 0x277   : > { %v1953_v46 = vsel %vm1889_vm7, %v1811_v52, %v1921_v36  ;;  %v1595_v41 = vpop.f32.mrb[44].mxu0  ;;  %v5763_v31 = vld [vmem:[#allocation3 + $0xf0] sm:$0xff] }
 0x278   : > { %2029 = vst.msk [vmem:[#allocation3 + $0x109] sm:$0xff] %vm331_vm0, %v1953_v46  ;;  %vm1890_vm8 = vcmp.ge.f32.partialorder %v1816_v1, 0.0  ;;  %v1922_v18 = vmul.f32 0.01, %v1816_v1  ;;  %v1596_v6 = vadd.f32 %v5627_v53, %v1595_v41  ;;  %v1597_v26 = vpop.f32.mrb[45].mxu0  ;;  %v2199_v9 = vrot.slane %v5763_v31, 1 }
 0x279   : > { %v4001_v23 = vpop.f32.mrb[22].mxu1  ;;  %v2397_v40 = vrot.slane %v5763_v31, 2  ;;  %v2908_v26 = vld [vmem:[%s6998_s3 + $0x8] sm:$0xff] }
 0x27a   : > { %v1954_v2 = vsel %vm1890_vm8, %v1816_v1, %v1922_v18  ;;  %v1820_v13 = vpop.f32.mrb[23].mxu1  ;;  %2277 = vrot.lane.b32.xlu1 %v2198_v25, %s4439_s26  ;;  %v5767_v16 = vld [vmem:[#allocation3 + $0xf8] sm:$0xff]  ;;  %v2073_v8 = vld [vmem:[#allocation3 + $0x100] sm:$0x3]  ;;  %v2910_v25 = vld [vmem:[%s6998_s3 + $0x18] sm:$0xff] }
 0x27b   : > { %2030 = vst.msk [vmem:[#allocation3 + $0x111] sm:$0xff] %vm331_vm0, %v1954_v2  ;;  %v1821_v50 = vadd.f32 %v1820_v13, %v1596_v6  ;;  %v1600_v20 = vpop.f32.mrb[46].mxu0  ;;  %v2200_v55 = vrot.slane %v5767_v16, 1  ;;  %v2398_v32 = vrot.slane %v5767_v16, 2  ;;  %v2202_v44 = vrot.slane %v2073_v8, 1  ;;  %v2907_v6 = vld [vmem:[%s6998_s3] sm:$0xff] }
 0x27c   : > { %v1601_v17 = vadd.f32 %v5627_v53, %v1600_v20  ;;  %v1602_v38 = vpop.f32.mrb[47].mxu0  ;;  %v2400_v56 = vrot.slane %v2073_v8, 2  ;;  %v4127_v58 = vpack.c.bf16 %v2908_v26, %v2907_v6  ;;  %v2911_v13 = vld [vmem:[%s6998_s3 + $0x20] sm:$0xff]  ;;  %v2912_v8 = vld [vmem:[%s6998_s3 + $0x28] sm:$0xff] }
 0x27d   : > { %vm1891_vm9 = vcmp.ge.f32.partialorder %v1821_v50, 0.0  ;;  %v1923_v43 = vmul.f32 0.01, %v1821_v50  ;;  %v2201_v7 = vsel %vm550_vm3, %v2199_v9, %v2200_v55  ;;  %v2399_v48 = vsel %vm749_vm4, %v2397_v40, %v2398_v32 }
 0x27e   : > { %v1826_v63 = vadd.f32 %v4001_v23, %v1601_v17  ;;  %2279 = vrot.lane.b32.xlu0 %v2201_v7, %s4439_s26  ;;  %2475 = vrot.lane.b32.xlu1 %v2396_v39, %s4440_s27  ;;  %v2203_v30 = vsel %vm550_vm3, %v2200_v55, %v2202_v44  ;;  %v2401_v29 = vsel %vm749_vm4, %v2398_v32, %v2400_v56  ;;  %v2909_v23 = vld [vmem:[%s6998_s3 + $0x10] sm:$0xff]  ;;  %v2914_v17 = vld [vmem:[%s6998_s3 + $0x38] sm:$0xff] }
 0x27f   : > { %v1955_v21 = vsel %vm1891_vm9, %v1821_v50, %v1923_v43  ;;  %v5780_v51 = vld [vmem:[#allocation3 + $0x108] sm:$0xff]  ;;  %4128 = vmatpush1.bf16.msra.mxu1 %v4127_v58  ;;  %v4130_v2 = vpack.c.bf16 %v2910_v25, %v2909_v23  ;;  %v4133_v20 = vpack.c.bf16 %v2912_v8, %v2911_v13  ;;  %v2913_v55 = vld [vmem:[%s6998_s3 + $0x30] sm:$0xff]  ;;  %v2915_v7 = vld [vmem:[%s6998_s3 + $0x40] sm:$0xff] }
 0x280   : > { %2031 = vst.msk [vmem:[#allocation3 + $0x121] sm:$0xff] %vm331_vm0, %v1955_v21  ;;  %vm1892_vm10 = vcmp.ge.f32.partialorder %v1826_v63, 0.0  ;;  %v1924_v5 = vmul.f32 0.01, %v1826_v63  ;;  %v2204_v47 = vrot.slane %v5780_v51, 1  ;;  %v2402_v11 = vrot.slane %v5780_v51, 2  ;;  %4129 = vmatprep.subr.bf16.mxu1 %v4441_v15 }
 0x281   : > { %v4136_v38 = vpack.c.bf16 %v2914_v17, %v2913_v55  ;;  %v2916_v44 = vld [vmem:[%s6998_s3 + $0x48] sm:$0xff] }
 0x282   : > { %v1956_v33 = vsel %vm1892_vm10, %v1826_v63, %v1924_v5  ;;  %2477 = vrot.lane.b32.xlu0 %v2399_v48, %s4440_s27  ;;  %2281 = vrot.lane.b32.xlu1 %v2203_v30, %s4439_s26  ;;  %v5786_v0 = vld [vmem:[#allocation3 + $0x110] sm:$0xff]  ;;  %v2076_v24 = vld [vmem:[#allocation3 + $0x118] sm:$0x3]  ;;  %v4139_v40 = vpack.c.bf16 %v2916_v44, %v2915_v7 }
 0x283   : > { %2032 = vst.msk [vmem:[#allocation3 + $0x129] sm:$0xff] %vm331_vm0, %v1956_v33  ;;  %v2205_v3 = vrot.slane %v5786_v0, 1  ;;  %v2207_v12 = vrot.slane %v2076_v24, 1  ;;  %v2403_v19 = vrot.slane %v5786_v0, 2  ;;  %v2405_v14 = vrot.slane %v2076_v24, 2  ;;  %4131 = vmatpush1.bf16.msra.mxu1 %v4130_v2 }
 0x284   : > { %4132 = vmatprep.subr.bf16.mxu1 %v4441_v15 }
 0x285   : > { %v2206_v54 = vsel %vm550_vm3, %v2204_v47, %v2205_v3  ;;  %v2208_v42 = vsel %vm550_vm3, %v2205_v3, %v2207_v12  ;;  %v2404_v52 = vsel %vm749_vm4, %v2402_v11, %v2403_v19  ;;  %v2406_v49 = vsel %vm749_vm4, %v2403_v19, %v2405_v14  ;;  %v2917_v3 = vld [vmem:[%s6998_s3 + $0x50] sm:$0xff]  ;;  %v2920_v14 = vld [vmem:[%s6998_s3 + $0x68] sm:$0xff] }
 0x286   : > { %2479 = vrot.lane.b32.xlu0 %v2401_v29, %s4440_s27  ;;  %2283 = vrot.lane.b32.xlu1 %v2206_v54, %s4439_s26  ;;  %v2918_v29 = vld [vmem:[%s6998_s3 + $0x58] sm:$0xff]  ;;  %v5865_v54 = vpop.permute.xlu0 %4294 }
 0x287   : > { %v5797_v57 = vld [vmem:[#allocation3 + $0x120] sm:$0xff]  ;;  %4134 = vmatpush1.bf16.msra.mxu1 %v4133_v20  ;;  %v4142_v19 = vpack.c.bf16 %v2918_v29, %v2917_v3  ;;  %v2923_v20 = vld [vmem:[%s6998_s3 + $0x80] sm:$0xff] }
 0x288   : > { %v2209_v62 = vrot.slane %v5797_v57, 1  ;;  %v2407_v37 = vrot.slane %v5797_v57, 2  ;;  %4135 = vmatprep.subr.bf16.mxu1 %v4441_v15  ;;  %v5929_v29 = vld [vmem:[%s6997_s2] ss:$0 sm:$0xff] }
 0x28a   : > { %2285 = vrot.lane.b32.xlu0 %v2208_v42, %s4439_s26  ;;  %2481 = vrot.lane.b32.xlu1 %v2404_v52, %s4440_s27  ;;  %v5803_v28 = vld [vmem:[#allocation3 + $0x128] sm:$0xff]  ;;  %v2079_v61 = vld [vmem:[#allocation3 + $0x130] sm:$0x3] }
 0x28b   : > { %v2210_v10 = vrot.slane %v5803_v28, 1  ;;  %v2408_v36 = vrot.slane %v5803_v28, 2  ;;  %v2212_v60 = vrot.slane %v2079_v61, 1  ;;  %v2410_v41 = vrot.slane %v2079_v61, 2  ;;  %4137 = vmatpush1.bf16.msra.mxu1 %v4136_v38  ;;  %v2919_v52 = vld [vmem:[%s6998_s3 + $0x60] sm:$0xff] }
 0x28c   : > { %4138 = vmatprep.subr.bf16.mxu1 %v4441_v15 }
 0x28d   : > { %v2211_v27 = vsel %vm550_vm3, %v2209_v62, %v2210_v10  ;;  %v2409_v1 = vsel %vm749_vm4, %v2407_v37, %v2408_v36  ;;  %v2213_v46 = vsel %vm550_vm3, %v2210_v10, %v2212_v60  ;;  %v2411_v18 = vsel %vm749_vm4, %v2408_v36, %v2410_v41  ;;  %v5877_v10 = vpop.permute.xlu0 %4299  ;;  %v2921_v60 = vld [vmem:[%s6998_s3 + $0x70] sm:$0xff]  ;;  %v2922_v37 = vld [vmem:[%s6998_s3 + $0x78] sm:$0xff] }
 0x28e   : > { %2287 = vrot.lane.b32.xlu0 %v2211_v27, %s4439_s26  ;;  %2483 = vrot.lane.b32.xlu1 %v2406_v49, %s4440_s27  ;;  %v4145_v62 = vpack.c.bf16 %v2920_v14, %v2919_v52  ;;  %v2928_v52 = vld [vmem:[%s6998_s3 + $0xa8] sm:$0xff] }
 0x28f   : > { %4140 = vmatpush1.bf16.msra.mxu1 %v4139_v40 }
 0x290   : > { %4141 = vmatprep.subr.bf16.mxu1 %v4441_v15 }
 0x292   : > { %2485 = vrot.lane.b32.xlu0 %v2409_v1, %s4440_s27  ;;  %2289 = vrot.lane.b32.xlu1 %v2213_v46, %s4439_s26 }
 0x293   : > { %4143 = vmatpush1.bf16.msra.mxu1 %v4142_v19 }
 0x294   : > { %4144 = vmatprep.subr.bf16.mxu1 %v4441_v15 }
 0x296   : > { %2487 = vrot.lane.b32.xlu0 %v2411_v18, %s4440_s27  ;;  %v4148_v18 = vpack.c.bf16 %v2922_v37, %v2921_v60 }
 0x297   : > { %4146 = vmatpush1.bf16.msra.mxu1 %v4145_v62 }
 0x298   : > { %4147 = vmatprep.subr.bf16.mxu1 %v4441_v15 }
 0x29a   : > { %v5856_v24 = vpop.permute.xlu1 %2247 }
 0x29b   : > { %4149 = vmatpush1.bf16.msra.mxu1 %v4148_v18 }
 0x29c   : > { %4150 = vmatprep.subr.bf16.mxu1 %v4441_v15 }
 0x29e   : > { %v5875_v61 = vpop.permute.xlu1 %2445 }
 0x29f   : > { %v1605_v50 = vpop.f32.mrb[48].mxu0 }
 0x2a0   : > { %v1607_v9 = vpop.f32.mrb[49].mxu0  ;;  %v1606_v39 = vadd.f32 %v5627_v53, %v1605_v50 }
 0x2a1   : > { %v2924_v9 = vld [vmem:[%s6998_s3 + $0x88] sm:$0xff] }
 0x2a2   : > { %v5893_v2 = vpop.permute.xlu1 %2447  ;;  %v4151_v44 = vpack.c.bf16 %v2924_v9, %v2923_v20 }
 0x2a4   : > { %4152 = vmatpush1.bf16.msra.mxu1 %v4151_v44 }
 0x2a5   : > { %v4004_v32 = vpop.f32.mrb[24].mxu1  ;;  %4153 = vmatprep.subr.bf16.mxu1 %v4441_v15 }
 0x2a6   : > { %v1830_v43 = vpop.f32.mrb[25].mxu1 }
 0x2a7   : > { %v1831_v63 = vadd.f32 %v1830_v43, %v1606_v39  ;;  %v1610_v21 = vpop.f32.mrb[50].mxu0 }
 0x2a8   : > { %v1611_v5 = vadd.f32 %v5627_v53, %v1610_v21  ;;  %v1612_v48 = vpop.f32.mrb[51].mxu0 }
 0x2a9   : > { %vm1893_vm11 = vcmp.ge.f32.partialorder %v1831_v63, 0.0  ;;  %v1925_v30 = vmul.f32 0.01, %v1831_v63  ;;  %v2925_v48 = vld [vmem:[%s6998_s3 + $0x90] sm:$0xff] }
 0x2aa   : > { %v1836_v56 = vadd.f32 %v4004_v32, %v1611_v5 }
 0x2ab   : > { %v1957_v33 = vsel %vm1893_vm11, %v1831_v63, %v1925_v30  ;;  %v2926_v30 = vld [vmem:[%s6998_s3 + $0x98] sm:$0xff] }
 0x2ac   : > { %2033 = vst.msk [vmem:[#allocation3 + $0x139] sm:$0xff] %vm331_vm0, %v1957_v33  ;;  %vm1894_vm12 = vcmp.ge.f32.partialorder %v1836_v56, 0.0  ;;  %v1926_v47 = vmul.f32 0.01, %v1836_v56 }
 0x2ae   : > { %v1958_v12 = vsel %vm1894_vm12, %v1836_v56, %v1926_v47  ;;  %v5919_v56 = vpop.permute.xlu1 %2449  ;;  %v4154_v47 = vpack.c.bf16 %v2926_v30, %v2925_v48 }
 0x2af   : > { %2034 = vst.msk [vmem:[#allocation3 + $0x141] sm:$0xff] %vm331_vm0, %v1958_v12  ;;  %v1615_v11 = vpop.f32.mrb[52].mxu0 }
 0x2b0   : > { %v1617_v42 = vpop.f32.mrb[53].mxu0  ;;  %v1616_v49 = vadd.f32 %v5627_v53, %v1615_v11  ;;  %4155 = vmatpush1.bf16.msra.mxu1 %v4154_v47 }
 0x2b1   : > { %v2927_v42 = vld [vmem:[%s6998_s3 + $0xa0] sm:$0xff]  ;;  %4156 = vmatprep.subr.bf16.mxu1 %v4441_v15 }
 0x2b2   : > { %v4157_v62 = vpack.c.bf16 %v2928_v52, %v2927_v42  ;;  %v5941_v60 = vpop.permute.xlu1 %2451 }
 0x2b3   : > { %v5879_v27 = vld [vmem:[#allocation3 + $0x138] sm:$0xff] }
 0x2b4   : > { %v2214_v25 = vrot.slane %v5879_v27, 1  ;;  %v2412_v7 = vrot.slane %v5879_v27, 2  ;;  %4158 = vmatpush1.bf16.msra.mxu1 %v4157_v62  ;;  %v2939_v62 = vld [vmem:[%s6998_s3 + $0x100] sm:$0xff] }
 0x2b5   : > { %v4007_v36 = vpop.f32.mrb[26].mxu1  ;;  %4159 = vmatprep.subr.bf16.mxu1 %v4441_v15 }
 0x2b6   : > { %v1840_v1 = vpop.f32.mrb[27].mxu1  ;;  %v5889_v46 = vld [vmem:[#allocation3 + $0x140] sm:$0xff]  ;;  %v2082_v41 = vld [vmem:[#allocation3 + $0x148] sm:$0x3] }
 0x2b7   : > { %v1841_v6 = vadd.f32 %v1840_v1, %v1616_v49  ;;  %v1620_v26 = vpop.f32.mrb[54].mxu0  ;;  %v2215_v58 = vrot.slane %v5889_v46, 1  ;;  %v2217_v23 = vrot.slane %v2082_v41, 1  ;;  %v2413_v50 = vrot.slane %v5889_v46, 2 }
 0x2b8   : > { %v1621_v13 = vadd.f32 %v5627_v53, %v1620_v26  ;;  %v1622_v8 = vpop.f32.mrb[55].mxu0  ;;  %v5906_v53 = vpop.permute.xlu0 %4304  ;;  %v2415_v5 = vrot.slane %v2082_v41, 2  ;;  %v2930_v26 = vld [vmem:[%s6998_s3 + $0xb8] sm:$0xff] }
 0x2b9   : > { %vm1895_vm13 = vcmp.ge.f32.partialorder %v1841_v6, 0.0  ;;  %v1927_v55 = vmul.f32 0.01, %v1841_v6  ;;  %v2218_v17 = vsel %vm550_vm3, %v2215_v58, %v2217_v23  ;;  %v2216_v38 = vsel %vm550_vm3, %v2214_v25, %v2215_v58 }
 0x2ba   : > { %v1846_v39 = vadd.f32 %v4007_v36, %v1621_v13  ;;  %2293 = vrot.lane.b32.xlu0 %v2218_v17, %s4439_s26  ;;  %2291 = vrot.lane.b32.xlu1 %v2216_v38, %s4439_s26  ;;  %v2414_v40 = vsel %vm749_vm4, %v2412_v7, %v2413_v50  ;;  %v2416_v11 = vsel %vm749_vm4, %v2413_v50, %v2415_v5  ;;  %v2932_v7 = vld [vmem:[%s6998_s3 + $0xc8] sm:$0xff] }
 0x2bb   : > { %v1959_v32 = vsel %vm1895_vm13, %v1841_v6, %v1927_v55  ;;  %v1625_v43 = vpop.f32.mrb[56].mxu0  ;;  %v2929_v6 = vld [vmem:[%s6998_s3 + $0xb0] sm:$0xff] }
 0x2bc   : > { %2035 = vst.msk [vmem:[#allocation3 + $0x151] sm:$0xff] %vm331_vm0, %v1959_v32  ;;  %vm1896_vm14 = vcmp.ge.f32.partialorder %v1846_v39, 0.0  ;;  %v1928_v63 = vmul.f32 0.01, %v1846_v39  ;;  %v1627_v21 = vpop.f32.mrb[57].mxu0  ;;  %v5924_v3 = vpop.permute.xlu0 %4309  ;;  %v1626_v12 = vadd.f32 %v5929_v29, %v1625_v43  ;;  %v4160_v8 = vpack.c.bf16 %v2930_v26, %v2929_v6  ;;  %v2931_v43 = vld [vmem:[%s6998_s3 + $0xc0] sm:$0xff] }
 0x2be   : > { %v1960_v33 = vsel %vm1896_vm14, %v1846_v39, %v1928_v63  ;;  %2489 = vrot.lane.b32.xlu1 %v2414_v40, %s4440_s27  ;;  %4161 = vmatpush1.bf16.msra.mxu1 %v4160_v8  ;;  %v5971_v63 = vpop.permute.xlu1 %2453  ;;  %v4163_v40 = vpack.c.bf16 %v2932_v7, %v2931_v43  ;;  %v2941_v43 = vld [vmem:[%s6998_s3 + $0x110] sm:$0xff]  ;;  %v2942_v7 = vld [vmem:[%s6998_s3 + $0x118] sm:$0xff] }
 0x2bf   : > { %2036 = vst.msk [vmem:[#allocation3 + $0x159] sm:$0xff] %vm331_vm0, %v1960_v33  ;;  %4162 = vmatprep.subr.bf16.mxu1 %v4441_v15 }
 0x2c0   : > { %v5952_v58 = vpop.permute.xlu0 %2249 }
 0x2c1   : > { %v4010_v19 = vpop.f32.mrb[28].mxu1 }
 0x2c2   : > { %v1850_v14 = vpop.f32.mrb[29].mxu1  ;;  %2491 = vrot.lane.b32.xlu1 %v2416_v11, %s4440_s27  ;;  %4164 = vmatpush1.bf16.msra.mxu1 %v4163_v40  ;;  %v5989_v52 = vpop.permute.xlu1 %2455 }
 0x2c3   : > { %v1851_v49 = vadd.f32 %v1850_v14, %v1626_v12  ;;  %v1630_v36 = vpop.f32.mrb[58].mxu0  ;;  %v5944_v41 = vld [vmem:[#allocation3 + $0x150] sm:$0xff]  ;;  %v2933_v12 = vld [vmem:[%s6998_s3 + $0xd0] sm:$0xff]  ;;  %4165 = vmatprep.subr.bf16.mxu1 %v4441_v15 }
 0x2c4   : > { %v1631_v37 = vadd.f32 %v5929_v29, %v1630_v36  ;;  %v1632_v1 = vpop.f32.mrb[59].mxu0  ;;  %v2219_v20 = vrot.slane %v5944_v41, 1  ;;  %v5969_v44 = vpop.permute.xlu0 %2251  ;;  %v2417_v48 = vrot.slane %v5944_v41, 2 }
 0x2c5   : > { %vm1897_vm15 = vcmp.ge.f32.partialorder %v1851_v49, 0.0  ;;  %v1929_v18 = vmul.f32 0.01, %v1851_v49  ;;  %v2935_v1 = vld [vmem:[%s6998_s3 + $0xe0] sm:$0xff] }
 0x2c6   : > { %v1856_v23 = vadd.f32 %v4010_v19, %v1631_v37  ;;  %v5954_v25 = vld [vmem:[#allocation3 + $0x158] sm:$0xff]  ;;  %v2085_v13 = vld [vmem:[#allocation3 + $0x160] sm:$0x3]  ;;  %v2934_v19 = vld [vmem:[%s6998_s3 + $0xd8] sm:$0xff] }
 0x2c7   : > { %v1961_v50 = vsel %vm1897_vm15, %v1851_v49, %v1929_v18  ;;  %v2220_v9 = vrot.slane %v5954_v25, 1  ;;  %v2222_v55 = vrot.slane %v2085_v13, 1  ;;  %v2418_v32 = vrot.slane %v5954_v25, 2  ;;  %v2940_v49 = vld [vmem:[%s6998_s3 + $0x108] sm:$0xff] }
 0x2c8   : > { %2037 = vst.msk [vmem:[#allocation3 + $0x169] sm:$0xff] %vm331_vm0, %v1961_v50  ;;  %vm1898_vm1 = vcmp.ge.f32.partialorder %v1856_v23, 0.0  ;;  %v1930_v17 = vmul.f32 0.01, %v1856_v23  ;;  %v2420_v47 = vrot.slane %v2085_v13, 2  ;;  %v4166_v11 = vpack.c.bf16 %v2934_v19, %v2933_v12  ;;  %v5987_v42 = vpop.permute.xlu0 %2253  ;;  %v2936_v18 = vld [vmem:[%s6998_s3 + $0xe8] sm:$0xff]  ;;  %v6041_v12 = vpop.permute.xlu1 %2457 }
 0x2c9   : > { %v2221_v38 = vsel %vm550_vm3, %v2219_v20, %v2220_v9  ;;  %v2223_v39 = vsel %vm550_vm3, %v2220_v9, %v2222_v55  ;;  %v2419_v33 = vsel %vm749_vm4, %v2417_v48, %v2418_v32  ;;  %v6000_v37 = vpack.c.bf16 %v2940_v49, %v2939_v62 }
 0x2ca   : > { %v1962_v21 = vsel %vm1898_vm1, %v1856_v23, %v1930_v17  ;;  %2295 = vrot.lane.b32.xlu0 %v2221_v38, %s4439_s26  ;;  %2297 = vrot.lane.b32.xlu1 %v2223_v39, %s4439_s26  ;;  %v2421_v36 = vsel %vm749_vm4, %v2418_v32, %v2420_v47  ;;  %v4169_v8 = vpack.c.bf16 %v2936_v18, %v2935_v1  ;;  %v4306_v62 = vunpack.i.l.bf16 %v5906_v53  ;;  %v4360_v18 = vld [vmem:[#allocation3 + $0x30] sm:$0xff] }
 0x2cb   : > { %2038 = vst.msk [vmem:[#allocation3 + $0x171] sm:$0xff] %vm331_vm0, %v1962_v21  ;;  %v1635_v5 = vpop.f32.mrb[60].mxu0  ;;  %4167 = vmatpush1.bf16.msra.mxu1 %v4166_v11  ;;  %4175 = vmatprep.subr.bf16.mxu0 %v6000_v37  ;;  %v6030_v48 = vpack.c.bf16 %v2942_v7, %v2941_v43  ;;  %v4312_v49 = vunpack.i.h.bf16 %v5924_v3 }
 0x2cc   : > { %v1637_v30 = vpop.f32.mrb[61].mxu0  ;;  %v1636_v6 = vadd.f32 %v5929_v29, %v1635_v5  ;;  %4168 = vmatprep.subr.bf16.mxu1 %v4441_v15  ;;  %4177 = vmatpush3.bf16.msra.mxu0 %v6000_v37  ;;  %v6039_v47 = vpop.permute.xlu0 %2255 }
 0x2cd   : > { %v2938_v30 = vld [vmem:[%s6998_s3 + $0xf8] sm:$0xff]  ;;  %4179 = vmatprep.subr.bf16.mxu0 %v6030_v48 }
 0x2ce   : > { %2493 = vrot.lane.b32.xlu0 %v2419_v33, %s4440_s27  ;;  %v4307_v33 = vunpack.i.h.bf16 %v5906_v53  ;;  %v4311_v53 = vunpack.i.l.bf16 %v5924_v3  ;;  %v4362_v3 = vld [vmem:[#allocation3 + $0x18] sm:$0xff] }
 0x2cf   : > { %v5991_v14 = vld [vmem:[#allocation3 + $0x168] sm:$0xff]  ;;  %4170 = vmatpush1.bf16.msra.mxu1 %v4169_v8 }
 0x2d0   : > { %v2224_v17 = vrot.slane %v5991_v14, 1  ;;  %4171 = vmatprep.subr.bf16.mxu1 %v4441_v15  ;;  %4181 = vmatpush3.bf16.msra.mxu0 %v6030_v48 }
 0x2d1   : > { %v4013_v26 = vpop.f32.mrb[30].mxu1 }
 0x2d2   : > { %2495 = vrot.lane.b32.xlu0 %v2421_v36, %s4440_s27  ;;  %v6010_v23 = vld [vmem:[#allocation3 + $0x170] sm:$0xff]  ;;  %v6012_v13 = vld [vmem:[#allocation3 + $0x178] sm:$0x3]  ;;  %v1860_v50 = vpop.f32.mrb[31].mxu1  ;;  %v2422_v36 = vrot.slane %v5991_v14, 2 }
 0x2d3   : > { %v1640_v20 = vpop.f32.mrb[62].mxu0  ;;  %v2225_v9 = vrot.slane %v6010_v23, 1  ;;  %v2227_v55 = vrot.slane %v6012_v13, 1  ;;  %v1861_v38 = vadd.f32 %v1860_v50, %v1636_v6  ;;  %v2423_v5 = vrot.slane %v6010_v23, 2 }
 0x2d4   : > { %v1641_v39 = vadd.f32 %v5929_v29, %v1640_v20  ;;  %v1642_v32 = vpop.f32.mrb[63].mxu0  ;;  %v2937_v29 = vld [vmem:[%s6998_s3 + $0xf0] sm:$0xff]  ;;  %v2549_v6 = vsel %vm331_vm0, %v4360_v18, %v5856_v24  ;;  %v2425_v20 = vrot.slane %v6012_v13, 2  ;;  %v4365_v18 = vld [vmem:[#allocation3 + $0x50] sm:$0xff] }
 0x2d5   : > { %v2228_v21 = vsel %vm550_vm3, %v2225_v9, %v2227_v55  ;;  %v2226_v40 = vsel %vm550_vm3, %v2224_v17, %v2225_v9  ;;  %vm1899_vm7 = vcmp.ge.f32.partialorder %v1861_v38, 0.0  ;;  %v1931_v19 = vmul.f32 0.01, %v1861_v38  ;;  %v4361_v24 = vld [vmem:[#allocation3 + $0x20] sm:$0xff]  ;;  %v2258_v17 = vpop.permute.xlu0 %2257 }
 0x2d6   : > { %v1866_v11 = vadd.f32 %v4013_v26, %v1641_v39  ;;  %2301 = vrot.lane.b32.xlu0 %v2228_v21, %s4439_s26  ;;  %2299 = vrot.lane.b32.xlu1 %v2226_v40, %s4439_s26  ;;  %v4172_v1 = vpack.c.bf16 %v2938_v30, %v2937_v29  ;;  %v6056_v50 = vsel %vm984_vm5, %v2549_v6, %v5875_v61 }
 0x2d7   : > { %v1963_v26 = vsel %vm1899_vm7, %v1861_v38, %v1931_v19  ;;  %v2424_v15 = vsel %vm749_vm4, %v2422_v36, %v2423_v5  ;;  %v2548_v61 = vsel %vm331_vm0, %v4361_v24, %v4307_v33  ;;  %v2547_v55 = vsel %vm331_vm0, %v4362_v3, %v4306_v62  ;;  %v6068_v38 = vpop.permute.xlu1 %2459  ;;  %v4363_v19 = vld [vmem:[#allocation3 + $0x38] sm:$0xff] }
 0x2d8   : > { %vm1900_vm8 = vcmp.ge.f32.partialorder %v1866_v11, 0.0  ;;  %v1932_v8 = vmul.f32 0.01, %v1866_v11  ;;  %2039 = vst.msk [vmem:[#allocation3 + $0x181] sm:$0xff] %vm331_vm0, %v1963_v26  ;;  %4173 = vmatpush1.bf16.msra.mxu1 %v4172_v1  ;;  %v6071_v13 = vsel %vm984_vm5, %v2547_v55, %v4311_v53  ;;  %v6074_v39 = vsel %vm984_vm5, %v2548_v61, %v4312_v49  ;;  %v4364_v49 = vld [vmem:[#allocation3 + $0x48] sm:$0xff] }
 0x2d9   : > { %4182 = vmatprep.subr.bf16.mxu1 %v6000_v37  ;;  %v2426_v32 = vsel %vm749_vm4, %v2423_v5, %v2425_v20  ;;  %v4313_v43 = vpack.i.bf16 %v6074_v39, %v6071_v13  ;;  %v2260_v21 = vpop.permute.xlu0 %2259  ;;  %v2550_v5 = vsel %vm331_vm0, %v4363_v19, %v5952_v58  ;;  %v2551_v36 = vsel %vm331_vm0, %v4364_v49, %v5969_v44 }
 0x2da   : > { %v1964_v9 = vsel %vm1900_vm8, %v1866_v11, %v1932_v8  ;;  %2497 = vrot.lane.b32.xlu1 %v2424_v15, %s4440_s27  ;;  %2747 = vrot.lane.b32.xlu0 %v6056_v50, %s4440_s27  ;;  %v6093_v11 = vsel %vm984_vm5, %v2550_v5, %v5893_v2  ;;  %v2552_v58 = vsel %vm331_vm0, %v4365_v18, %v5987_v42  ;;  %v4368_v5 = vld [vmem:[#allocation3 + $0x78] sm:$0xff] }
 0x2db   : > { %2040 = vst.msk [vmem:[#allocation3 + $0x189] sm:$0xff] %vm331_vm0, %v1964_v9  ;;  %v6082_v40 = vpop.permute.xlu1 %2461  ;;  %v4318_v1 = vpack.i.bf16 %v6093_v11, %v6056_v50  ;;  %v6107_v26 = vsel %vm984_vm5, %v2551_v36, %v5919_v56  ;;  %v6111_v8 = vsel %vm984_vm5, %v2552_v58, %v5941_v60  ;;  %v4366_v56 = vld [vmem:[#allocation3 + $0x60] sm:$0xff] }
 0x2dc   : > { %v4323_v53 = vpack.i.bf16 %v6111_v8, %v6107_v26  ;;  %v2553_v60 = vsel %vm331_vm0, %v4366_v56, %v6039_v47 }
 0x2dd   : > { %v2262_v2 = vpop.permute.xlu0 %2261  ;;  %v6125_v9 = vsel %vm984_vm5, %v2553_v60, %v5971_v63 }
 0x2de   : > { %2499 = vrot.lane.b32.xlu1 %v2426_v32, %s4440_s27 }
 0x2df   : > { %v6080_v7 = vld [vmem:[#allocation3 + $0x180] sm:$0xff]  ;;  %v2464_v6 = vpop.permute.xlu1 %2463 }
 0x2e0   : > { %v2229_v30 = vrot.slane %v6080_v7, 1  ;;  %v2427_v32 = vrot.slane %v6080_v7, 2 }
 0x2e1   : > { %v2264_v42 = vpop.permute.xlu0 %2263 }
 0x2e2   : > { %4314 = vrot.lane.b32.xlu1 %v4313_v43, %s4442_s14  ;;  %v6085_v29 = vld [vmem:[#allocation3 + $0x188] sm:$0xff]  ;;  %v2091_v44 = vld [vmem:[#allocation3 + $0x190] sm:$0x3] }
 0x2e3   : > { %v2230_v33 = vrot.slane %v6085_v29, 1  ;;  %v2466_v15 = vpop.permute.xlu1 %2465  ;;  %v2232_v20 = vrot.slane %v2091_v44, 1  ;;  %v2428_v61 = vrot.slane %v6085_v29, 2  ;;  %v4367_v43 = vld [vmem:[#allocation3 + $0x68] sm:$0xff] }
 0x2e4   : > { %v2554_v47 = vsel %vm331_vm0, %v4367_v43, %v2258_v17  ;;  %v4369_v17 = vld [vmem:[#allocation3 + $0x80] sm:$0xff] }
 0x2e5   : > { %v2231_v62 = vsel %vm550_vm3, %v2229_v30, %v2230_v33  ;;  %v2233_v24 = vsel %vm550_vm3, %v2230_v33, %v2232_v20  ;;  %v2266_v3 = vpop.permute.xlu0 %2265  ;;  %v6136_v63 = vsel %vm984_vm5, %v2554_v47, %v5989_v52  ;;  %v2429_v30 = vsel %vm749_vm4, %v2427_v32, %v2428_v61  ;;  %v6146_v52 = vld [vmem:[#allocation3 + $0x198] sm:$0xff] }
 0x2e6   : > { %2303 = vrot.lane.b32.xlu0 %v2231_v62, %s4439_s26  ;;  %2749 = vrot.lane.b32.xlu1 %v6093_v11, %s4440_s27  ;;  %v2555_v62 = vsel %vm331_vm0, %v4368_v5, %v2260_v21  ;;  %v4328_v49 = vpack.i.bf16 %v6136_v63, %v6125_v9  ;;  %v2556_v36 = vsel %vm331_vm0, %v4369_v17, %v2262_v2  ;;  %v2234_v21 = vrot.slane %v6146_v52, 1 }
 0x2e7   : > { %v2468_v55 = vpop.permute.xlu1 %2467  ;;  %v6152_v18 = vsel %vm984_vm5, %v2555_v62, %v6041_v12  ;;  %v6156_v58 = vsel %vm984_vm5, %v2556_v36, %v6068_v38  ;;  %v4370_v12 = vld [vmem:[#allocation3 + $0x90] sm:$0xff]  ;;  %v2430_v47 = vrot.slane %v2091_v44, 2  ;;  %v2432_v44 = vrot.slane %v6146_v52, 2 }
 0x2e8   : > { %v2557_v60 = vsel %vm331_vm0, %v4370_v12, %v2264_v42 }
 0x2e9   : > { %v2268_v33 = vpop.permute.xlu0 %2267  ;;  %v6172_v43 = vsel %vm984_vm5, %v2557_v60, %v6082_v40  ;;  %v2431_v62 = vsel %vm749_vm4, %v2428_v61, %v2430_v47 }
 0x2ea   : > { %4319 = vrot.lane.b32.xlu0 %v4318_v1, %s4442_s14  ;;  %2751 = vrot.lane.b32.xlu1 %v6107_v26, %s4440_s27  ;;  %v6148_v1 = vld [vmem:[#allocation3 + $0x1a0] sm:$0xff] }
 0x2eb   : > { %v2470_v19 = vpop.permute.xlu1 %2469  ;;  %v2235_v2 = vrot.slane %v6148_v1, 1 }
 0x2ed   : > { %v2270_v20 = vpop.permute.xlu0 %2269  ;;  %v2236_v38 = vsel %vm550_vm3, %v2234_v21, %v2235_v2 }
 0x2ee   : > { %4324 = vrot.lane.b32.xlu1 %v4323_v53, %s4442_s14  ;;  %2753 = vrot.lane.b32.xlu0 %v6111_v8, %s4440_s27  ;;  %v4333_v53 = vpack.i.bf16 %v6156_v58, %v6152_v18 }
 0x2ef   : > { %v2472_v56 = vpop.permute.xlu1 %2471 }
 0x2f2   : > { %2305 = vrot.lane.b32.xlu1 %v2233_v24, %s4439_s26  ;;  %2755 = vrot.lane.b32.xlu0 %v6125_v9, %s4440_s27  ;;  %v2272_v24 = vpop.permute.xlu0 %2271 }
 0x2f3   : > { %v2474_v32 = vpop.permute.xlu1 %2473 }
 0x2f6   : > { %2501 = vrot.lane.b32.xlu0 %v2429_v30, %s4440_s27  ;;  %2757 = vrot.lane.b32.xlu1 %v6136_v63, %s4440_s27  ;;  %v4371_v30 = vld [vmem:[#allocation3 + $0x98] sm:$0xff]  ;;  %v2274_v17 = vpop.permute.xlu0 %2273 }
 0x2f7   : > { %v2558_v5 = vsel %vm331_vm0, %v4371_v30, %v2266_v3  ;;  %v2278_v40 = vpop.permute.xlu1 %2277  ;;  %v2433_v3 = vrot.slane %v6148_v1, 2 }
 0x2f8   : > { %v6179_v42 = vsel %vm984_vm5, %v2558_v5, %v2464_v6 }
 0x2f9   : > { %v4338_v6 = vpack.i.bf16 %v6179_v42, %v6172_v43 }
 0x2fa   : > { %4329 = vrot.lane.b32.xlu0 %v4328_v49, %s4442_s14  ;;  %2759 = vrot.lane.b32.xlu1 %v6152_v18, %s4440_s27  ;;  %v2559_v49 = vsel %vm331_vm0, %v5705_v4, %v2268_v33  ;;  %v2560_v4 = vsel %vm331_vm0, %v5707_v22, %v2270_v20  ;;  %v2276_v61 = vpop.permute.xlu0 %2275  ;;  %v2434_v33 = vsel %vm749_vm4, %v2432_v44, %v2433_v3 }
 0x2fb   : > { %v6192_v36 = vsel %vm984_vm5, %v2559_v49, %v2466_v15  ;;  %v2476_v21 = vpop.permute.xlu1 %2475  ;;  %v6201_v12 = vsel %vm984_vm5, %v2560_v4, %v2468_v55  ;;  %v2561_v15 = vsel %vm331_vm0, %v5723_v34, %v2272_v24  ;;  %v2562_v55 = vsel %vm331_vm0, %v5726_v45, %v2274_v17 }
 0x2fc   : > { %v4343_v20 = vpack.i.bf16 %v6201_v12, %v6192_v36  ;;  %v6220_v30 = vsel %vm984_vm5, %v2562_v55, %v2472_v56  ;;  %v2563_v5 = vsel %vm331_vm0, %v5745_v59, %v2276_v61  ;;  %v2564_v56 = vsel %vm331_vm0, %v5749_v35, %v2278_v40 }
 0x2fd   : > { %v6230_v49 = vsel %vm984_vm5, %v2563_v5, %v2474_v32  ;;  %v6239_v17 = vsel %vm984_vm5, %v2564_v56, %v2476_v21 }
 0x2fe   : > { %4334 = vrot.lane.b32.xlu1 %v4333_v53, %s4442_s14  ;;  %2761 = vrot.lane.b32.xlu0 %v6156_v58, %s4440_s27  ;;  %v2094_v53 = vld [vmem:[#allocation3 + $0x1a8] sm:$0x3]  ;;  %v2280_v60 = vpop.permute.xlu0 %2279 }
 0x2ff   : > { %v2237_v22 = vrot.slane %v2094_v53, 1  ;;  %v2282_v47 = vpop.permute.xlu1 %2281  ;;  %v2435_v45 = vrot.slane %v2094_v53, 2  ;;  %v2565_v32 = vsel %vm331_vm0, %v5763_v31, %v2280_v60 }
 0x300   : > { %v2566_v35 = vsel %vm331_vm0, %v5767_v16, %v2282_v47 }
 0x301   : > { %v2238_v34 = vsel %vm550_vm3, %v2235_v2, %v2237_v22  ;;  %v2436_v59 = vsel %vm749_vm4, %v2433_v3, %v2435_v45 }
 0x302   : > { %2307 = vrot.lane.b32.xlu1 %v2236_v38, %s4439_s26  ;;  %2763 = vrot.lane.b32.xlu0 %v6172_v43, %s4440_s27  ;;  %v6211_v38 = vsel %vm984_vm5, %v2561_v15, %v2470_v19  ;;  %v2478_v24 = vpop.permute.xlu0 %2477 }
 0x303   : > { %v4348_v19 = vpack.i.bf16 %v6220_v30, %v6211_v38  ;;  %v6247_v4 = vsel %vm984_vm5, %v2565_v32, %v2478_v24 }
 0x306   : > { %2503 = vrot.lane.b32.xlu0 %v2431_v62, %s4440_s27  ;;  %2765 = vrot.lane.b32.xlu1 %v6179_v42, %s4440_s27  ;;  %v2284_v62 = vpop.permute.xlu1 %2283  ;;  %v2480_v2 = vpop.permute.xlu0 %2479 }
 0x307   : > { %v6256_v3 = vsel %vm984_vm5, %v2566_v35, %v2480_v2  ;;  %v2567_v31 = vsel %vm331_vm0, %v5780_v51, %v2284_v62 }
 0x30a   : > { %4339 = vrot.lane.b32.xlu0 %v4338_v6, %s4442_s14  ;;  %2767 = vrot.lane.b32.xlu1 %v6192_v36, %s4440_s27  ;;  %v2482_v44 = vpop.permute.xlu1 %2481  ;;  %v2286_v6 = vpop.permute.xlu0 %2285 }
 0x30b   : > { %v2568_v16 = vsel %vm331_vm0, %v5786_v0, %v2286_v6 }
 0x30e   : > { %2505 = vrot.lane.b32.xlu1 %v2434_v33, %s4440_s27  ;;  %2769 = vrot.lane.b32.xlu0 %v6201_v12, %s4440_s27  ;;  %v2484_v40 = vpop.permute.xlu1 %2483  ;;  %v2288_v61 = vpop.permute.xlu0 %2287  ;;  %v6265_v33 = vsel %vm984_vm5, %v2567_v31, %v2482_v44 }
 0x30f   : > { %v6274_v15 = vsel %vm984_vm5, %v2568_v16, %v2484_v40  ;;  %v2569_v51 = vsel %vm331_vm0, %v5797_v57, %v2288_v61  ;;  %v4296_v61 = vunpack.i.l.bf16 %v5865_v54  ;;  %v4301_v16 = vunpack.i.l.bf16 %v5877_v10 }
 0x312   : > { %4344 = vrot.lane.b32.xlu1 %v4343_v20, %s4442_s14  ;;  %2771 = vrot.lane.b32.xlu0 %v6211_v38, %s4440_s27  ;;  %v2290_v21 = vpop.permute.xlu1 %2289  ;;  %v2486_v53 = vpop.permute.xlu0 %2485 }
 0x313   : > { %v6283_v22 = vsel %vm984_vm5, %v2569_v51, %v2486_v53  ;;  %v2570_v0 = vsel %vm331_vm0, %v5803_v28, %v2290_v21  ;;  %v4372_v53 = vld [vmem:[#allocation3] sm:$0xff]  ;;  %v4297_v51 = vunpack.i.h.bf16 %v5865_v54 }
 0x316   : > { %2309 = vrot.lane.b32.xlu0 %v2238_v34, %s4439_s26  ;;  %2773 = vrot.lane.b32.xlu1 %v6220_v30, %s4440_s27  ;;  %v2488_v20 = vpop.permute.xlu0 %2487  ;;  %s6857_s26 = scalar_lea.vmem [#allocation4], %s3810_s22 }
 0x317   : > { %v6292_v47 = vsel %vm984_vm5, %v2570_v0, %v2488_v20 }
 0x31a   : > { %4349 = vrot.lane.b32.xlu0 %v4348_v19, %s4442_s14  ;;  %2775 = vrot.lane.b32.xlu1 %v6230_v49, %s4440_s27 }
 0x31e   : > { %2507 = vrot.lane.b32.xlu1 %v2436_v59, %s4440_s27  ;;  %2777 = vrot.lane.b32.xlu0 %v6239_v17, %s4440_s27 }
 0x322   : > { %2681 = vrot.lane.b32.xlu1 %v6230_v49, %s4442_s14  ;;  %2779 = vrot.lane.b32.xlu0 %v6247_v4, %s4440_s27 }
 0x326   : > { %2683 = vrot.lane.b32.xlu0 %v6239_v17, %s4442_s14  ;;  %2781 = vrot.lane.b32.xlu1 %v6256_v3, %s4440_s27 }
 0x32a   : > { %2685 = vrot.lane.b32.xlu0 %v6247_v4, %s4442_s14  ;;  %2783 = vrot.lane.b32.xlu1 %v6265_v33, %s4440_s27 }
 0x32c   : > { %v2292_v60 = vpop.permute.xlu1 %2291  ;;  %v2294_v57 = vpop.permute.xlu0 %2293 }
 0x32d   : > { %v2571_v34 = vsel %vm331_vm0, %v5879_v27, %v2292_v60  ;;  %v2572_v28 = vsel %vm331_vm0, %v5889_v46, %v2294_v57  ;;  %v2545_v60 = vsel %vm331_vm0, %v4372_v53, %v4296_v61 }
 0x32e   : > { %2687 = vrot.lane.b32.xlu0 %v6256_v3, %s4442_s14  ;;  %2785 = vrot.lane.b32.xlu1 %v6274_v15, %s4440_s27 }
 0x330   : > { %v2490_v55 = vpop.permute.xlu1 %2489 }
 0x331   : > { %v6301_v24 = vsel %vm984_vm5, %v2571_v34, %v2490_v55  ;;  %v4302_v55 = vunpack.i.h.bf16 %v5877_v10 }
 0x332   : > { %2689 = vrot.lane.b32.xlu0 %v6265_v33, %s4442_s14  ;;  %2787 = vrot.lane.b32.xlu1 %v6283_v22, %s4440_s27 }
 0x334   : > { %v2492_v5 = vpop.permute.xlu1 %2491 }
 0x335   : > { %v6310_v19 = vsel %vm984_vm5, %v2572_v28, %v2492_v5 }
 0x336   : > { %2691 = vrot.lane.b32.xlu0 %v6274_v15, %s4442_s14  ;;  %2789 = vrot.lane.b32.xlu1 %v6292_v47, %s4440_s27 }
 0x33a   : > { %2693 = vrot.lane.b32.xlu0 %v6283_v22, %s4442_s14  ;;  %2791 = vrot.lane.b32.xlu1 %v6301_v24, %s4440_s27 }
 0x33c   : > { %v2296_v45 = vpop.permute.xlu0 %2295  ;;  %v2298_v2 = vpop.permute.xlu1 %2297 }
 0x33d   : > { %v2573_v27 = vsel %vm331_vm0, %v5944_v41, %v2296_v45  ;;  %v2574_v46 = vsel %vm331_vm0, %v5954_v25, %v2298_v2 }
 0x33e   : > { %2695 = vrot.lane.b32.xlu0 %v6292_v47, %s4442_s14  ;;  %2793 = vrot.lane.b32.xlu1 %v6310_v19, %s4440_s27 }
 0x340   : > { %v2494_v62 = vpop.permute.xlu0 %2493 }
 0x341   : > { %v6319_v59 = vsel %vm984_vm5, %v2573_v27, %v2494_v62  ;;  %v4373_v27 = vld [vmem:[#allocation3 + $0x8] sm:$0xff] }
 0x342   : > { %2697 = vrot.lane.b32.xlu0 %v6301_v24, %s4442_s14  ;;  %2795 = vrot.lane.b32.xlu1 %v6319_v59, %s4440_s27  ;;  %v2546_v54 = vsel %vm331_vm0, %v4373_v27, %v4297_v51 }
 0x343   : > { %v2582_v10 = vsel %vm984_vm5, %v2546_v54, %v4302_v55 }
 0x344   : > { %v2496_v56 = vpop.permute.xlu0 %2495 }
 0x345   : > { %v6328_v44 = vsel %vm984_vm5, %v2574_v46, %v2496_v56 }
 0x346   : > { %2699 = vrot.lane.b32.xlu0 %v6310_v19, %s4442_s14  ;;  %2797 = vrot.lane.b32.xlu1 %v6328_v44, %s4440_s27 }
 0x348   : > { %v2302_v41 = vpop.permute.xlu0 %2301  ;;  %v2300_v32 = vpop.permute.xlu1 %2299 }
 0x349   : > { %v2575_v6 = vsel %vm331_vm0, %v5991_v14, %v2300_v32  ;;  %v2576_v31 = vsel %vm331_vm0, %v6010_v23, %v2302_v41  ;;  %v2581_v23 = vsel %vm984_vm5, %v2545_v60, %v4301_v16 }
 0x34a   : > { %2701 = vrot.lane.b32.xlu0 %v6319_v59, %s4442_s14 }
 0x34c   : > { %v2748_v35 = vpop.permute.xlu0 %2747  ;;  %v2498_v25 = vpop.permute.xlu1 %2497 }
 0x34d   : > { %v6339_v40 = vsel %vm984_vm5, %v2575_v6, %v2498_v25  ;;  %4022 = vmatprep.mubr.msk.f32.mxu0 %vm331_vm0, %v2748_v35 }
 0x34e   : > { %2703 = vrot.lane.b32.xlu0 %v6328_v44, %s4442_s14  ;;  %2799 = vrot.lane.b32.xlu1 %v6339_v40, %s4440_s27 }
 0x350   : > { %v2500_v21 = vpop.permute.xlu1 %2499 }
 0x351   : > { %v6350_v14 = vsel %vm984_vm5, %v2576_v31, %v2500_v21 }
 0x352   : > { %2705 = vrot.lane.b32.xlu0 %v6339_v40, %s4442_s14  ;;  %2801 = vrot.lane.b32.xlu1 %v6350_v14, %s4440_s27 }
 0x354   : > { %v4315_v20 = vpop.permute.xlu1 %4314 }
 0x355   : > { %v4316_v0 = vunpack.i.l.bf16 %v4315_v20  ;;  %v4317_v57 = vunpack.i.h.bf16 %v4315_v20 }
 0x356   : > { %2707 = vrot.lane.b32.xlu0 %v6350_v14, %s4442_s14 }
 0x357   : > { %v2875_v34 = vsel %vm984_vm5, %v4316_v0, %v2748_v35  ;;  %v2843_v5 = vsel %vm1247_vm6, %v2581_v23, %v4316_v0  ;;  %v2844_v56 = vsel %vm1247_vm6, %v2582_v10, %v4317_v57 }
 0x358   : > { %v2304_v28 = vpop.permute.xlu0 %2303  ;;  %v2750_v45 = vpop.permute.xlu1 %2749  ;;  %3078 = vmatprep.mubr.f32.mxu1 %v2875_v34 }
 0x359   : > { %3079 = vmatmul.mubr.f32.vlgmr.msra.gmra.mrb[32].mxu1 %v2843_v5  ;;  %4023 = vmatmul.mubr.msk.f32.vlgmr.msra.gmra.mrb[64].mxu0 %vm331_vm0, %v2750_v45  ;;  %v2876_v62 = vsel %vm984_vm5, %v4317_v57, %v2750_v45  ;;  %v2577_v60 = vsel %vm331_vm0, %v6080_v7, %v2304_v28 }
 0x35a   : > { %3083 = vmatprep.mubr.f32.mxu1 %v2876_v62  ;;  %4184 = vmatpush3.bf16.msra.mxu1 %v6000_v37 }
 0x35b   : > { %4183 = vmatprep.subr.bf16.mxu1 %v6030_v48 }
 0x35c   : > { %v4320_v2 = vpop.permute.xlu0 %4319  ;;  %v2752_v46 = vpop.permute.xlu1 %2751 }
 0x35d   : > { %v4321_v41 = vunpack.i.l.bf16 %v4320_v2  ;;  %3084 = vmatmul.mubr.f32.gmra.mrb[34].mxu1 %v2844_v56  ;;  %4025 = vmatprep.mubr.msk.f32.mxu0 %vm331_vm0, %v2752_v46  ;;  %v4322_v32 = vunpack.i.h.bf16 %v4320_v2 }
 0x35e   : > { %4185 = vmatpush3.bf16.msra.mxu1 %v6030_v48 }
 0x35f   : > { %v2877_v6 = vsel %vm984_vm5, %v4321_v41, %v2752_v46  ;;  %v2845_v37 = vsel %vm1247_vm6, %v6071_v13, %v4321_v41  ;;  %v2846_v48 = vsel %vm1247_vm6, %v6074_v39, %v4322_v32 }
 0x360   : > { %v2754_v35 = vpop.permute.xlu0 %2753  ;;  %v4325_v25 = vpop.permute.xlu1 %4324  ;;  %3088 = vmatprep.mubr.f32.mxu1 %v2877_v6 }
 0x361   : > { %3089 = vmatmul.mubr.f32.gmra.mrb[36].mxu1 %v2845_v37  ;;  %4026 = vmatmul.mubr.msk.f32.gmra.mrb[66].mxu0 %vm331_vm0, %v2754_v35  ;;  %v2878_v61 = vsel %vm984_vm5, %v4322_v32, %v2754_v35  ;;  %v4326_v31 = vunpack.i.l.bf16 %v4325_v25  ;;  %v4327_v53 = vunpack.i.h.bf16 %v4325_v25 }
 0x362   : > { %3093 = vmatprep.mubr.f32.mxu1 %v2878_v61 }
 0x363   : > { %v2847_v0 = vsel %vm1247_vm6, %v6056_v50, %v4326_v31  ;;  %v2848_v7 = vsel %vm1247_vm6, %v6093_v11, %v4327_v53 }
 0x364   : > { %v2756_v21 = vpop.permute.xlu0 %2755  ;;  %v2306_v16 = vpop.permute.xlu1 %2305 }
 0x365   : > { %3094 = vmatmul.mubr.f32.gmra.mrb[38].mxu1 %v2846_v48  ;;  %4028 = vmatprep.mubr.msk.f32.mxu0 %vm331_vm0, %v2756_v21  ;;  %v2879_v13 = vsel %vm984_vm5, %v4326_v31, %v2756_v21  ;;  %v2578_v56 = vsel %vm331_vm0, %v6085_v29, %v2306_v16 }
 0x366   : > { %3098 = vmatprep.mubr.f32.mxu1 %v2879_v13 }
 0x368   : > { %v2502_v51 = vpop.permute.xlu0 %2501  ;;  %v2758_v20 = vpop.permute.xlu1 %2757 }
 0x369   : > { %v2613_v23 = vsel %vm984_vm5, %v2577_v60, %v2502_v51  ;;  %3099 = vmatmul.mubr.f32.gmra.mrb[40].mxu1 %v2847_v0  ;;  %4029 = vmatmul.mubr.msk.f32.gmra.mrb[68].mxu0 %vm331_vm0, %v2758_v20  ;;  %v2880_v39 = vsel %vm984_vm5, %v4327_v53, %v2758_v20 }
 0x36a   : > { %2709 = vrot.lane.b32.xlu0 %v2613_v23, %s4442_s14  ;;  %2803 = vrot.lane.b32.xlu1 %v2613_v23, %s4440_s27 }
 0x36b   : > { %3103 = vmatprep.mubr.f32.mxu1 %v2880_v39 }
 0x36c   : > { %v4330_v55 = vpop.permute.xlu0 %4329  ;;  %v2760_v57 = vpop.permute.xlu1 %2759 }
 0x36d   : > { %v4331_v34 = vunpack.i.l.bf16 %v4330_v55  ;;  %3104 = vmatmul.mubr.f32.gmra.mrb[42].mxu1 %v2848_v7  ;;  %4031 = vmatprep.mubr.msk.f32.mxu0 %vm331_vm0, %v2760_v57  ;;  %v4332_v50 = vunpack.i.h.bf16 %v4330_v55 }
 0x36f   : > { %v2881_v5 = vsel %vm984_vm5, %v4331_v34, %v2760_v57  ;;  %v2849_v28 = vsel %vm1247_vm6, %v6107_v26, %v4331_v34  ;;  %v2850_v2 = vsel %vm1247_vm6, %v6111_v8, %v4332_v50 }
 0x370   : > { %v2762_v45 = vpop.permute.xlu0 %2761  ;;  %v4335_v27 = vpop.permute.xlu1 %4334  ;;  %3108 = vmatprep.mubr.f32.mxu1 %v2881_v5 }
 0x371   : > { %3109 = vmatmul.mubr.f32.gmra.mrb[44].mxu1 %v2849_v28  ;;  %4032 = vmatmul.mubr.msk.f32.gmra.mrb[70].mxu0 %vm331_vm0, %v2762_v45  ;;  %v2882_v54 = vsel %vm984_vm5, %v4332_v50, %v2762_v45  ;;  %v4336_v11 = vunpack.i.l.bf16 %v4335_v27  ;;  %v4337_v46 = vunpack.i.h.bf16 %v4335_v27 }
 0x372   : > { %3113 = vmatprep.mubr.f32.mxu1 %v2882_v54 }
 0x373   : > { %v2851_v6 = vsel %vm1247_vm6, %v6125_v9, %v4336_v11  ;;  %v2852_v29 = vsel %vm1247_vm6, %v6136_v63, %v4337_v46 }
 0x374   : > { %v2764_v62 = vpop.permute.xlu0 %2763  ;;  %v2308_v10 = vpop.permute.xlu1 %2307 }
 0x375   : > { %3114 = vmatmul.mubr.f32.gmra.mrb[46].mxu1 %v2850_v2  ;;  %4034 = vmatprep.mubr.msk.f32.mxu0 %vm331_vm0, %v2764_v62  ;;  %v2883_v26 = vsel %vm984_vm5, %v4336_v11, %v2764_v62  ;;  %v2579_v16 = vsel %vm331_vm0, %v6146_v52, %v2308_v10 }
 0x376   : > { %3118 = vmatprep.mubr.f32.mxu1 %v2883_v26 }
 0x378   : > { %v2504_v41 = vpop.permute.xlu0 %2503  ;;  %v2766_v32 = vpop.permute.xlu1 %2765 }
 0x379   : > { %v2614_v37 = vsel %vm984_vm5, %v2578_v56, %v2504_v41  ;;  %3119 = vmatmul.mubr.f32.gmra.mrb[48].mxu1 %v2851_v6  ;;  %4035 = vmatmul.mubr.msk.f32.gmra.mrb[72].mxu0 %vm331_vm0, %v2766_v32  ;;  %v2884_v8 = vsel %vm984_vm5, %v4337_v46, %v2766_v32 }
 0x37a   : > { %2711 = vrot.lane.b32.xlu0 %v2614_v37, %s4442_s14  ;;  %2805 = vrot.lane.b32.xlu1 %v2614_v37, %s4440_s27  ;;  %s3744_s14 = sshll.u32 %s6857_s26, 4  ;;  %s6922_s14 = int_to_ptr.vmem [resolvable:$true] %s3744_s14 }
 0x37b   : > { %3123 = vmatprep.mubr.f32.mxu1 %v2884_v8  ;;  %s4374_s28 = scalar_lea.vmem %s6922_s14, 4096  ;;  %p4381_p0 = scmp.lt.s32.totalorder %s6922_s14, %s4379_s16 }
 0x37c   : > { %v4340_v35 = vpop.permute.xlu0 %4339  ;;  %v2768_v25 = vpop.permute.xlu1 %2767  ;;  %p4375_p11 = scmp.ne.s32.totalorder %s6922_s14, %s4374_s28  ;;  %p4382_p1 = scmp.lt.s32.totalorder %s4380_s17, %s4374_s28 }
 0x37d   : > { %v4341_v61 = vunpack.i.l.bf16 %v4340_v35  ;;  %3124 = vmatmul.mubr.f32.gmra.mrb[50].mxu1 %v2852_v29  ;;  %4037 = vmatprep.mubr.msk.f32.mxu0 %vm331_vm0, %v2768_v25  ;;  %v4342_v9 = vunpack.i.h.bf16 %v4340_v35 }
 0x37e   : > { %p4376_p12 = pnand %p4375_p11, %p4535_p5  ;;  %p4383_p2 = por %p4382_p1, %p4381_p0 }
 0x37f   : > { %v2885_v31 = vsel %vm984_vm5, %v4341_v61, %v2768_v25  ;;  %v2853_v21 = vsel %vm1247_vm6, %v6152_v18, %v4341_v61  ;;  %v2854_v18 = vsel %vm1247_vm6, %v6156_v58, %v4342_v9 }
 0x380   : > { %v2770_v48 = vpop.permute.xlu0 %2769  ;;  %v2506_v13 = vpop.permute.xlu1 %2505  ;;  %3128 = vmatprep.mubr.f32.mxu1 %v2885_v31  ;;  %p4377_p13 = pneg %p4376_p12 }
 0x381   : > { %v2615_v53 = vsel %vm984_vm5, %v2579_v16, %v2506_v13  ;;  %3129 = vmatmul.mubr.f32.gmra.mrb[52].mxu1 %v2853_v21  ;;  %4038 = vmatmul.mubr.msk.f32.gmra.mrb[74].mxu0 %vm331_vm0, %v2770_v48  ;;  %v2886_v63 = vsel %vm984_vm5, %v4342_v9, %v2770_v48 }
 0x382   : > { %2807 = vrot.lane.b32.xlu1 %v2615_v53, %s4440_s27  ;;  %3133 = vmatprep.mubr.f32.mxu1 %v2886_v63  ;;  %p4384_p3 = pnand %p4383_p2, %p4377_p13 }
 0x384   : > { %v2772_v60 = vpop.permute.xlu0 %2771  ;;  %v4345_v51 = vpop.permute.xlu1 %4344 }
 0x385   : > { %v4346_v20 = vunpack.i.l.bf16 %v4345_v51  ;;  %3134 = vmatmul.mubr.f32.gmra.mrb[54].mxu1 %v2854_v18  ;;  %4040 = vmatprep.mubr.msk.f32.mxu0 %vm331_vm0, %v2772_v60  ;;  %v4347_v52 = vunpack.i.h.bf16 %v4345_v51 }
 0x387   : > { %v2887_v0 = vsel %vm984_vm5, %v4346_v20, %v2772_v60  ;;  %v2855_v23 = vsel %vm1247_vm6, %v6172_v43, %v4346_v20  ;;  %v2856_v34 = vsel %vm1247_vm6, %v6179_v42, %v4347_v52 }
 0x388   : > { %v2310_v39 = vpop.permute.xlu0 %2309  ;;  %v2774_v55 = vpop.permute.xlu1 %2773  ;;  %3138 = vmatprep.mubr.f32.mxu1 %v2887_v0 }
 0x389   : > { %3139 = vmatmul.mubr.f32.gmra.mrb[56].mxu1 %v2855_v23  ;;  %4041 = vmatmul.mubr.msk.f32.gmra.mrb[76].mxu0 %vm331_vm0, %v2774_v55  ;;  %v2888_v57 = vsel %vm984_vm5, %v4347_v52, %v2774_v55  ;;  %v2580_v43 = vsel %vm331_vm0, %v6148_v1, %v2310_v39 }
 0x38a   : > { %3143 = vmatprep.mubr.f32.mxu1 %v2888_v57 }
 0x38c   : > { %v4350_v58 = vpop.permute.xlu0 %4349  ;;  %v2776_v7 = vpop.permute.xlu1 %2775 }
 0x38d   : > { %v4351_v50 = vunpack.i.l.bf16 %v4350_v58  ;;  %3144 = vmatmul.mubr.f32.gmra.mrb[58].mxu1 %v2856_v34  ;;  %4043 = vmatprep.mubr.msk.f32.mxu0 %vm331_vm0, %v2776_v7  ;;  %v4352_v5 = vunpack.i.h.bf16 %v4350_v58 }
 0x38f   : > { %v2889_v28 = vsel %vm984_vm5, %v4351_v50, %v2776_v7  ;;  %v2857_v45 = vsel %vm1247_vm6, %v6192_v36, %v4351_v50  ;;  %v2858_v10 = vsel %vm1247_vm6, %v6201_v12, %v4352_v5 }
 0x390   : > { %v2778_v27 = vpop.permute.xlu0 %2777  ;;  %v2508_v54 = vpop.permute.xlu1 %2507  ;;  %3148 = vmatprep.mubr.f32.mxu1 %v2889_v28 }
 0x391   : > { %v2616_v11 = vsel %vm984_vm5, %v2580_v43, %v2508_v54  ;;  %3149 = vmatmul.mubr.f32.gmra.mrb[60].mxu1 %v2857_v45  ;;  %4044 = vmatmul.mubr.msk.f32.gmra.mrb[78].mxu0 %vm331_vm0, %v2778_v27  ;;  %v2890_v42 = vsel %vm984_vm5, %v4352_v5, %v2778_v27 }
 0x392   : > { %2809 = vrot.lane.b32.xlu1 %v2616_v11, %s4440_s27  ;;  %3153 = vmatprep.mubr.f32.mxu1 %v2890_v42  ;;  %s3885_s27 = sshll.u32 %s4518_s13, 12 }
 0x393   : > { %s6920_s24 = scalar_lea.hbm %s7004_s9, %s3885_s27 }
 0x394   : > { %v2780_v1 = vpop.permute.xlu0 %2779  ;;  %v2682_v62 = vpop.permute.xlu1 %2681 }
 0x395   : > { %3154 = vmatmul.mubr.f32.gmra.mrb[62].mxu1 %v2858_v10  ;;  %4046 = vmatprep.mubr.msk.f32.mxu0 %vm331_vm0, %v2780_v1  ;;  %v2891_v36 = vsel %vm984_vm5, %v2682_v62, %v2780_v1  ;;  %v2859_v46 = vsel %vm1247_vm6, %v6211_v38, %v2682_v62 }
 0x396   : > { %3158 = vmatprep.mubr.f32.mxu1 %v2891_v36 }
 0x398   : > { %v2684_v2 = vpop.permute.xlu0 %2683  ;;  %v2782_v26 = vpop.permute.xlu1 %2781 }
 0x399   : > { %3159 = vmatmul.mubr.f32.gmra.mrb[64].mxu1 %v2859_v46  ;;  %4047 = vmatmul.mubr.msk.f32.gmra.mrb[80].mxu0 %vm331_vm0, %v2782_v26  ;;  %v2892_v56 = vsel %vm984_vm5, %v2684_v2, %v2782_v26  ;;  %v2860_v12 = vsel %vm1247_vm6, %v6220_v30, %v2684_v2 }
 0x39a   : > { %3163 = vmatprep.mubr.f32.mxu1 %v2892_v56 }
 0x39c   : > { %v2686_v41 = vpop.permute.xlu0 %2685  ;;  %v6453_v32 = vpop.permute.xlu1 %2783 }
 0x39d   : > { %3164 = vmatmul.mubr.f32.gmra.mrb[66].mxu1 %v2860_v12  ;;  %v2893_v6 = vsel %vm984_vm5, %v2686_v41, %v6453_v32  ;;  %v2861_v38 = vsel %vm1247_vm6, %v6230_v49, %v2686_v41 }
 0x39e   : > { %3168 = vmatprep.mubr.f32.mxu1 %v2893_v6 }
 0x3a0   : > { %v2688_v37 = vpop.permute.xlu0 %2687  ;;  %v6459_v8 = vpop.permute.xlu1 %2785 }
 0x3a1   : > { %3169 = vmatmul.mubr.f32.gmra.mrb[68].mxu1 %v2861_v38  ;;  %v2894_v35 = vsel %vm984_vm5, %v2688_v37, %v6459_v8  ;;  %v2862_v30 = vsel %vm1247_vm6, %v6239_v17, %v2688_v37 }
 0x3a2   : > { %3173 = vmatprep.mubr.f32.mxu1 %v2894_v35 }
 0x3a4   : > { %v2690_v25 = vpop.permute.xlu0 %2689  ;;  %v6465_v29 = vpop.permute.xlu1 %2787 }
 0x3a5   : > { %3174 = vmatmul.mubr.f32.gmra.mrb[70].mxu1 %v2862_v30  ;;  %v2895_v61 = vsel %vm984_vm5, %v2690_v25, %v6465_v29  ;;  %v2863_v49 = vsel %vm1247_vm6, %v6247_v4, %v2690_v25 }
 0x3a6   : > { %3178 = vmatprep.mubr.f32.mxu1 %v2895_v61 }
 0x3a8   : > { %v2692_v9 = vpop.permute.xlu0 %2691  ;;  %v6471_v31 = vpop.permute.xlu1 %2789 }
 0x3a9   : > { %3179 = vmatmul.mubr.f32.gmra.mrb[72].mxu1 %v2863_v49  ;;  %v2896_v21 = vsel %vm984_vm5, %v2692_v9, %v6471_v31  ;;  %v2864_v17 = vsel %vm1247_vm6, %v6256_v3, %v2692_v9 }
 0x3aa   : > { %3183 = vmatprep.mubr.f32.mxu1 %v2896_v21 }
 0x3ac   : > { %v2694_v16 = vpop.permute.xlu0 %2693  ;;  %v6477_v48 = vpop.permute.xlu1 %2791 }
 0x3ad   : > { %3184 = vmatmul.mubr.f32.gmra.mrb[74].mxu1 %v2864_v17  ;;  %v2897_v13 = vsel %vm984_vm5, %v2694_v16, %v6477_v48  ;;  %v2865_v4 = vsel %vm1247_vm6, %v6265_v33, %v2694_v16 }
 0x3ae   : > { %3188 = vmatprep.mubr.f32.mxu1 %v2897_v13 }
 0x3b0   : > { %v2696_v53 = vpop.permute.xlu0 %2695  ;;  %v2794_v63 = vpop.permute.xlu1 %2793 }
 0x3b1   : > { %3189 = vmatmul.mubr.f32.gmra.mrb[76].mxu1 %v2865_v4  ;;  %v2898_v60 = vsel %vm984_vm5, %v2696_v53, %v2794_v63  ;;  %v2866_v20 = vsel %vm1247_vm6, %v6274_v15, %v2696_v53 }
 0x3b2   : > { %3193 = vmatprep.mubr.f32.mxu1 %v2898_v60 }
 0x3b4   : > { %v2698_v51 = vpop.permute.xlu0 %2697  ;;  %v2796_v18 = vpop.permute.xlu1 %2795 }
 0x3b5   : > { %3194 = vmatmul.mubr.f32.gmra.mrb[78].mxu1 %v2866_v20  ;;  %v2899_v3 = vsel %vm984_vm5, %v2698_v51, %v2796_v18  ;;  %v2867_v23 = vsel %vm1247_vm6, %v6283_v22, %v2698_v51 }
 0x3b6   : > { %3198 = vmatprep.mubr.f32.mxu1 %v2899_v3 }
 0x3b8   : > { %v2700_v52 = vpop.permute.xlu0 %2699  ;;  %v2798_v0 = vpop.permute.xlu1 %2797 }
 0x3b9   : > { %3199 = vmatmul.mubr.f32.gmra.mrb[80].mxu1 %v2867_v23  ;;  %v2900_v33 = vsel %vm984_vm5, %v2700_v52, %v2798_v0  ;;  %v2868_v39 = vsel %vm1247_vm6, %v6292_v47, %v2700_v52 }
 0x3ba   : > { %3203 = vmatprep.mubr.f32.mxu1 %v2900_v33 }
 0x3bc   : > { %v2702_v55 = vpop.permute.xlu0 %2701 }
 0x3bd   : > { %3204 = vmatmul.mubr.f32.gmra.mrb[82].mxu1 %v2868_v39  ;;  %v2869_v58 = vsel %vm1247_vm6, %v6301_v24, %v2702_v55 }
 0x3c0   : > { %v2800_v57 = vpop.permute.xlu1 %2799  ;;  %v2704_v7 = vpop.permute.xlu0 %2703 }
 0x3c1   : > { %v2901_v15 = vsel %vm984_vm5, %v2702_v55, %v2800_v57  ;;  %v2870_v50 = vsel %vm1247_vm6, %v6310_v19, %v2704_v7 }
 0x3c2   : > { %3208 = vmatprep.mubr.f32.mxu1 %v2901_v15 }
 0x3c3   : > { %3209 = vmatmul.mubr.f32.gmra.mrb[84].mxu1 %v2869_v58 }
 0x3c4   : > { %v2802_v34 = vpop.permute.xlu1 %2801  ;;  %v2706_v47 = vpop.permute.xlu0 %2705 }
 0x3c5   : > { %v2902_v22 = vsel %vm984_vm5, %v2704_v7, %v2802_v34  ;;  %v2871_v28 = vsel %vm1247_vm6, %v6319_v59, %v2706_v47 }
 0x3c6   : > { %3213 = vmatprep.mubr.f32.mxu1 %v2902_v22 }
 0x3c7   : > { %3214 = vmatmul.mubr.f32.gmra.mrb[86].mxu1 %v2870_v50 }
 0x3c8   : > { %v2708_v24 = vpop.permute.xlu0 %2707 }
 0x3c9   : > { %v2872_v54 = vsel %vm1247_vm6, %v6328_v44, %v2708_v24  ;;  %v6534_v44 = vld [vmem:[%s6999_s4] ss:$0 sm:$0xff] }
 0x3dc   : > { %v2804_v43 = vpop.permute.xlu1 %2803  ;;  %v2710_v19 = vpop.permute.xlu0 %2709 }
 0x3dd   : > { %v2903_v5 = vsel %vm984_vm5, %v2706_v47, %v2804_v43  ;;  %v2873_v1 = vsel %vm1247_vm6, %v6339_v40, %v2710_v19 }
 0x3de   : > { %3218 = vmatprep.mubr.f32.mxu1 %v2903_v5 }
 0x3df   : > { %3219 = vmatmul.mubr.f32.gmra.mrb[88].mxu1 %v2871_v28 }
 0x3ec   : > { %v2806_v45 = vpop.permute.xlu1 %2805  ;;  %v2712_v59 = vpop.permute.xlu0 %2711 }
 0x3ed   : > { %v2904_v27 = vsel %vm984_vm5, %v2708_v24, %v2806_v45  ;;  %v2874_v36 = vsel %vm1247_vm6, %v6350_v14, %v2712_v59 }
 0x3ee   : > { %3223 = vmatprep.mubr.f32.mxu1 %v2904_v27 }
 0x3ef   : > { %3224 = vmatmul.mubr.f32.gmra.mrb[90].mxu1 %v2872_v54 }
 0x3f4   : > { %v2808_v11 = vpop.permute.xlu1 %2807 }
 0x3f5   : > { %v2905_v42 = vsel %vm984_vm5, %v2710_v19, %v2808_v11 }
 0x3f6   : > { %3228 = vmatprep.mubr.f32.mxu1 %v2905_v42 }
 0x3f7   : > { %3229 = vmatmul.mubr.f32.gmra.mrb[92].mxu1 %v2873_v1 }
 0x404   : > { %v2810_v62 = vpop.permute.xlu1 %2809 }
 0x405   : > { %v2906_v10 = vsel %vm984_vm5, %v2712_v59, %v2810_v62 }
 0x406   : > { %3233 = vmatprep.mubr.f32.mxu1 %v2906_v10 }
 0x407   : > { %3234 = vmatmul.mubr.f32.gmra.mrb[94].mxu1 %v2874_v36 }
 0x408   : > { %4049 = vmatprep.mubr.msk.f32.mxu1 %vm331_vm0, %v6453_v32 }
 0x40b   : > { %4050 = vmatmul.mubr.msk.f32.vlgmr.msra.gmra.mrb[96].mxu1 %vm331_vm0, %v6459_v8 }
 0x40c   : > { %4052 = vmatprep.mubr.msk.f32.mxu1 %vm331_vm0, %v6465_v29 }
 0x40f   : > { %4053 = vmatmul.mubr.msk.f32.gmra.mrb[98].mxu1 %vm331_vm0, %v6471_v31 }
 0x410   : > { %4055 = vmatprep.mubr.msk.f32.mxu1 %vm331_vm0, %v6477_v48 }
 0x413   : > { %4056 = vmatmul.mubr.msk.f32.gmra.mrb[100].mxu1 %vm331_vm0, %v2794_v63 }
 0x414   : > { %4058 = vmatprep.mubr.msk.f32.mxu1 %vm331_vm0, %v2796_v18 }
 0x417   : > { %4059 = vmatmul.mubr.msk.f32.gmra.mrb[102].mxu1 %vm331_vm0, %v2798_v0 }
 0x418   : > { %4061 = vmatprep.mubr.msk.f32.mxu1 %vm331_vm0, %v2800_v57 }
 0x41b   : > { %4062 = vmatmul.mubr.msk.f32.gmra.mrb[104].mxu1 %vm331_vm0, %v2802_v34 }
 0x41c   : > { %4064 = vmatprep.mubr.msk.f32.mxu1 %vm331_vm0, %v2804_v43 }
 0x41f   : > { %4065 = vmatmul.mubr.msk.f32.gmra.mrb[106].mxu1 %vm331_vm0, %v2806_v45 }
 0x420   : > { %4067 = vmatprep.mubr.msk.f32.mxu1 %vm331_vm0, %v2808_v11 }
 0x423   : > { %4068 = vmatmul.mubr.msk.f32.gmra.mrb[108].mxu1 %vm331_vm0, %v2810_v62 }
 0x42c   : > { %v3080_v40 = vpop.f32.mrb[32].mxu1  ;;  %v4024_v14 = vpop.f32.mrb[64].mxu0 }
 0x42d   : > { %v3081_v2 = vadd.f32 %v6534_v44, %v3080_v40  ;;  %v3082_v26 = vpop.f32.mrb[33].mxu1  ;;  %v3305_v46 = vpop.f32.mrb[65].mxu0 }
 0x42f   : > { %v6537_v56 = vadd.f32 %v3305_v46, %v3081_v2 }
 0x430   : > { %v3085_v41 = vpop.f32.mrb[34].mxu1 }
 0x431   : > { %v3086_v32 = vadd.f32 %v6534_v44, %v3085_v41  ;;  %v3087_v12 = vpop.f32.mrb[35].mxu1  ;;  %vm3464_vm4 = vcmp.ge.f32.partialorder %v6537_v56, 0.0 }
 0x433   : > { %v6540_v6 = vadd.f32 %v4024_v14, %v3086_v32 }
 0x434   : > { %v3090_v37 = vpop.f32.mrb[36].mxu1  ;;  %v4027_v8 = vpop.f32.mrb[66].mxu0 }
 0x435   : > { %v3091_v38 = vadd.f32 %v6534_v44, %v3090_v37  ;;  %v3092_v35 = vpop.f32.mrb[37].mxu1  ;;  %v3315_v25 = vpop.f32.mrb[67].mxu0  ;;  %vm3465_vm3 = vcmp.ge.f32.partialorder %v6540_v6, 0.0 }
 0x437   : > { %v6543_v29 = vadd.f32 %v3315_v25, %v3091_v38 }
 0x438   : > { %v3095_v30 = vpop.f32.mrb[38].mxu1 }
 0x439   : > { %v3096_v61 = vadd.f32 %v6534_v44, %v3095_v30  ;;  %v3097_v9 = vpop.f32.mrb[39].mxu1  ;;  %vm3466_vm5 = vcmp.ge.f32.partialorder %v6543_v29, 0.0 }
 0x43b   : > { %v6546_v31 = vadd.f32 %v4027_v8, %v3096_v61 }
 0x43c   : > { %v3100_v49 = vpop.f32.mrb[40].mxu1  ;;  %v4030_v21 = vpop.f32.mrb[68].mxu0 }
 0x43d   : > { %v3101_v16 = vadd.f32 %v6534_v44, %v3100_v49  ;;  %v3102_v48 = vpop.f32.mrb[41].mxu1  ;;  %v3325_v17 = vpop.f32.mrb[69].mxu0  ;;  %vm3467_vm6 = vcmp.ge.f32.partialorder %v6546_v31, 0.0 }
 0x43f   : > { %v6549_v13 = vadd.f32 %v3325_v17, %v3101_v16 }
 0x440   : > { %v3105_v53 = vpop.f32.mrb[42].mxu1 }
 0x441   : > { %v3106_v63 = vadd.f32 %v6534_v44, %v3105_v53  ;;  %v3107_v4 = vpop.f32.mrb[43].mxu1  ;;  %vm3468_vm9 = vcmp.ge.f32.partialorder %v6549_v13, 0.0 }
 0x443   : > { %v6552_v60 = vadd.f32 %v4030_v21, %v3106_v63 }
 0x444   : > { %v3110_v51 = vpop.f32.mrb[44].mxu1  ;;  %v4033_v18 = vpop.f32.mrb[70].mxu0 }
 0x445   : > { %v3111_v20 = vadd.f32 %v6534_v44, %v3110_v51  ;;  %v3112_v3 = vpop.f32.mrb[45].mxu1  ;;  %v3335_v52 = vpop.f32.mrb[71].mxu0  ;;  %vm3469_vm10 = vcmp.ge.f32.partialorder %v6552_v60, 0.0 }
 0x447   : > { %v6555_v0 = vadd.f32 %v3335_v52, %v3111_v20 }
 0x448   : > { %v3115_v23 = vpop.f32.mrb[46].mxu1 }
 0x449   : > { %v3116_v33 = vadd.f32 %v6534_v44, %v3115_v23  ;;  %v3117_v39 = vpop.f32.mrb[47].mxu1  ;;  %vm3470_vm11 = vcmp.ge.f32.partialorder %v6555_v0, 0.0 }
 0x44b   : > { %v6558_v55 = vadd.f32 %v4033_v18, %v3116_v33 }
 0x44c   : > { %v3120_v57 = vpop.f32.mrb[48].mxu1  ;;  %v4036_v15 = vpop.f32.mrb[72].mxu0 }
 0x44d   : > { %v3121_v58 = vadd.f32 %v6534_v44, %v3120_v57  ;;  %v3122_v7 = vpop.f32.mrb[49].mxu1  ;;  %v3345_v34 = vpop.f32.mrb[73].mxu0  ;;  %vm3471_vm12 = vcmp.ge.f32.partialorder %v6558_v55, 0.0 }
 0x44f   : > { %v6561_v22 = vadd.f32 %v3345_v34, %v3121_v58 }
 0x450   : > { %v3125_v50 = vpop.f32.mrb[50].mxu1 }
 0x451   : > { %v3126_v47 = vadd.f32 %v6534_v44, %v3125_v50  ;;  %v3127_v43 = vpop.f32.mrb[51].mxu1  ;;  %vm3472_vm13 = vcmp.ge.f32.partialorder %v6561_v22, 0.0 }
 0x453   : > { %v6564_v5 = vadd.f32 %v4036_v15, %v3126_v47 }
 0x454   : > { %v3130_v28 = vpop.f32.mrb[52].mxu1  ;;  %v4039_v24 = vpop.f32.mrb[74].mxu0 }
 0x455   : > { %v3131_v45 = vadd.f32 %v6534_v44, %v3130_v28  ;;  %v3132_v27 = vpop.f32.mrb[53].mxu1  ;;  %v3355_v54 = vpop.f32.mrb[75].mxu0  ;;  %vm3473_vm14 = vcmp.ge.f32.partialorder %v6564_v5, 0.0 }
 0x457   : > { %v6567_v19 = vadd.f32 %v3355_v54, %v3131_v45 }
 0x458   : > { %v3135_v11 = vpop.f32.mrb[54].mxu1 }
 0x459   : > { %v3136_v42 = vadd.f32 %v6534_v44, %v3135_v11  ;;  %v3137_v1 = vpop.f32.mrb[55].mxu1  ;;  %vm3474_vm15 = vcmp.ge.f32.partialorder %v6567_v19, 0.0 }
 0x45b   : > { %v6570_v59 = vadd.f32 %v4039_v24, %v3136_v42 }
 0x45c   : > { %v3140_v62 = vpop.f32.mrb[56].mxu1  ;;  %v4042_v10 = vpop.f32.mrb[76].mxu0 }
 0x45d   : > { %v3141_v36 = vadd.f32 %v6534_v44, %v3140_v62  ;;  %v3142_v40 = vpop.f32.mrb[57].mxu1  ;;  %v3365_v14 = vpop.f32.mrb[77].mxu0  ;;  %vm3475_vm1 = vcmp.ge.f32.partialorder %v6570_v59, 0.0 }
 0x45e   : > { %v3498_v40 = vmul.f32 0.01, %v6543_v29 }
 0x45f   : > { %v6573_v2 = vadd.f32 %v3365_v14, %v3141_v36  ;;  %v3496_v36 = vmul.f32 0.01, %v6537_v56 }
 0x460   : > { %v3145_v26 = vpop.f32.mrb[58].mxu1 }
 0x461   : > { %v3146_v46 = vadd.f32 %v6534_v44, %v3145_v26  ;;  %v3147_v41 = vpop.f32.mrb[59].mxu1  ;;  %v3499_v26 = vmul.f32 0.01, %v6546_v31  ;;  %vm3476_vm7 = vcmp.ge.f32.partialorder %v6573_v2, 0.0 }
 0x462   : > { %v6627_v41 = vsel %vm3466_vm5, %v6543_v29, %v3498_v40 }
 0x463   : > { %v6576_v32 = vadd.f32 %v4042_v10, %v3146_v46  ;;  %v3497_v10 = vmul.f32 0.01, %v6540_v6  ;;  %v6624_v46 = vsel %vm3464_vm4, %v6537_v56, %v3496_v36  ;;  %v3563_v29 = vsel %vm331_vm0, %v6627_v41, 0.0 }
 0x464   : > { %v3150_v12 = vpop.f32.mrb[60].mxu1  ;;  %v4045_v37 = vpop.f32.mrb[78].mxu0  ;;  %v3560_v56 = vsel %vm331_vm0, %v6624_v46, 0.0 }
 0x465   : > { %v3151_v8 = vadd.f32 %v6534_v44, %v3150_v12  ;;  %v3152_v38 = vpop.f32.mrb[61].mxu1  ;;  %v3375_v35 = vpop.f32.mrb[79].mxu0  ;;  %v6619_v14 = vsel %vm3465_vm3, %v6540_v6, %v3497_v10  ;;  %v3500_v12 = vmul.f32 0.01, %v6549_v13  ;;  %v6634_v6 = vsel %vm3467_vm6, %v6546_v31, %v3499_v26 }
 0x466   : > { %v3502_v31 = vmul.f32 0.01, %v6555_v0  ;;  %v3508_v10 = vmul.f32 0.01, %v6573_v2  ;;  %v3509_v26 = vmul.f32 0.01, %v6576_v32 }
 0x467   : > { %v6579_v25 = vadd.f32 %v3375_v35, %v3151_v8  ;;  %v3501_v8 = vmul.f32 0.01, %v6552_v60  ;;  %vm3477_vm8 = vcmp.ge.f32.partialorder %v6576_v32, 0.0 }
 0x468   : > { %v3155_v30 = vpop.f32.mrb[62].mxu1 }
 0x469   : > { %v3156_v61 = vadd.f32 %v6534_v44, %v3155_v30  ;;  %v3157_v9 = vpop.f32.mrb[63].mxu1  ;;  %vm3478_vm3 = vcmp.ge.f32.partialorder %v6579_v25, 0.0 }
 0x46a   : > { %v3565_v9 = vsel %vm331_vm0, %v6634_v6, 0.0 }
 0x46b   : > { %v6582_v49 = vadd.f32 %v4045_v37, %v3156_v61  ;;  %v3561_v37 = vsel %vm331_vm0, %v6619_v14, 0.0  ;;  %v6645_v61 = vsel %vm3468_vm9, %v6549_v13, %v3500_v12 }
 0x46c   : > { %v3160_v21 = vpop.f32.mrb[64].mxu1  ;;  %v4048_v16 = vpop.f32.mrb[80].mxu0  ;;  %v3562_v30 = vadd.f32 %v3561_v37, %v3560_v56  ;;  %v6703_v37 = vsel %vm3476_vm7, %v6573_v2, %v3508_v10 }
 0x46d   : > { %v3161_v48 = vadd.f32 %v6534_v44, %v3160_v21  ;;  %v3162_v17 = vpop.f32.mrb[65].mxu1  ;;  %v3385_v53 = vpop.f32.mrb[81].mxu0  ;;  %vm3479_vm4 = vcmp.ge.f32.partialorder %v6582_v49, 0.0 }
 0x46e   : > { %v3564_v21 = vadd.f32 %v3563_v29, %v3562_v30  ;;  %v3567_v17 = vsel %vm331_vm0, %v6645_v61, 0.0  ;;  %v6710_v29 = vsel %vm3477_vm8, %v6576_v32, %v3509_v26  ;;  %v3583_v30 = vsel %vm331_vm0, %v6703_v37, 0.0 }
 0x46f   : > { %v6585_v63 = vadd.f32 %v3385_v53, %v3161_v48  ;;  %v3503_v48 = vmul.f32 0.01, %v6558_v55  ;;  %v6659_v53 = vsel %vm3470_vm11, %v6555_v0, %v3502_v31 }
 0x470   : > { %v3165_v4 = vpop.f32.mrb[66].mxu1  ;;  %v3566_v13 = vadd.f32 %v3565_v9, %v3564_v21  ;;  %v3585_v21 = vsel %vm331_vm0, %v6710_v29, 0.0 }
 0x471   : > { %v3166_v51 = vadd.f32 %v6534_v44, %v3165_v4  ;;  %v3167_v18 = vpop.f32.mrb[67].mxu1  ;;  %v3504_v4 = vmul.f32 0.01, %v6561_v22  ;;  %v3512_v9 = vmul.f32 0.01, %v6585_v63  ;;  %vm3480_vm5 = vcmp.ge.f32.partialorder %v6585_v63, 0.0 }
 0x472   : > { %v6666_v18 = vsel %vm3471_vm12, %v6558_v55, %v3503_v48 }
 0x473   : > { %v6588_v20 = vadd.f32 %v4048_v16, %v3166_v51  ;;  %v6652_v16 = vsel %vm3469_vm10, %v6552_v60, %v3501_v8  ;;  %v3568_v60 = vadd.f32 %v3567_v17, %v3566_v13  ;;  %v3573_v55 = vsel %vm331_vm0, %v6666_v18, 0.0 }
 0x474   : > { %v6590_v3 = vpop.f32.mrb[68].mxu1  ;;  %v3569_v51 = vsel %vm331_vm0, %v6652_v16, 0.0  ;;  %v3510_v8 = vmul.f32 0.01, %v6579_v25 }
 0x475   : > { %v3172_v52 = vpop.f32.mrb[69].mxu1  ;;  %v3513_v17 = vmul.f32 0.01, %v6588_v20  ;;  %vm3481_vm6 = vcmp.ge.f32.partialorder %v6588_v20, 0.0 }
 0x476   : > { %v3505_v52 = vmul.f32 0.01, %v6564_v5  ;;  %v6717_v31 = vsel %vm3478_vm3, %v6579_v25, %v3510_v8 }
 0x478   : > { %v6592_v23 = vpop.f32.mrb[70].mxu1 }
 0x479   : > { %v3177_v33 = vpop.f32.mrb[71].mxu1 }
 0x47c   : > { %v6594_v39 = vpop.f32.mrb[72].mxu1 }
 0x47d   : > { %v3182_v57 = vpop.f32.mrb[73].mxu1 }
 0x47e   : > { %v3571_v57 = vsel %vm331_vm0, %v6659_v53, 0.0 }
 0x480   : > { %v6596_v15 = vpop.f32.mrb[74].mxu1 }
 0x481   : > { %v3187_v58 = vpop.f32.mrb[75].mxu1 }
 0x482   : > { %v3570_v58 = vadd.f32 %v3569_v51, %v3568_v60  ;;  %v6733_v60 = vsel %vm3480_vm5, %v6585_v63, %v3512_v9 }
 0x484   : > { %v6598_v7 = vpop.f32.mrb[76].mxu1 }
 0x485   : > { %v3192_v34 = vpop.f32.mrb[77].mxu1 }
 0x486   : > { %v6675_v34 = vsel %vm3472_vm13, %v6561_v22, %v3504_v4  ;;  %v3587_v4 = vsel %vm331_vm0, %v6717_v31, 0.0 }
 0x488   : > { %v6600_v50 = vpop.f32.mrb[78].mxu1 }
 0x489   : > { %v3197_v47 = vpop.f32.mrb[79].mxu1 }
 0x48a   : > { %v3506_v47 = vmul.f32 0.01, %v6567_v19 }
 0x48c   : > { %v6602_v43 = vpop.f32.mrb[80].mxu1 }
 0x48d   : > { %v3202_v28 = vpop.f32.mrb[81].mxu1 }
 0x48e   : > { %v3572_v28 = vadd.f32 %v3571_v57, %v3570_v58  ;;  %v3171_v58 = vadd.f32 %v6534_v44, %v6590_v3  ;;  %v3181_v3 = vadd.f32 %v6534_v44, %v6594_v39  ;;  %v3191_v39 = vadd.f32 %v6534_v44, %v6598_v7 }
 0x490   : > { %v6604_v24 = vpop.f32.mrb[82].mxu1  ;;  %v3574_v22 = vadd.f32 %v3573_v55, %v3572_v28  ;;  %v3591_v55 = vsel %vm331_vm0, %v6733_v60, 0.0 }
 0x491   : > { %v3207_v45 = vpop.f32.mrb[83].mxu1 }
 0x492   : > { %v6682_v45 = vsel %vm3473_vm14, %v6564_v5, %v3505_v52 }
 0x493   : > { %v3577_v36 = vsel %vm331_vm0, %v6682_v45, 0.0 }
 0x496   : > { %v6606_v27 = vpop.f32.mrb[84].mxu1 }
 0x497   : > { %v3212_v54 = vpop.f32.mrb[85].mxu1 }
 0x498   : > { %v3507_v54 = vmul.f32 0.01, %v6570_v59 }
 0x49a   : > { %v6608_v11 = vpop.f32.mrb[86].mxu1  ;;  %v6696_v40 = vsel %vm3475_vm1, %v6570_v59, %v3507_v54 }
 0x49b   : > { %v3217_v42 = vpop.f32.mrb[87].mxu1  ;;  %v3581_v56 = vsel %vm331_vm0, %v6696_v40, 0.0 }
 0x49c   : > { %v3575_v42 = vsel %vm331_vm0, %v6675_v34, 0.0 }
 0x49d   : > { %v3576_v5 = vadd.f32 %v3575_v42, %v3574_v22 }
 0x4b2   : > { %v6610_v1 = vpop.f32.mrb[88].mxu1 }
 0x4b3   : > { %v3222_v62 = vpop.f32.mrb[89].mxu1 }
 0x4b4   : > { %v6689_v62 = vsel %vm3474_vm15, %v6567_v19, %v3506_v47  ;;  %v3578_v19 = vadd.f32 %v3577_v36, %v3576_v5 }
 0x4b5   : > { %v3579_v12 = vsel %vm331_vm0, %v6689_v62, 0.0 }
 0x4b6   : > { %v3580_v59 = vadd.f32 %v3579_v12, %v3578_v19 }
 0x4b8   : > { %v3582_v2 = vadd.f32 %v3581_v56, %v3580_v59 }
 0x4ba   : > { %v3584_v32 = vadd.f32 %v3583_v30, %v3582_v2 }
 0x4bc   : > { %v3586_v51 = vadd.f32 %v3585_v21, %v3584_v32 }
 0x4be   : > { %v3588_v57 = vadd.f32 %v3587_v4, %v3586_v51 }
 0x4c2   : > { %v6637_v38 = vpop.f32.mrb[90].mxu1 }
 0x4c3   : > { %v3227_v35 = vpop.f32.mrb[91].mxu1 }
 0x4c4   : > { %v3511_v35 = vmul.f32 0.01, %v6582_v49 }
 0x4c6   : > { %v6724_v48 = vsel %vm3479_vm4, %v6582_v49, %v3511_v35  ;;  %v3176_v49 = vadd.f32 %v6534_v44, %v6592_v23  ;;  %v3186_v23 = vadd.f32 %v6534_v44, %v6596_v15  ;;  %v3196_v15 = vadd.f32 %v6534_v44, %v6600_v50 }
 0x4c7   : > { %v3589_v52 = vsel %vm331_vm0, %v6724_v48, 0.0 }
 0x4c8   : > { %v3590_v54 = vadd.f32 %v3589_v52, %v3588_v57 }
 0x4ca   : > { %v6669_v33 = vpop.f32.mrb[92].mxu1  ;;  %v3592_v10 = vadd.f32 %v3591_v55, %v3590_v54 }
 0x4cb   : > { %v3232_v0 = vpop.f32.mrb[93].mxu1 }
 0x4cc   : > { %v6740_v0 = vsel %vm3481_vm6, %v6588_v20, %v3513_v17 }
 0x4cd   : > { %v3593_v22 = vsel %vm331_vm0, %v6740_v0, 0.0 }
 0x4ce   : > { %v3594_v56 = vadd.f32 %v3593_v22, %v3592_v10  ;;  %v3216_v10 = vadd.f32 %v6534_v44, %v6608_v11 }
 0x4da   : > { %v6727_v13 = vpop.f32.mrb[94].mxu1 }
 0x4db   : > { %v3237_v25 = vpop.f32.mrb[95].mxu1 }
 0x4de   : > { %v4051_v47 = vpop.f32.mrb[96].mxu1 }
 0x4df   : > { %v3401_v28 = vadd.f32 %v4051_v47, %v3176_v49  ;;  %v3395_v63 = vpop.f32.mrb[97].mxu1  ;;  %v3206_v49 = vadd.f32 %v6534_v44, %v6604_v24 }
 0x4e0   : > { %v3396_v42 = vadd.f32 %v3395_v63, %v3171_v58  ;;  %v3201_v58 = vadd.f32 %v6534_v44, %v6602_v43 }
 0x4e1   : > { %vm3483_vm9 = vcmp.ge.f32.partialorder %v3401_v28, 0.0  ;;  %v3515_v20 = vmul.f32 0.01, %v3401_v28 }
 0x4e2   : > { %vm3482_vm10 = vcmp.ge.f32.partialorder %v3396_v42, 0.0  ;;  %v3514_v36 = vmul.f32 0.01, %v3396_v42  ;;  %v4054_v5 = vpop.f32.mrb[98].mxu1 }
 0x4e3   : > { %v3411_v26 = vadd.f32 %v4054_v5, %v3186_v23  ;;  %v3405_v12 = vpop.f32.mrb[99].mxu1  ;;  %v6752_v19 = vsel %vm3483_vm9, %v3401_v28, %v3515_v20 }
 0x4e4   : > { %v6754_v8 = vsel %vm3482_vm10, %v3396_v42, %v3514_v36  ;;  %v3406_v59 = vadd.f32 %v3405_v12, %v3181_v3  ;;  %v3597_v32 = vsel %vm331_vm0, %v6752_v19, 0.0  ;;  %v3211_v36 = vadd.f32 %v6534_v44, %v6606_v27 }
 0x4e5   : > { %v3595_v35 = vsel %vm331_vm0, %v6754_v8, 0.0  ;;  %vm3485_vm11 = vcmp.ge.f32.partialorder %v3411_v26, 0.0  ;;  %v3517_v30 = vmul.f32 0.01, %v3411_v26 }
 0x4e6   : > { %v3596_v2 = vadd.f32 %v3595_v35, %v3594_v56  ;;  %vm3484_vm12 = vcmp.ge.f32.partialorder %v3406_v59, 0.0  ;;  %v3516_v9 = vmul.f32 0.01, %v3406_v59  ;;  %v4057_v21 = vpop.f32.mrb[100].mxu1 }
 0x4e7   : > { %v3421_v17 = vadd.f32 %v4057_v21, %v3196_v15  ;;  %v3415_v4 = vpop.f32.mrb[101].mxu1  ;;  %v6764_v25 = vsel %vm3485_vm11, %v3411_v26, %v3517_v30  ;;  %v3221_v21 = vadd.f32 %v6534_v44, %v6610_v1 }
 0x4e8   : > { %v6766_v50 = vsel %vm3484_vm12, %v3406_v59, %v3516_v9  ;;  %v3598_v51 = vadd.f32 %v3597_v32, %v3596_v2  ;;  %v3416_v52 = vadd.f32 %v3415_v4, %v3191_v39  ;;  %v3601_v63 = vsel %vm331_vm0, %v6764_v25, 0.0 }
 0x4e9   : > { %v3599_v7 = vsel %vm331_vm0, %v6766_v50, 0.0  ;;  %vm3487_vm13 = vcmp.ge.f32.partialorder %v3421_v17, 0.0  ;;  %v3519_v57 = vmul.f32 0.01, %v3421_v17  ;;  %v3226_v2 = vadd.f32 %v6534_v44, %v6637_v38 }
 0x4ea   : > { %v3600_v47 = vadd.f32 %v3599_v7, %v3598_v51  ;;  %vm3486_vm14 = vcmp.ge.f32.partialorder %v3416_v52, 0.0  ;;  %v3518_v55 = vmul.f32 0.01, %v3416_v52  ;;  %v4060_v28 = vpop.f32.mrb[102].mxu1 }
 0x4eb   : > { %v3431_v54 = vadd.f32 %v4060_v28, %v3206_v49  ;;  %v3425_v42 = vpop.f32.mrb[103].mxu1  ;;  %v6776_v22 = vsel %vm3487_vm13, %v3421_v17, %v3519_v57  ;;  %v3231_v28 = vadd.f32 %v6534_v44, %v6669_v33 }
 0x4ec   : > { %v6778_v24 = vsel %vm3486_vm14, %v3416_v52, %v3518_v55  ;;  %v3602_v23 = vadd.f32 %v3601_v63, %v3600_v47  ;;  %v3426_v20 = vadd.f32 %v3425_v42, %v3201_v58  ;;  %v3605_v56 = vsel %vm331_vm0, %v6776_v22, 0.0 }
 0x4ed   : > { %v3603_v43 = vsel %vm331_vm0, %v6778_v24, 0.0  ;;  %vm3489_vm15 = vcmp.ge.f32.partialorder %v3431_v54, 0.0  ;;  %v3521_v3 = vmul.f32 0.01, %v3431_v54  ;;  %v3236_v47 = vadd.f32 %v6534_v44, %v6727_v13 }
 0x4ee   : > { %v3604_v5 = vadd.f32 %v3603_v43, %v3602_v23  ;;  %vm3488_vm1 = vcmp.ge.f32.partialorder %v3426_v20, 0.0  ;;  %v3520_v26 = vmul.f32 0.01, %v3426_v20  ;;  %v4063_v12 = vpop.f32.mrb[104].mxu1 }
 0x4ef   : > { %v3441_v59 = vadd.f32 %v4063_v12, %v3216_v10  ;;  %v3435_v15 = vpop.f32.mrb[105].mxu1  ;;  %v6788_v35 = vsel %vm3489_vm15, %v3431_v54, %v3521_v3 }
 0x4f0   : > { %v6790_v11 = vsel %vm3488_vm1, %v3426_v20, %v3520_v26  ;;  %v3606_v30 = vadd.f32 %v3605_v56, %v3604_v5  ;;  %v3436_v39 = vadd.f32 %v3435_v15, %v3211_v36  ;;  %v3609_v51 = vsel %vm331_vm0, %v6788_v35, 0.0 }
 0x4f1   : > { %v3607_v27 = vsel %vm331_vm0, %v6790_v11, 0.0  ;;  %vm3491_vm7 = vcmp.ge.f32.partialorder %v3441_v59, 0.0  ;;  %v3523_v9 = vmul.f32 0.01, %v3441_v59 }
 0x4f2   : > { %v3608_v32 = vadd.f32 %v3607_v27, %v3606_v30  ;;  %vm3490_vm8 = vcmp.ge.f32.partialorder %v3436_v39, 0.0  ;;  %v3522_v17 = vmul.f32 0.01, %v3436_v39  ;;  %v4066_v4 = vpop.f32.mrb[106].mxu1 }
 0x4f3   : > { %v3451_v52 = vadd.f32 %v4066_v4, %v3226_v2  ;;  %v3445_v49 = vpop.f32.mrb[107].mxu1  ;;  %v6800_v7 = vsel %vm3491_vm7, %v3441_v59, %v3523_v9 }
 0x4f4   : > { %v6802_v38 = vsel %vm3490_vm8, %v3436_v39, %v3522_v17  ;;  %v3610_v57 = vadd.f32 %v3609_v51, %v3608_v32  ;;  %v3446_v58 = vadd.f32 %v3445_v49, %v3221_v21  ;;  %v3613_v23 = vsel %vm331_vm0, %v6800_v7, 0.0 }
 0x4f5   : > { %v3611_v1 = vsel %vm331_vm0, %v6802_v38, 0.0  ;;  %vm3493_vm3 = vcmp.ge.f32.partialorder %v3451_v52, 0.0  ;;  %v3525_v55 = vmul.f32 0.01, %v3451_v52 }
 0x4f6   : > { %v3612_v63 = vadd.f32 %v3611_v1, %v3610_v57  ;;  %vm3492_vm4 = vcmp.ge.f32.partialorder %v3446_v58, 0.0  ;;  %v3524_v54 = vmul.f32 0.01, %v3446_v58  ;;  %v4069_v42 = vpop.f32.mrb[108].mxu1  ;;  %v3635_v1 = vld [vmem:[%s7001_s6] sm:$0x3] }
 0x4f7   : > { %v3461_v20 = vadd.f32 %v4069_v42, %v3236_v47  ;;  %v3455_v10 = vpop.f32.mrb[109].mxu1  ;;  %v6812_v43 = vsel %vm3493_vm3, %v3451_v52, %v3525_v55  ;;  %v3630_v52 = vld [vmem:[%s7000_s5] sm:$0x3]  ;;  %v4443_v47 = vmov 0  }
 0x4f8   : > { %v6814_v13 = vsel %vm3492_vm4, %v3446_v58, %v3524_v54  ;;  %v3614_v3 = vadd.f32 %v3613_v23, %v3612_v63  ;;  %v3456_v36 = vadd.f32 %v3455_v10, %v3231_v28  ;;  %v3617_v12 = vsel %vm331_vm0, %v6812_v43, 0.0  ;;  %4353 = vset.pattern.permute.xlu1 %v4443_v47  ;;  %4354 = vset.pattern.permute.xlu0 %v4443_v47  ;;  %v3640_v42 = vld [vmem:[%s7002_s7] sm:$0x3] }
 0x4f9   : > { %v3615_v5 = vsel %vm331_vm0, %v6814_v13, 0.0  ;;  %vm3495_vm5 = vcmp.ge.f32.partialorder %v3461_v20, 0.0  ;;  %v3527_v44 = vmul.f32 0.01, %v3461_v20 }
 0x4fa   : > { %v3616_v33 = vadd.f32 %v3615_v5, %v3614_v3  ;;  %vm3494_vm6 = vcmp.ge.f32.partialorder %v3456_v36, 0.0  ;;  %v3526_v26 = vmul.f32 0.01, %v3456_v36 }
 0x4fb   : > { %v6820_v56 = vsel %vm3495_vm5, %v3461_v20, %v3527_v44 }
 0x4fc   : > { %v6822_v59 = vsel %vm3494_vm6, %v3456_v36, %v3526_v26  ;;  %v3618_v15 = vadd.f32 %v3617_v12, %v3616_v33  ;;  %v3621_v2 = vsel %vm331_vm0, %v6820_v56, 0.0  ;;  %v3654_v26 = vld [vmem:[%s7003_s8] sm:$0x1] }
 0x4fd   : > { %v3619_v30 = vsel %vm331_vm0, %v6822_v59, 0.0 }
 0x4fe   : > { %v3620_v39 = vadd.f32 %v3619_v30, %v3618_v15 }
 0x500   : > { %v3622_v27 = vadd.f32 %v3621_v2, %v3620_v39 }
 0x502   : > { %v3623_v9 = vrot.slane %v3622_v27, 4 }
 0x504   : > { %v3624_v21 = vadd.f32 %v3623_v9, %v3622_v27  ;;  %v3662_v9 = vlaneseq }
 0x506   : > { %v3625_v32 = vrot.slane %v3624_v21, 2 }
 0x508   : > { %v3626_v17 = vadd.f32 %v3625_v32, %v3624_v21  ;;  %v3663_v21 = vshrl.u32 %v3662_v9, 7 }
 0x50a   : > { %v3627_v4 = vrot.slane %v3626_v17, 1  ;;  %v3664_v32 = vsub.s32 0, %v3663_v21 }
 0x50c   : > { %v3628_v51 = vadd.f32 %v3627_v4, %v3626_v17 }
 0x50e   : > { %v3629_v49 = vmul.f32 0.00390625, %v3628_v51 }
 0x510   : > { %v3631_v57 = vmul.f32 %v3630_v52, %v3629_v49 }
 0x512   : > { %v3632_v58 = vsel %vm334_vm2, %v3631_v57, 0.0 }
 0x513   : > { %3633 = vadd.xlane.f32.xlu0 %v3632_v58 }
 0x5a0   : > { %v3634_v55 = vpop.xlane.xlu0 %3633 }
 0x5a1   : > { %v3636_v28 = vadd.f32 %v3635_v1, %v3634_v55 }
 0x5a3   : > { %vm3637_vm9 = vcmp.ge.f32.partialorder %v3636_v28, 0.0  ;;  %v3638_v63 = vmul.f32 0.01, %v3636_v28 }
 0x5a5   : > { %v3639_v54 = vsel %vm3637_vm9, %v3636_v28, %v3638_v63 }
 0x5a6   : > { %3643 = vperm.xlu1 %4353, %v3639_v54  }
 0x625   : > { %v3644_v23 = vpop.permute.xlu1 %3643 }
 0x626   : > { %v3646_v20 = vmul.f32 %v3644_v23, %v3640_v42 }
 0x628   : > { %v3647_v10 = vsel %vm334_vm2, %v3646_v20, 0.0 }
 0x629   : > { %v3648_v3 = vrot.slane %v3647_v10, 4 }
 0x62b   : > { %v3649_v36 = vadd.f32 %v3648_v3, %v3647_v10 }
 0x62d   : > { %v3650_v5 = vrot.slane %v3649_v36, 2 }
 0x62f   : > { %v3651_v44 = vadd.f32 %v3650_v5, %v3649_v36 }
 0x631   : > { %v3652_v33 = vrot.slane %v3651_v44, 1 }
 0x633   : > { %v3653_v12 = vadd.f32 %v3652_v33, %v3651_v44 }
 0x635   : > { %v3655_v15 = vadd.f32 %v3654_v26, %v3653_v12 }
 0x637   : > { %v3656_v30 = vsub.f32 0.0, %v3655_v15 }
 0x639   : > { %v3657_v39 = vmul.f32 1.442695, %v3656_v30 }
 0x63b   : > { %4355 = vpow2.f32 %v3657_v39 }
 0x645   : > { %v4356_v2 = vpop.eup %4355 }
 0x646   : > { %v3659_v27 = vadd.f32 1.0, %v4356_v2 }
 0x648   : > { %4357 = vrcp.f32 %v3659_v27 }
 0x652   : > { %v4358_v17 = vpop.eup %4357 }
 0x653   : > { %v3665_v4 = vrot.slane %v4358_v17, %v3664_v32 }
 0x655   : > { %v3666_v51 = vmul.f32 %v3665_v4, %v6624_v46  ;;  %v3667_v52 = vmul.f32 %v3665_v4, %v6619_v14  ;;  %v3668_v49 = vmul.f32 %v3665_v4, %v6627_v41  ;;  %v3669_v57 = vmul.f32 %v3665_v4, %v6634_v6 }
 0x656   : > { %v3670_v58 = vmul.f32 %v3665_v4, %v6645_v61  ;;  %v3671_v47 = vmul.f32 %v3665_v4, %v6652_v16  ;;  %v3672_v1 = vmul.f32 %v3665_v4, %v6659_v53  ;;  %v3673_v55 = vmul.f32 %v3665_v4, %v6666_v18 }
 0x657   : > { %v3674_v28 = vmul.f32 %v3665_v4, %v6675_v34  ;;  %v3675_v63 = vmul.f32 %v3665_v4, %v6682_v45  ;;  %v3676_v46 = vmul.f32 %v3665_v4, %v6689_v62  ;;  %v3677_v14 = vmul.f32 %v3665_v4, %v6696_v40  ;;  %3698 = vst.msk [vmem:[%s6857_s26] sm:$0xff] %vm331_vm0, %v3666_v51 }
 0x658   : > { %3699 = vst.msk [vmem:[%s6857_s26 + $0x8] sm:$0xff] %vm331_vm0, %v3667_v52  ;;  %3700 = vst.msk [vmem:[%s6857_s26 + $0x10] sm:$0xff] %vm331_vm0, %v3668_v49  ;;  %v3678_v41 = vmul.f32 %v3665_v4, %v6703_v37  ;;  %v3679_v6 = vmul.f32 %v3665_v4, %v6710_v29  ;;  %v3680_v61 = vmul.f32 %v3665_v4, %v6717_v31 }
 0x659   : > { %3701 = vst.msk [vmem:[%s6857_s26 + $0x18] sm:$0xff] %vm331_vm0, %v3669_v57  ;;  %v3681_v16 = vmul.f32 %v3665_v4, %v6724_v48  ;;  %3702 = vst.msk [vmem:[%s6857_s26 + $0x20] sm:$0xff] %vm331_vm0, %v3670_v58  ;;  %v3682_v53 = vmul.f32 %v3665_v4, %v6733_v60  ;;  %v3683_v18 = vmul.f32 %v3665_v4, %v6740_v0 }
 0x65a   : > { %3703 = vst.msk [vmem:[%s6857_s26 + $0x28] sm:$0xff] %vm331_vm0, %v3671_v47  ;;  %3704 = vst.msk [vmem:[%s6857_s26 + $0x30] sm:$0xff] %vm331_vm0, %v3672_v1  ;;  %v3684_v34 = vmul.f32 %v3665_v4, %v6754_v8  ;;  %v3685_v45 = vmul.f32 %v3665_v4, %v6752_v19  ;;  %v3686_v62 = vmul.f32 %v3665_v4, %v6766_v50 }
 0x65b   : > { %3705 = vst.msk [vmem:[%s6857_s26 + $0x38] sm:$0xff] %vm331_vm0, %v3673_v55  ;;  %3706 = vst.msk [vmem:[%s6857_s26 + $0x40] sm:$0xff] %vm331_vm0, %v3674_v28  ;;  %v3687_v40 = vmul.f32 %v3665_v4, %v6764_v25  ;;  %v3688_v37 = vmul.f32 %v3665_v4, %v6778_v24  ;;  %v3689_v29 = vmul.f32 %v3665_v4, %v6776_v22 }
 0x65c   : > { %3707 = vst.msk [vmem:[%s6857_s26 + $0x48] sm:$0xff] %vm331_vm0, %v3675_v63  ;;  %3708 = vst.msk [vmem:[%s6857_s26 + $0x50] sm:$0xff] %vm331_vm0, %v3676_v46  ;;  %v3690_v31 = vmul.f32 %v3665_v4, %v6790_v11  ;;  %v3691_v48 = vmul.f32 %v3665_v4, %v6788_v35  ;;  %v3692_v60 = vmul.f32 %v3665_v4, %v6802_v38 }
 0x65d   : > { %3709 = vst.msk [vmem:[%s6857_s26 + $0x58] sm:$0xff] %vm331_vm0, %v3677_v14  ;;  %3710 = vst.msk [vmem:[%s6857_s26 + $0x60] sm:$0xff] %vm331_vm0, %v3678_v41  ;;  %v3693_v0 = vmul.f32 %v3665_v4, %v6800_v7  ;;  %v3694_v19 = vmul.f32 %v3665_v4, %v6814_v13  ;;  %v3695_v8 = vmul.f32 %v3665_v4, %v6812_v43 }
 0x65e   : > { %3711 = vst.msk [vmem:[%s6857_s26 + $0x68] sm:$0xff] %vm331_vm0, %v3679_v6  ;;  %3712 = vst.msk [vmem:[%s6857_s26 + $0x70] sm:$0xff] %vm331_vm0, %v3680_v61  ;;  %v3696_v25 = vmul.f32 %v3665_v4, %v6822_v59  ;;  %v3697_v50 = vmul.f32 %v3665_v4, %v6820_v56 }
 0x65f   : > { %3713 = vst.msk [vmem:[%s6857_s26 + $0x78] sm:$0xff] %vm331_vm0, %v3681_v16  ;;  %3714 = vst.msk [vmem:[%s6857_s26 + $0x80] sm:$0xff] %vm331_vm0, %v3682_v53 }
 0x660   : > { %3715 = vst.msk [vmem:[%s6857_s26 + $0x88] sm:$0xff] %vm331_vm0, %v3683_v18  ;;  %3716 = vst.msk [vmem:[%s6857_s26 + $0x90] sm:$0xff] %vm331_vm0, %v3684_v34 }
 0x661   : > { %3717 = vst.msk [vmem:[%s6857_s26 + $0x98] sm:$0xff] %vm331_vm0, %v3685_v45  ;;  %3718 = vst.msk [vmem:[%s6857_s26 + $0xa0] sm:$0xff] %vm331_vm0, %v3686_v62 }
 0x662   : > { %3719 = vst.msk [vmem:[%s6857_s26 + $0xa8] sm:$0xff] %vm331_vm0, %v3687_v40  ;;  %3720 = vst.msk [vmem:[%s6857_s26 + $0xb0] sm:$0xff] %vm331_vm0, %v3688_v37 }
 0x663   : > { %3721 = vst.msk [vmem:[%s6857_s26 + $0xb8] sm:$0xff] %vm331_vm0, %v3689_v29  ;;  %3722 = vst.msk [vmem:[%s6857_s26 + $0xc0] sm:$0xff] %vm331_vm0, %v3690_v31 }
 0x664   : > { %3723 = vst.msk [vmem:[%s6857_s26 + $0xc8] sm:$0xff] %vm331_vm0, %v3691_v48  ;;  %3724 = vst.msk [vmem:[%s6857_s26 + $0xd0] sm:$0xff] %vm331_vm0, %v3692_v60 }
 0x665   : > { %3725 = vst.msk [vmem:[%s6857_s26 + $0xd8] sm:$0xff] %vm331_vm0, %v3693_v0  ;;  %3726 = vst.msk [vmem:[%s6857_s26 + $0xe0] sm:$0xff] %vm331_vm0, %v3694_v19 }
 0x666   : > { %3727 = vst.msk [vmem:[%s6857_s26 + $0xe8] sm:$0xff] %vm331_vm0, %v3695_v8  ;;  %3728 = vst.msk [vmem:[%s6857_s26 + $0xf0] sm:$0xff] %vm331_vm0, %v3696_v25 }
 0x667   : > { %3729 = vst.msk [vmem:[%s6857_s26 + $0xf8] sm:$0xff] %vm331_vm0, %v3697_v50 }
 0x668   : > { %4387 = shalt.err (!%p4384_p3)
}
 0x669   : > { %s4388_s21 = scalar_lea.hbm %s6920_s24, 4096  ;;  %s4392_s27 = scalar_lea.hbm %s7004_s9, 8192 }
 0x66a   : > { %p4389_p4 = scmp.ne.s32.totalorder %s6920_s24, %s4388_s21  ;;  %p4393_p9 = scmp.lt.u32.totalorder %s6920_s24, %s7004_s9 }
 0x66b   : > { %p4394_p10 = scmp.lt.u32.totalorder %s4392_s27, %s4388_s21  ;;  %p4396_p12 = scmp.lt.u32.totalorder %s4388_s21, %s6920_s24 }
 0x66c   : > { %p4390_p7 = pnand %p4389_p4, %p4535_p5 }
 0x66d   : > { %p4395_p11 = por %p4394_p10, %p4393_p9 }
 0x66e   : > { %p4391_p8 = pneg %p4390_p7 }
 0x66f   : > { %p4397_p13 = por %p4396_p12, %p4395_p11 }
 0x671   : > { %p4398_p0 = pnand %p4397_p13, %p4391_p8 }
 0x673   : > { %4401 = shalt.err (!%p4398_p0)
}
 0x674   : > { %s4445_s28 = smov 128   ;;  %s4446_s29 = smov 8  }
 0x675   : > { %4186 = dma.vmem_to_hbm [thread:$0]  (%p4535_p5), %s6922_s14, 4096, %s6920_s24, %s6954_s25, %s4445_s28, %s4445_s28, %s4446_s29  }
 0x676 PF: > { %p4192_p1 = scmp.ge.s32.totalorder %s4436_s12, 2  ;;  %s3759_s16 = sand.u32 1, %s4424_s30  }
 0x677   : > { %s3760_s17 = scalar_lea.sflag [#allocation5], %s3759_s16 }
 0x678   : > { %p4189_p2 = pnand %p4192_p1, %p4539_p6 }
 0x67a   : > { %4419 = dma.done.wait (!%p4189_p2), %s3760_s17, 4096  }
 0x67b   : > { %4421 = vsyncadd (!%p4189_p2), %s3760_s17, 4294963200  ;;  %p19_p3 = scmp.ge.s32.totalorder %s4522_s15, 4   ;;  %s7007_s30 = smov %s4428_s10 }
 0x67c   : > { %s7008_s10 = smov %s4432_s11  ;;  %s7009_s11 = smov %s4533_s18 }
 0x67d   : > { %s7010_s12 = smov %s4522_s15  ;;  %21 = sbr.rel (!%p19_p3) target bundleno = 3 (0x3), region = 95 }
 0x684   :  { %3765 = vsyncpa [#allocation5], 1 }
 0x685   :  { %3767 = vsyncpa [#allocation5 + $0x1], 1 }

</bundles_post_ra>
